<compile_context>
chip_gen: v6e
topology: v6e:2x2x1
jax: 0.10.0
libtpu: 0.0.40
codegen_flags: <defaults>
</compile_context>

<pallas_src>
import functools

import jax
import jax.numpy as jnp
from jax import lax
from jax.experimental import pallas as pl
from jax.experimental.pallas import tpu as pltpu

EPS = 1e-5


def _resblock_kernel(x_ref, w1_ref, w2_ref, o_ref, pad_ref, *,
                     H, W, C, NB, compute_dtype):
    """Fused ResBlock for one block of NB batch elements (NHWC).

    x_ref  : (NB, H, W, C)        unpadded input block
    w1_ref : (3, 3*C, C)          conv1 weights (compute_dtype), rows = kw*C + cin
    w2_ref : (3, 3*C, C)          conv2 weights (compute_dtype)
    o_ref  : (NB, H, W, C)        output block
    pad_ref: (NB, H+2, W+2, C)    zero-bordered VMEM scratch reused by both stages
    """
    # ---- zero ONLY the 1-px border, once per grid step ---------------------
    # Interior is fully overwritten each stage; zeroing the whole scratch
    # (twice per step, as before) was pure vst-slot traffic.  Unconditional so
    # every TensorCore that executes any grid step has a valid border.
    pad_ref[:, 0:1, :, :] = jnp.zeros((NB, 1, W + 2, C), compute_dtype)
    pad_ref[:, H + 1:H + 2, :, :] = jnp.zeros((NB, 1, W + 2, C), compute_dtype)
    pad_ref[:, :, 0:1, :] = jnp.zeros((NB, H + 2, 1, C), compute_dtype)
    pad_ref[:, :, W + 1:W + 2, :] = jnp.zeros((NB, H + 2, 1, C), compute_dtype)

    def conv_in(src, w_ref, apply_relu):
        # Interior write (single copy per stage; border already zero).
        pad_ref[:, 1:H + 1, 1:W + 1, :] = src.astype(compute_dtype)
        sp = pad_ref[...]                                   # (NB, H+2, W+2, C)

        # ---- 3x3 conv as MXU matmuls, accumulated in values --------------
        acc = None
        for kh in range(3):
            rows = sp[:, kh:kh + H, :, :]                   # (NB, H, W+2, C)
            if C < 128:
                # Small C: concat the three kw taps on lanes (K = 3C, 3 dots).
                patch = jnp.concatenate(
                    [rows[:, :, kw:kw + W, :] for kw in range(3)],
                    axis=-1).reshape(NB * H * W, 3 * C)
                d = jnp.dot(patch, w_ref[kh],
                            preferred_element_type=jnp.float32)
                acc = d if acc is None else acc + d
            else:
                # Large C: C alone fills the MXU contraction depth; skip the
                # lane-concat transient and issue 9 accumulating K=C dots.
                for kw in range(3):
                    patch = rows[:, :, kw:kw + W, :].reshape(NB * H * W, C)
                    d = jnp.dot(patch, w_ref[kh, kw * C:(kw + 1) * C, :],
                                preferred_element_type=jnp.float32)
                    acc = d if acc is None else acc + d

        # ---- InstanceNorm2d (affine=False), two-pass stats in f32 ---------
        acc = acc.reshape(NB, H * W, C)
        mean = jnp.mean(acc, axis=1, keepdims=True)          # (NB, 1, C)
        centered = acc - mean
        var = jnp.mean(centered * centered, axis=1, keepdims=True)
        y = centered * lax.rsqrt(var + EPS)
        if apply_relu:
            y = jnp.maximum(y, 0.0)
        return y.reshape(NB, H, W, C)

    y1 = conv_in(x_ref[...], w1_ref, apply_relu=True)        # conv1 + IN + ReLU
    y2 = conv_in(y1, w2_ref, apply_relu=False)                # conv2 + IN
    o_ref[...] = (y2 + x_ref[...].astype(jnp.float32)).astype(o_ref.dtype)


def _vmem_caps():
    """(working-set budget, compiler vmem limit) derived from the chip.

    v5e/v6e (128 MiB VMEM): ~64 MiB budget / 96 MiB limit.
    v7x      (64 MiB VMEM): ~32 MiB budget / 48 MiB limit.
    """
    try:
        cap = int(pltpu.get_tpu_info().vmem_capacity_bytes)
    except Exception:
        cap = 64 << 20  # conservative fallback (v7x per-core)
    budget = cap // 2
    limit = min((cap * 3) // 4, 96 << 20)
    return budget, limit


def _pick_batch_block(N, H, W, C, x_itemsize, cd_itemsize, budget_bytes):
    """Largest divisor of N whose per-step working set fits the budget, capped
    so the grid has >= 2 steps (keeps both v7x TensorCores busy)."""
    weight_bytes = 2 * 9 * C * C * cd_itemsize           # 2 convs, constant index map
    per_elem = (
        4 * H * W * C * x_itemsize                        # x + out blocks, 2x buffered
        + (H + 2) * (W + 2) * C * cd_itemsize             # padded scratch
        + H * W * 3 * C * cd_itemsize                     # patch transient (one kh live)
        + 4 * H * W * C * 4                               # acc / centered / y / y1 (f32)
    )
    budget = max(budget_bytes - weight_bytes, per_elem)
    nb = int(max(1, min(N, budget // per_elem)))
    if N >= 2:
        nb = min(nb, N // 2)                              # >= 2 grid steps
    nb = max(1, nb)
    while N % nb:
        nb -= 1
    return nb


def resblock_forward(x_nchw, params, *, compute_dtype=jnp.bfloat16):
    """ResBlock forward (norm='in', activation='relu', pad_type='zero').

    x_nchw: (N, C, H, W), exactly like the PyTorch module.  Conv biases in
    `params` are accepted but unused: affine-less InstanceNorm2d cancels a
    per-channel constant exactly.  compute_dtype sets the matmul-operand /
    pad-scratch dtype (bf16 = native MXU path on v6e/v7x); accumulation and
    IN statistics stay f32.
    """
    N, C, H, W = x_nchw.shape
    x = jnp.transpose(x_nchw, (0, 2, 3, 1))               # NCHW -> NHWC
    # (3, 3, Cin, Cout) -> (3, 3*Cin, Cout), rows ordered kw-major within each
    # kh (matches the in-kernel kw-tap layout); pre-cast to compute_dtype.
    w1 = params["w1"].reshape(3, 3 * C, C).astype(compute_dtype)
    w2 = params["w2"].reshape(3, 3 * C, C).astype(compute_dtype)

    budget, vmem_limit = _vmem_caps()
    nb = _pick_batch_block(N, H, W, C,
                           jnp.dtype(x.dtype).itemsize,
                           jnp.dtype(compute_dtype).itemsize,
                           budget)
    kernel = functools.partial(_resblock_kernel, H=H, W=W, C=C, NB=nb,
                               compute_dtype=compute_dtype)

    out = pl.pallas_call(
        kernel,
        out_shape=jax.ShapeDtypeStruct((N, H, W, C), x.dtype),
        grid_spec=pltpu.PrefetchScalarGridSpec(
            num_scalar_prefetch=0,
            grid=(N // nb,),
            in_specs=[
                pl.BlockSpec((nb, H, W, C), lambda g: (g, 0, 0, 0)),
                pl.BlockSpec((3, 3 * C, C), lambda g: (0, 0, 0)),
                pl.BlockSpec((3, 3 * C, C), lambda g: (0, 0, 0)),
            ],
            out_specs=pl.BlockSpec((nb, H, W, C), lambda g: (g, 0, 0, 0)),
            scratch_shapes=[
                pltpu.VMEM((nb, H + 2, W + 2, C), compute_dtype),
            ],
        ),
        compiler_params=pltpu.CompilerParams(
            dimension_semantics=("parallel",),
            vmem_limit_bytes=vmem_limit),
    )(x, w1, w2)
    return jnp.transpose(out, (0, 3, 1, 2))                # NHWC -> NCHW


# ----------------------------- reference (pure JAX) -----------------------------
def _ref_forward(x_nchw, params):
    def conv(x, w, b):
        wt = jnp.transpose(w, (3, 2, 0, 1))                # HWIO -> OIHW
        y = lax.conv_general_dilated(
            x, wt, window_strides=(1, 1), padding=((1, 1), (1, 1)),
            dimension_numbers=("NCHW", "OIHW", "NCHW"))
        return y + b[None, :, None, None]

    def inorm(x):
        mean = x.mean(axis=(2, 3), keepdims=True)
        var = ((x - mean) ** 2).mean(axis=(2, 3), keepdims=True)
        return (x - mean) / jnp.sqrt(var + EPS)

    y = jnp.maximum(inorm(conv(x_nchw, params["w1"], params["b1"])), 0.0)
    y = inorm(conv(y, params["w2"], params["b2"]))
    return y + x_nchw


def init_params(key, dim):
    """Deterministic init mimicking nn.Conv2d default (uniform, 1/sqrt(fan_in))."""
    k1, k2, k3, k4 = jax.random.split(key, 4)
    fan_in = dim * 3 * 3
    bound = 1.0 / jnp.sqrt(fan_in)
    return {
        "w1": jax.random.uniform(k1, (3, 3, dim, dim), jnp.float32, -bound, bound),
        "b1": jax.random.uniform(k2, (dim,), jnp.float32, -bound, bound),
        "w2": jax.random.uniform(k3, (3, 3, dim, dim), jnp.float32, -bound, bound),
        "b2": jax.random.uniform(k4, (dim,), jnp.float32, -bound, bound),
    }


if __name__ == "__main__":
    N, C, H, W = 2, 4, 16, 16
    key = jax.random.PRNGKey(0)
    kx, kp = jax.random.split(key)
    x = jax.random.normal(kx, (N, C, H, W), jnp.float32)
    params = init_params(kp, C)

    ref = jax.block_until_ready(_ref_forward(x, params))

    # f32 compute path: tight check against the reference.
    out = jax.block_until_ready(
        resblock_forward(x, params, compute_dtype=jnp.float32))
    assert out.shape == (N, C, H, W), out.shape
    err = float(jnp.max(jnp.abs(out - ref)))
    assert err < 1e-4, err

    # Default bf16 MXU path: functional check with a looser tolerance
    # (y1 is quantized to bf16 in the pad scratch between the two stages).
    out_bf16 = jax.block_until_ready(resblock_forward(x, params))
    assert out_bf16.shape == (N, C, H, W), out_bf16.shape
    assert bool(jnp.all(jnp.isfinite(out_bf16)))
    assert float(jnp.max(jnp.abs(out_bf16 - ref))) < 1e-1

    print("KERNEL_OK")
</pallas_src>

<mosaic_0001>
module attributes {stable_mosaic.version = 11 : i64} {
  func.func @_resblock_kernel(%arg0: i32, %arg1: memref<1x16x16x4xf32, #tpu.memory_space<vmem>>, %arg2: memref<3x12x4xf32, #tpu.memory_space<vmem>>, %arg3: memref<3x12x4xf32, #tpu.memory_space<vmem>>, %arg4: memref<1x16x16x4xf32, #tpu.memory_space<vmem>>, %arg5: memref<1x18x18x4xf32, #tpu.memory_space<vmem>>) attributes {dimension_semantics = [#tpu.dimension_semantics<parallel>], iteration_bounds = array<i64: 2>, scalar_prefetch = 0 : i64, scratch_operands = 1 : i64, tpu.core_type = #tpu.core_type<tc>, window_params = [{transform_indices = @transform_0, window_bounds = array<i64: 1, 16, 16, 4>}, {pipeline_mode = #tpu.pipeline_mode<synchronous>, transform_indices = @transform_1, window_bounds = array<i64: 3, 12, 4>}, {pipeline_mode = #tpu.pipeline_mode<synchronous>, transform_indices = @transform_2, window_bounds = array<i64: 3, 12, 4>}, {transform_indices = @transform_3, window_bounds = array<i64: 1, 16, 16, 4>}]} {
    %cst = arith.constant 0.000000e+00 : f32
    %0 = vector.broadcast %cst : f32 to vector<1x1x18x4xf32>
    %c0 = arith.constant 0 : index
    %c0_0 = arith.constant 0 : index
    %c0_1 = arith.constant 0 : index
    %c0_2 = arith.constant 0 : index
    %1 = vector.load %arg5[%c0, %c0_0, %c0_1, %c0_2] : memref<1x18x18x4xf32, #tpu.memory_space<vmem>>, vector<1x1x18x4xf32>
    tpu.vector_store %arg5[%c0, %c0_0, %c0_1, %c0_2], %0 {strides = array<i32>} : memref<1x18x18x4xf32, #tpu.memory_space<vmem>>, vector<1x1x18x4xf32>,
    %cst_3 = arith.constant 0.000000e+00 : f32
    %2 = vector.broadcast %cst_3 : f32 to vector<1x1x18x4xf32>
    %c0_4 = arith.constant 0 : index
    %c17 = arith.constant 17 : index
    %c0_5 = arith.constant 0 : index
    %c0_6 = arith.constant 0 : index
    %3 = vector.load %arg5[%c0_4, %c17, %c0_5, %c0_6] : memref<1x18x18x4xf32, #tpu.memory_space<vmem>>, vector<1x1x18x4xf32>
    tpu.vector_store %arg5[%c0_4, %c17, %c0_5, %c0_6], %2 {strides = array<i32>} : memref<1x18x18x4xf32, #tpu.memory_space<vmem>>, vector<1x1x18x4xf32>,
    %cst_7 = arith.constant 0.000000e+00 : f32
    %4 = vector.broadcast %cst_7 : f32 to vector<1x18x1x4xf32>
    %c0_8 = arith.constant 0 : index
    %c0_9 = arith.constant 0 : index
    %c0_10 = arith.constant 0 : index
    %c0_11 = arith.constant 0 : index
    %5 = vector.load %arg5[%c0_8, %c0_9, %c0_10, %c0_11] : memref<1x18x18x4xf32, #tpu.memory_space<vmem>>, vector<1x18x1x4xf32>
    tpu.vector_store %arg5[%c0_8, %c0_9, %c0_10, %c0_11], %4 {strides = array<i32>} : memref<1x18x18x4xf32, #tpu.memory_space<vmem>>, vector<1x18x1x4xf32>,
    %cst_12 = arith.constant 0.000000e+00 : f32
    %6 = vector.broadcast %cst_12 : f32 to vector<1x18x1x4xf32>
    %c0_13 = arith.constant 0 : index
    %c0_14 = arith.constant 0 : index
    %c17_15 = arith.constant 17 : index
    %c0_16 = arith.constant 0 : index
    %7 = vector.load %arg5[%c0_13, %c0_14, %c17_15, %c0_16] : memref<1x18x18x4xf32, #tpu.memory_space<vmem>>, vector<1x18x1x4xf32>
    tpu.vector_store %arg5[%c0_13, %c0_14, %c17_15, %c0_16], %6 {strides = array<i32>} : memref<1x18x18x4xf32, #tpu.memory_space<vmem>>, vector<1x18x1x4xf32>,
    %c0_17 = arith.constant 0 : index
    %c0_18 = arith.constant 0 : index
    %c0_19 = arith.constant 0 : index
    %c0_20 = arith.constant 0 : index
    %8 = vector.load %arg1[%c0_17, %c0_18, %c0_19, %c0_20] : memref<1x16x16x4xf32, #tpu.memory_space<vmem>>, vector<1x16x16x4xf32>
    %c0_21 = arith.constant 0 : index
    %c1 = arith.constant 1 : index
    %c1_22 = arith.constant 1 : index
    %c0_23 = arith.constant 0 : index
    %9 = vector.load %arg5[%c0_21, %c1, %c1_22, %c0_23] : memref<1x18x18x4xf32, #tpu.memory_space<vmem>>, vector<1x16x16x4xf32>
    tpu.vector_store %arg5[%c0_21, %c1, %c1_22, %c0_23], %8 {strides = array<i32>} : memref<1x18x18x4xf32, #tpu.memory_space<vmem>>, vector<1x16x16x4xf32>,
    %c0_24 = arith.constant 0 : index
    %c0_25 = arith.constant 0 : index
    %c0_26 = arith.constant 0 : index
    %c0_27 = arith.constant 0 : index
    %10 = vector.load %arg5[%c0_24, %c0_25, %c0_26, %c0_27] : memref<1x18x18x4xf32, #tpu.memory_space<vmem>>, vector<1x18x18x4xf32>
    %11 = vector.extract_strided_slice %10 {offsets = [0, 0, 0, 0], sizes = [1, 16, 18, 4], strides = [1, 1, 1, 1]} : vector<1x18x18x4xf32> to vector<1x16x18x4xf32>
    %12 = vector.extract_strided_slice %11 {offsets = [0, 0, 0, 0], sizes = [1, 16, 16, 4], strides = [1, 1, 1, 1]} : vector<1x16x18x4xf32> to vector<1x16x16x4xf32>
    %13 = vector.extract_strided_slice %11 {offsets = [0, 0, 1, 0], sizes = [1, 16, 16, 4], strides = [1, 1, 1, 1]} : vector<1x16x18x4xf32> to vector<1x16x16x4xf32>
    %14 = vector.extract_strided_slice %11 {offsets = [0, 0, 2, 0], sizes = [1, 16, 16, 4], strides = [1, 1, 1, 1]} : vector<1x16x18x4xf32> to vector<1x16x16x4xf32>
    %15 = tpu.concatenate %12, %13, %14 in 3 : vector<1x16x16x4xf32>, vector<1x16x16x4xf32>, vector<1x16x16x4xf32> -> vector<1x16x16x12xf32>
    %16 = vector.shape_cast %15 : vector<1x16x16x12xf32> to vector<256x12xf32>
    %c0_28 = arith.constant 0 : index
    %c0_29 = arith.constant 0 : index
    %c0_30 = arith.constant 0 : index
    %17 = vector.load %arg2[%c0_28, %c0_29, %c0_30] : memref<3x12x4xf32, #tpu.memory_space<vmem>>, vector<1x12x4xf32>
    %18 = vector.shape_cast %17 : vector<1x12x4xf32> to vector<12x4xf32>
    %cst_31 = arith.constant dense<0.000000e+00> : vector<256x4xf32>
    %19 = tpu.matmul %16, %18, %cst_31 {dimension_numbers = #tpu.dot_dimension_numbers<[1], [0], [0], [1], [0, 0, 1, 1], [], []>} : vector<256x12xf32>, vector<12x4xf32>, vector<256x4xf32> -> vector<256x4xf32>
    %20 = vector.extract_strided_slice %10 {offsets = [0, 1, 0, 0], sizes = [1, 16, 18, 4], strides = [1, 1, 1, 1]} : vector<1x18x18x4xf32> to vector<1x16x18x4xf32>
    %21 = vector.extract_strided_slice %20 {offsets = [0, 0, 0, 0], sizes = [1, 16, 16, 4], strides = [1, 1, 1, 1]} : vector<1x16x18x4xf32> to vector<1x16x16x4xf32>
    %22 = vector.extract_strided_slice %20 {offsets = [0, 0, 1, 0], sizes = [1, 16, 16, 4], strides = [1, 1, 1, 1]} : vector<1x16x18x4xf32> to vector<1x16x16x4xf32>
    %23 = vector.extract_strided_slice %20 {offsets = [0, 0, 2, 0], sizes = [1, 16, 16, 4], strides = [1, 1, 1, 1]} : vector<1x16x18x4xf32> to vector<1x16x16x4xf32>
    %24 = tpu.concatenate %21, %22, %23 in 3 : vector<1x16x16x4xf32>, vector<1x16x16x4xf32>, vector<1x16x16x4xf32> -> vector<1x16x16x12xf32>
    %25 = vector.shape_cast %24 : vector<1x16x16x12xf32> to vector<256x12xf32>
    %c1_32 = arith.constant 1 : index
    %c0_33 = arith.constant 0 : index
    %c0_34 = arith.constant 0 : index
    %26 = vector.load %arg2[%c1_32, %c0_33, %c0_34] : memref<3x12x4xf32, #tpu.memory_space<vmem>>, vector<1x12x4xf32>
    %27 = vector.shape_cast %26 : vector<1x12x4xf32> to vector<12x4xf32>
    %cst_35 = arith.constant dense<0.000000e+00> : vector<256x4xf32>
    %28 = tpu.matmul %25, %27, %cst_35 {dimension_numbers = #tpu.dot_dimension_numbers<[1], [0], [0], [1], [0, 0, 1, 1], [], []>} : vector<256x12xf32>, vector<12x4xf32>, vector<256x4xf32> -> vector<256x4xf32>
    %29 = arith.addf %19, %28 : vector<256x4xf32>
    %30 = vector.extract_strided_slice %10 {offsets = [0, 2, 0, 0], sizes = [1, 16, 18, 4], strides = [1, 1, 1, 1]} : vector<1x18x18x4xf32> to vector<1x16x18x4xf32>
    %31 = vector.extract_strided_slice %30 {offsets = [0, 0, 0, 0], sizes = [1, 16, 16, 4], strides = [1, 1, 1, 1]} : vector<1x16x18x4xf32> to vector<1x16x16x4xf32>
    %32 = vector.extract_strided_slice %30 {offsets = [0, 0, 1, 0], sizes = [1, 16, 16, 4], strides = [1, 1, 1, 1]} : vector<1x16x18x4xf32> to vector<1x16x16x4xf32>
    %33 = vector.extract_strided_slice %30 {offsets = [0, 0, 2, 0], sizes = [1, 16, 16, 4], strides = [1, 1, 1, 1]} : vector<1x16x18x4xf32> to vector<1x16x16x4xf32>
    %34 = tpu.concatenate %31, %32, %33 in 3 : vector<1x16x16x4xf32>, vector<1x16x16x4xf32>, vector<1x16x16x4xf32> -> vector<1x16x16x12xf32>
    %35 = vector.shape_cast %34 : vector<1x16x16x12xf32> to vector<256x12xf32>
    %c2 = arith.constant 2 : index
    %c0_36 = arith.constant 0 : index
    %c0_37 = arith.constant 0 : index
    %36 = vector.load %arg2[%c2, %c0_36, %c0_37] : memref<3x12x4xf32, #tpu.memory_space<vmem>>, vector<1x12x4xf32>
    %37 = vector.shape_cast %36 : vector<1x12x4xf32> to vector<12x4xf32>
    %cst_38 = arith.constant dense<0.000000e+00> : vector<256x4xf32>
    %38 = tpu.matmul %35, %37, %cst_38 {dimension_numbers = #tpu.dot_dimension_numbers<[1], [0], [0], [1], [0, 0, 1, 1], [], []>} : vector<256x12xf32>, vector<12x4xf32>, vector<256x4xf32> -> vector<256x4xf32>
    %39 = arith.addf %29, %38 : vector<256x4xf32>
    %40 = vector.shape_cast %39 : vector<256x4xf32> to vector<1x256x4xf32>
    %cst_39 = arith.constant dense<0.000000e+00> : vector<1x4xf32>
    %41 = vector.multi_reduction <add>, %40, %cst_39 [1] : vector<1x256x4xf32> to vector<1x4xf32>
    %42 = vector.shape_cast %41 : vector<1x4xf32> to vector<1x1x4xf32>
    %cst_40 = arith.constant 2.560000e+02 : f32
    %43 = vector.broadcast %cst_40 : f32 to vector<1x1x4xf32>
    %44 = arith.divf %42, %43 : vector<1x1x4xf32>
    %45 = vector.broadcast %44 : vector<1x1x4xf32> to vector<1x256x4xf32>
    %46 = arith.subf %40, %45 : vector<1x256x4xf32>
    %47 = arith.mulf %46, %46 : vector<1x256x4xf32>
    %cst_41 = arith.constant dense<0.000000e+00> : vector<1x4xf32>
    %48 = vector.multi_reduction <add>, %47, %cst_41 [1] : vector<1x256x4xf32> to vector<1x4xf32>
    %49 = vector.shape_cast %48 : vector<1x4xf32> to vector<1x1x4xf32>
    %cst_42 = arith.constant 2.560000e+02 : f32
    %50 = vector.broadcast %cst_42 : f32 to vector<1x1x4xf32>
    %51 = arith.divf %49, %50 : vector<1x1x4xf32>
    %cst_43 = arith.constant 9.99999974E-6 : f32
    %52 = vector.broadcast %cst_43 : f32 to vector<1x1x4xf32>
    %53 = arith.addf %51, %52 : vector<1x1x4xf32>
    %54 = math.rsqrt %53 : vector<1x1x4xf32>
    %55 = vector.broadcast %54 : vector<1x1x4xf32> to vector<1x256x4xf32>
    %56 = arith.mulf %46, %55 : vector<1x256x4xf32>
    %cst_44 = arith.constant 0.000000e+00 : f32
    %57 = vector.broadcast %cst_44 : f32 to vector<1x256x4xf32>
    %58 = arith.maximumf %56, %57 : vector<1x256x4xf32>
    %59 = vector.shape_cast %58 : vector<1x256x4xf32> to vector<1x16x16x4xf32>
    %c0_45 = arith.constant 0 : index
    %c1_46 = arith.constant 1 : index
    %c1_47 = arith.constant 1 : index
    %c0_48 = arith.constant 0 : index
    %60 = vector.load %arg5[%c0_45, %c1_46, %c1_47, %c0_48] : memref<1x18x18x4xf32, #tpu.memory_space<vmem>>, vector<1x16x16x4xf32>
    tpu.vector_store %arg5[%c0_45, %c1_46, %c1_47, %c0_48], %59 {strides = array<i32>} : memref<1x18x18x4xf32, #tpu.memory_space<vmem>>, vector<1x16x16x4xf32>,
    %c0_49 = arith.constant 0 : index
    %c0_50 = arith.constant 0 : index
    %c0_51 = arith.constant 0 : index
    %c0_52 = arith.constant 0 : index
    %61 = vector.load %arg5[%c0_49, %c0_50, %c0_51, %c0_52] : memref<1x18x18x4xf32, #tpu.memory_space<vmem>>, vector<1x18x18x4xf32>
    %62 = vector.extract_strided_slice %61 {offsets = [0, 0, 0, 0], sizes = [1, 16, 18, 4], strides = [1, 1, 1, 1]} : vector<1x18x18x4xf32> to vector<1x16x18x4xf32>
    %63 = vector.extract_strided_slice %62 {offsets = [0, 0, 0, 0], sizes = [1, 16, 16, 4], strides = [1, 1, 1, 1]} : vector<1x16x18x4xf32> to vector<1x16x16x4xf32>
    %64 = vector.extract_strided_slice %62 {offsets = [0, 0, 1, 0], sizes = [1, 16, 16, 4], strides = [1, 1, 1, 1]} : vector<1x16x18x4xf32> to vector<1x16x16x4xf32>
    %65 = vector.extract_strided_slice %62 {offsets = [0, 0, 2, 0], sizes = [1, 16, 16, 4], strides = [1, 1, 1, 1]} : vector<1x16x18x4xf32> to vector<1x16x16x4xf32>
    %66 = tpu.concatenate %63, %64, %65 in 3 : vector<1x16x16x4xf32>, vector<1x16x16x4xf32>, vector<1x16x16x4xf32> -> vector<1x16x16x12xf32>
    %67 = vector.shape_cast %66 : vector<1x16x16x12xf32> to vector<256x12xf32>
    %c0_53 = arith.constant 0 : index
    %c0_54 = arith.constant 0 : index
    %c0_55 = arith.constant 0 : index
    %68 = vector.load %arg3[%c0_53, %c0_54, %c0_55] : memref<3x12x4xf32, #tpu.memory_space<vmem>>, vector<1x12x4xf32>
    %69 = vector.shape_cast %68 : vector<1x12x4xf32> to vector<12x4xf32>
    %cst_56 = arith.constant dense<0.000000e+00> : vector<256x4xf32>
    %70 = tpu.matmul %67, %69, %cst_56 {dimension_numbers = #tpu.dot_dimension_numbers<[1], [0], [0], [1], [0, 0, 1, 1], [], []>} : vector<256x12xf32>, vector<12x4xf32>, vector<256x4xf32> -> vector<256x4xf32>
    %71 = vector.extract_strided_slice %61 {offsets = [0, 1, 0, 0], sizes = [1, 16, 18, 4], strides = [1, 1, 1, 1]} : vector<1x18x18x4xf32> to vector<1x16x18x4xf32>
    %72 = vector.extract_strided_slice %71 {offsets = [0, 0, 0, 0], sizes = [1, 16, 16, 4], strides = [1, 1, 1, 1]} : vector<1x16x18x4xf32> to vector<1x16x16x4xf32>
    %73 = vector.extract_strided_slice %71 {offsets = [0, 0, 1, 0], sizes = [1, 16, 16, 4], strides = [1, 1, 1, 1]} : vector<1x16x18x4xf32> to vector<1x16x16x4xf32>
    %74 = vector.extract_strided_slice %71 {offsets = [0, 0, 2, 0], sizes = [1, 16, 16, 4], strides = [1, 1, 1, 1]} : vector<1x16x18x4xf32> to vector<1x16x16x4xf32>
    %75 = tpu.concatenate %72, %73, %74 in 3 : vector<1x16x16x4xf32>, vector<1x16x16x4xf32>, vector<1x16x16x4xf32> -> vector<1x16x16x12xf32>
    %76 = vector.shape_cast %75 : vector<1x16x16x12xf32> to vector<256x12xf32>
    %c1_57 = arith.constant 1 : index
    %c0_58 = arith.constant 0 : index
    %c0_59 = arith.constant 0 : index
    %77 = vector.load %arg3[%c1_57, %c0_58, %c0_59] : memref<3x12x4xf32, #tpu.memory_space<vmem>>, vector<1x12x4xf32>
    %78 = vector.shape_cast %77 : vector<1x12x4xf32> to vector<12x4xf32>
    %cst_60 = arith.constant dense<0.000000e+00> : vector<256x4xf32>
    %79 = tpu.matmul %76, %78, %cst_60 {dimension_numbers = #tpu.dot_dimension_numbers<[1], [0], [0], [1], [0, 0, 1, 1], [], []>} : vector<256x12xf32>, vector<12x4xf32>, vector<256x4xf32> -> vector<256x4xf32>
    %80 = arith.addf %70, %79 : vector<256x4xf32>
    %81 = vector.extract_strided_slice %61 {offsets = [0, 2, 0, 0], sizes = [1, 16, 18, 4], strides = [1, 1, 1, 1]} : vector<1x18x18x4xf32> to vector<1x16x18x4xf32>
    %82 = vector.extract_strided_slice %81 {offsets = [0, 0, 0, 0], sizes = [1, 16, 16, 4], strides = [1, 1, 1, 1]} : vector<1x16x18x4xf32> to vector<1x16x16x4xf32>
    %83 = vector.extract_strided_slice %81 {offsets = [0, 0, 1, 0], sizes = [1, 16, 16, 4], strides = [1, 1, 1, 1]} : vector<1x16x18x4xf32> to vector<1x16x16x4xf32>
    %84 = vector.extract_strided_slice %81 {offsets = [0, 0, 2, 0], sizes = [1, 16, 16, 4], strides = [1, 1, 1, 1]} : vector<1x16x18x4xf32> to vector<1x16x16x4xf32>
    %85 = tpu.concatenate %82, %83, %84 in 3 : vector<1x16x16x4xf32>, vector<1x16x16x4xf32>, vector<1x16x16x4xf32> -> vector<1x16x16x12xf32>
    %86 = vector.shape_cast %85 : vector<1x16x16x12xf32> to vector<256x12xf32>
    %c2_61 = arith.constant 2 : index
    %c0_62 = arith.constant 0 : index
    %c0_63 = arith.constant 0 : index
    %87 = vector.load %arg3[%c2_61, %c0_62, %c0_63] : memref<3x12x4xf32, #tpu.memory_space<vmem>>, vector<1x12x4xf32>
    %88 = vector.shape_cast %87 : vector<1x12x4xf32> to vector<12x4xf32>
    %cst_64 = arith.constant dense<0.000000e+00> : vector<256x4xf32>
    %89 = tpu.matmul %86, %88, %cst_64 {dimension_numbers = #tpu.dot_dimension_numbers<[1], [0], [0], [1], [0, 0, 1, 1], [], []>} : vector<256x12xf32>, vector<12x4xf32>, vector<256x4xf32> -> vector<256x4xf32>
    %90 = arith.addf %80, %89 : vector<256x4xf32>
    %91 = vector.shape_cast %90 : vector<256x4xf32> to vector<1x256x4xf32>
    %cst_65 = arith.constant dense<0.000000e+00> : vector<1x4xf32>
    %92 = vector.multi_reduction <add>, %91, %cst_65 [1] : vector<1x256x4xf32> to vector<1x4xf32>
    %93 = vector.shape_cast %92 : vector<1x4xf32> to vector<1x1x4xf32>
    %cst_66 = arith.constant 2.560000e+02 : f32
    %94 = vector.broadcast %cst_66 : f32 to vector<1x1x4xf32>
    %95 = arith.divf %93, %94 : vector<1x1x4xf32>
    %96 = vector.broadcast %95 : vector<1x1x4xf32> to vector<1x256x4xf32>
    %97 = arith.subf %91, %96 : vector<1x256x4xf32>
    %98 = arith.mulf %97, %97 : vector<1x256x4xf32>
    %cst_67 = arith.constant dense<0.000000e+00> : vector<1x4xf32>
    %99 = vector.multi_reduction <add>, %98, %cst_67 [1] : vector<1x256x4xf32> to vector<1x4xf32>
    %100 = vector.shape_cast %99 : vector<1x4xf32> to vector<1x1x4xf32>
    %cst_68 = arith.constant 2.560000e+02 : f32
    %101 = vector.broadcast %cst_68 : f32 to vector<1x1x4xf32>
    %102 = arith.divf %100, %101 : vector<1x1x4xf32>
    %cst_69 = arith.constant 9.99999974E-6 : f32
    %103 = vector.broadcast %cst_69 : f32 to vector<1x1x4xf32>
    %104 = arith.addf %102, %103 : vector<1x1x4xf32>
    %105 = math.rsqrt %104 : vector<1x1x4xf32>
    %106 = vector.broadcast %105 : vector<1x1x4xf32> to vector<1x256x4xf32>
    %107 = arith.mulf %97, %106 : vector<1x256x4xf32>
    %108 = vector.shape_cast %107 : vector<1x256x4xf32> to vector<1x16x16x4xf32>
    %c0_70 = arith.constant 0 : index
    %c0_71 = arith.constant 0 : index
    %c0_72 = arith.constant 0 : index
    %c0_73 = arith.constant 0 : index
    %109 = vector.load %arg1[%c0_70, %c0_71, %c0_72, %c0_73] : memref<1x16x16x4xf32, #tpu.memory_space<vmem>>, vector<1x16x16x4xf32>
    %110 = arith.addf %108, %109 : vector<1x16x16x4xf32>
    %c0_74 = arith.constant 0 : index
    %c0_75 = arith.constant 0 : index
    %c0_76 = arith.constant 0 : index
    %c0_77 = arith.constant 0 : index
    %111 = vector.load %arg4[%c0_74, %c0_75, %c0_76, %c0_77] : memref<1x16x16x4xf32, #tpu.memory_space<vmem>>, vector<1x16x16x4xf32>
    tpu.vector_store %arg4[%c0_74, %c0_75, %c0_76, %c0_77], %110 {strides = array<i32>} : memref<1x16x16x4xf32, #tpu.memory_space<vmem>>, vector<1x16x16x4xf32>,
    return
  }
  func.func @transform_0(%arg0: i32) -> (i32, i32, i32, i32) {
    %c0_i32 = arith.constant 0 : i32
    %c0_i32_0 = arith.constant 0 : i32
    %c0_i32_1 = arith.constant 0 : i32
    %c0_i32_2 = arith.constant 0 : i32
    return %arg0, %c0_i32, %c0_i32_0, %c0_i32_1 : i32, i32, i32, i32
  }
  func.func @transform_1(%arg0: i32) -> (i32, i32, i32) {
    %c0_i32 = arith.constant 0 : i32
    %c0_i32_0 = arith.constant 0 : i32
    %c0_i32_1 = arith.constant 0 : i32
    %c0_i32_2 = arith.constant 0 : i32
    return %c0_i32, %c0_i32_0, %c0_i32_1 : i32, i32, i32
  }
  func.func @transform_2(%arg0: i32) -> (i32, i32, i32) {
    %c0_i32 = arith.constant 0 : i32
    %c0_i32_0 = arith.constant 0 : i32
    %c0_i32_1 = arith.constant 0 : i32
    %c0_i32_2 = arith.constant 0 : i32
    return %c0_i32, %c0_i32_0, %c0_i32_1 : i32, i32, i32
  }
  func.func @transform_3(%arg0: i32) -> (i32, i32, i32, i32) {
    %c0_i32 = arith.constant 0 : i32
    %c0_i32_0 = arith.constant 0 : i32
    %c0_i32_1 = arith.constant 0 : i32
    %c0_i32_2 = arith.constant 0 : i32
    return %arg0, %c0_i32, %c0_i32_0, %c0_i32_1 : i32, i32, i32, i32
  }
}

</mosaic_0001>

<bundles_post_ra>
// kernel: tpu_custom_call.1
= control target key start
LH: loop header
LB: loop body
LE: loop exit
PB: predicated region body
PF: predicated region fallthrough
CT: control target
= control target key end

     0   :  { %s4579_s12 = smov 0   ;;  %s7113_s0 = inlined_call_operand.vmem [shape: f32[2,16,16,4], index: 0, kind: input, shape index: {}]   ;;  %s7114_s1 = inlined_call_operand.vmem [shape: f32[3,12,4], index: 1, kind: input, shape index: {}]   ;;  %s7115_s2 = inlined_call_operand.vmem [shape: f32[3,12,4], index: 2, kind: input, shape index: {}]   ;;  %s7116_s3 = inlined_call_operand.vmem [shape: f32[2,16,16,4], index: 3, kind: output, shape index: {}]  }
   0x1 LB: > { %s3795_s13 = sadd.s32 4294967295, %s4554_s12   ;;  %p3799_p0 = scmp.ge.s32.totalorder %s4554_s12, 1  ;;  %s4554_s12 = sphi %s4579_s12, %s13_s12  }
   0x2   : > { %p137_p1 = scmp.lt.s32.totalorder %s4554_s12, 3 }
   0x4   : > { %p138_p2 = pnand %p3799_p0, %p137_p1 }
   0x6   : > { %141 = sbr.rel (%p138_p2) target bundleno = 1351 (0x547), region = 32 }
   0xb   : > { %p4589_p3 = scmp.lt.s32.totalorder %s3795_s13, 1  ;;  %vm171_vm0 = vcmask 31744   ;;  %vm180_vm1 = vcmask 24576   ;;  %v4556_v0 = vmov 0.0   ;;  %vm174_vm2 = vcmask 25600   ;;  %s4557_s19 = smov 8  }
   0xc   : > { %182 = vst.msk [vmem:[#allocation2 + $0x18] sm:$0x1] %vm180_vm1, %v4556_v0  ;;  %183 = vst.msk [vmem:[#allocation2 + $0x30] sm:$0x1] %vm180_vm1, %v4556_v0  ;;  %vm561_vm3 = vcmask 1045504   ;;  %vm384_vm4 = vcmask 1046528  }
   0xd   : > { %172 = vst.msk [vmem:[#allocation2] sm:$0xff] %vm171_vm0, %v4556_v0  ;;  %173 = vst.msk [vmem:[#allocation2 + $0x8] sm:$0xff] %vm171_vm0, %v4556_v0  ;;  %s7121_s13 = smov (!%p4589_p3, %s3795_s13), 1  ;;  %s4558_s20 = smov 4   ;;  %vm934_vm5 = vcmask 1043456   ;;  %vm770_vm6 = vcmask 64512  }
   0xe   : > { %177 = vst.msk [vmem:[#allocation2 + $0x198] sm:$0xff] %vm171_vm0, %v4556_v0  ;;  %178 = vst.msk [vmem:[#allocation2 + $0x1a0] sm:$0xff] %vm171_vm0, %v4556_v0  ;;  %s4012_s15 = sshll.u32 %s7121_s13, 8  ;;  %vm837_vm7 = vcmask 97280  }
   0xf   : > { %184 = vst.msk [vmem:[#allocation2 + $0x48] sm:$0x1] %vm180_vm1, %v4556_v0  ;;  %185 = vst.msk [vmem:[#allocation2 + $0x60] sm:$0x1] %vm180_vm1, %v4556_v0  ;;  %s4643_s18 = scalar_lea.vmem %s7113_s0, %s4012_s15  ;;  %s6994_s24 = scalar_lea.vmem %s7116_s3, %s4012_s15 }
  0x10   : > { %186 = vst.msk [vmem:[#allocation2 + $0x78] sm:$0x1] %vm180_vm1, %v4556_v0  ;;  %187 = vst.msk [vmem:[#allocation2 + $0x90] sm:$0x1] %vm180_vm1, %v4556_v0  ;;  %v217_v1 = vld [vmem:[%s4643_s18] sm:$0xff]  ;;  %v218_v2 = vld [vmem:[%s4643_s18 + $0x8] sm:$0xff] }
  0x11   : > { %188 = vst.msk [vmem:[#allocation2 + $0xa8] sm:$0x1] %vm180_vm1, %v4556_v0  ;;  %189 = vst.msk [vmem:[#allocation2 + $0xc0] sm:$0x1] %vm180_vm1, %v4556_v0  ;;  %v219_v3 = vld [vmem:[%s4643_s18 + $0x10] sm:$0xff]  ;;  %v220_v4 = vld [vmem:[%s4643_s18 + $0x18] sm:$0xff] }
  0x12   : > { %190 = vst.msk [vmem:[#allocation2 + $0xd8] sm:$0x1] %vm180_vm1, %v4556_v0  ;;  %191 = vst.msk [vmem:[#allocation2 + $0xf0] sm:$0x1] %vm180_vm1, %v4556_v0  ;;  %v221_v5 = vld [vmem:[%s4643_s18 + $0x20] sm:$0xff]  ;;  %v222_v6 = vld [vmem:[%s4643_s18 + $0x28] sm:$0xff] }
  0x13   : > { %192 = vst.msk [vmem:[#allocation2 + $0x108] sm:$0x1] %vm180_vm1, %v4556_v0  ;;  %193 = vst.msk [vmem:[#allocation2 + $0x120] sm:$0x1] %vm180_vm1, %v4556_v0  ;;  %v223_v7 = vld [vmem:[%s4643_s18 + $0x30] sm:$0xff]  ;;  %v224_v8 = vld [vmem:[%s4643_s18 + $0x38] sm:$0xff] }
  0x14   : > { %194 = vst.msk [vmem:[#allocation2 + $0x138] sm:$0x1] %vm180_vm1, %v4556_v0  ;;  %195 = vst.msk [vmem:[#allocation2 + $0x150] sm:$0x1] %vm180_vm1, %v4556_v0  ;;  %v225_v9 = vld [vmem:[%s4643_s18 + $0x40] sm:$0xff]  ;;  %v226_v10 = vld [vmem:[%s4643_s18 + $0x48] sm:$0xff] }
  0x15   : > { %196 = vst.msk [vmem:[#allocation2 + $0x168] sm:$0x1] %vm180_vm1, %v4556_v0  ;;  %197 = vst.msk [vmem:[#allocation2 + $0x180] sm:$0x1] %vm180_vm1, %v4556_v0  ;;  %v227_v11 = vld [vmem:[%s4643_s18 + $0x50] sm:$0xff]  ;;  %v228_v12 = vld [vmem:[%s4643_s18 + $0x58] sm:$0xff] }
  0x16   : > { %200 = vst.msk [vmem:[#allocation2 + $0x29] sm:$0x1] %vm180_vm1, %v4556_v0  ;;  %201 = vst.msk [vmem:[#allocation2 + $0x41] sm:$0x1] %vm180_vm1, %v4556_v0  ;;  %v229_v13 = vld [vmem:[%s4643_s18 + $0x60] sm:$0xff]  ;;  %v230_v14 = vld [vmem:[%s4643_s18 + $0x68] sm:$0xff] }
  0x17   : > { %202 = vst.msk [vmem:[#allocation2 + $0x59] sm:$0x1] %vm180_vm1, %v4556_v0  ;;  %203 = vst.msk [vmem:[#allocation2 + $0x71] sm:$0x1] %vm180_vm1, %v4556_v0  ;;  %v231_v15 = vld [vmem:[%s4643_s18 + $0x70] sm:$0xff]  ;;  %v232_v16 = vld [vmem:[%s4643_s18 + $0x78] sm:$0xff] }
  0x18   : > { %204 = vst.msk [vmem:[#allocation2 + $0x89] sm:$0x1] %vm180_vm1, %v4556_v0  ;;  %205 = vst.msk [vmem:[#allocation2 + $0xa1] sm:$0x1] %vm180_vm1, %v4556_v0  ;;  %v233_v17 = vld [vmem:[%s4643_s18 + $0x80] sm:$0xff]  ;;  %v234_v18 = vld [vmem:[%s4643_s18 + $0x88] sm:$0xff] }
  0x19   : > { %206 = vst.msk [vmem:[#allocation2 + $0xb9] sm:$0x1] %vm180_vm1, %v4556_v0  ;;  %207 = vst.msk [vmem:[#allocation2 + $0xd1] sm:$0x1] %vm180_vm1, %v4556_v0  ;;  %v235_v19 = vld [vmem:[%s4643_s18 + $0x90] sm:$0xff]  ;;  %v236_v20 = vld [vmem:[%s4643_s18 + $0x98] sm:$0xff] }
  0x1a   : > { %208 = vst.msk [vmem:[#allocation2 + $0xe9] sm:$0x1] %vm180_vm1, %v4556_v0  ;;  %209 = vst.msk [vmem:[#allocation2 + $0x101] sm:$0x1] %vm180_vm1, %v4556_v0  ;;  %v237_v21 = vld [vmem:[%s4643_s18 + $0xa0] sm:$0xff]  ;;  %v238_v22 = vld [vmem:[%s4643_s18 + $0xa8] sm:$0xff] }
  0x1b   : > { %210 = vst.msk [vmem:[#allocation2 + $0x119] sm:$0x1] %vm180_vm1, %v4556_v0  ;;  %211 = vst.msk [vmem:[#allocation2 + $0x131] sm:$0x1] %vm180_vm1, %v4556_v0  ;;  %v239_v23 = vld [vmem:[%s4643_s18 + $0xb0] sm:$0xff]  ;;  %v240_v24 = vld [vmem:[%s4643_s18 + $0xb8] sm:$0xff] }
  0x1c   : > { %212 = vst.msk [vmem:[#allocation2 + $0x149] sm:$0x1] %vm180_vm1, %v4556_v0  ;;  %213 = vst.msk [vmem:[#allocation2 + $0x161] sm:$0x1] %vm180_vm1, %v4556_v0  ;;  %v241_v57 = vld [vmem:[%s4643_s18 + $0xc0] sm:$0xff]  ;;  %v242_v58 = vld [vmem:[%s4643_s18 + $0xc8] sm:$0xff] }
  0x1d   : > { %214 = vst.msk [vmem:[#allocation2 + $0x179] sm:$0x1] %vm180_vm1, %v4556_v0  ;;  %215 = vst.msk [vmem:[#allocation2 + $0x191] sm:$0x1] %vm180_vm1, %v4556_v0  ;;  %v243_v59 = vld [vmem:[%s4643_s18 + $0xd0] sm:$0xff]  ;;  %v244_v60 = vld [vmem:[%s4643_s18 + $0xd8] sm:$0xff] }
  0x1e   : > { %181 = vst.msk [vmem:[#allocation2] sm:$0x1] %vm180_vm1, %v4556_v0  ;;  %198 = vst.msk [vmem:[#allocation2 + $0x198] sm:$0x1] %vm180_vm1, %v4556_v0  ;;  %v245_v61 = vld [vmem:[%s4643_s18 + $0xe0] sm:$0xff] }
  0x1f   : > { %175 = vst.msk [vmem:[#allocation2 + $0x10] sm:$0x3] %vm174_vm2, %v4556_v0  ;;  %179 = vst.msk [vmem:[#allocation2 + $0x1a8] sm:$0x3] %vm174_vm2, %v4556_v0 }
  0x20   : > { %250 = vst.msk [vmem:[#allocation2 + $0x19] sm:$0xff] %vm171_vm0, %v217_v1  ;;  %251 = vst.msk [vmem:[#allocation2 + $0x21] sm:$0xff] %vm171_vm0, %v218_v2  ;;  %v3805_v1 = vld [vmem:[%s7114_s1 + $0x18] sm:$0xf] }
  0x21   : > { %252 = vst.msk [vmem:[#allocation2 + $0x31] sm:$0xff] %vm171_vm0, %v219_v3  ;;  %253 = vst.msk [vmem:[#allocation2 + $0x39] sm:$0xff] %vm171_vm0, %v220_v4  ;;  %4218 = vmatprep.subr.msk.mxu0 %vm934_vm5, %v3805_v1 }
  0x22   : > { %199 = vst.msk [vmem:[#allocation2 + $0x11] sm:$0x1] %vm180_vm1, %v4556_v0  ;;  %216 = vst.msk [vmem:[#allocation2 + $0x1a9] sm:$0x1] %vm180_vm1, %v4556_v0  ;;  %v246_v0 = vld [vmem:[%s4643_s18 + $0xe8] sm:$0xff]  ;;  %4219 = vmatpush3.msk.msra.mxu0 %vm934_vm5, %v3805_v1 }
  0x23   : > { %254 = vst.msk [vmem:[#allocation2 + $0x49] sm:$0xff] %vm171_vm0, %v221_v5  ;;  %255 = vst.msk [vmem:[#allocation2 + $0x51] sm:$0xff] %vm171_vm0, %v222_v6  ;;  %v3804_v6 = vld [vmem:[%s7114_s1 + $0x10] sm:$0xff] }
  0x24   : > { %256 = vst.msk [vmem:[#allocation2 + $0x61] sm:$0xff] %vm171_vm0, %v223_v7  ;;  %257 = vst.msk [vmem:[#allocation2 + $0x69] sm:$0xff] %vm171_vm0, %v224_v8  ;;  %v247_v7 = vld [vmem:[%s4643_s18 + $0xf0] sm:$0xff]  ;;  %v248_v8 = vld [vmem:[%s4643_s18 + $0xf8] sm:$0xff]  ;;  %4220 = vmatprep.subr.mxu0 %v3804_v6 }
  0x25   : > { %258 = vst.msk [vmem:[#allocation2 + $0x79] sm:$0xff] %vm171_vm0, %v225_v9  ;;  %259 = vst.msk [vmem:[#allocation2 + $0x81] sm:$0xff] %vm171_vm0, %v226_v10  ;;  %4221 = vmatpush3.msra.mxu0 %v3804_v6 }
  0x26   : > { %260 = vst.msk [vmem:[#allocation2 + $0x91] sm:$0xff] %vm171_vm0, %v227_v11  ;;  %261 = vst.msk [vmem:[#allocation2 + $0x99] sm:$0xff] %vm171_vm0, %v228_v12 }
  0x27   : > { %262 = vst.msk [vmem:[#allocation2 + $0xa9] sm:$0xff] %vm171_vm0, %v229_v13  ;;  %263 = vst.msk [vmem:[#allocation2 + $0xb1] sm:$0xff] %vm171_vm0, %v230_v14  ;;  %v4692_v25 = vld [vmem:[#allocation2 + $0x18] sm:$0xff]  ;;  %v4694_v26 = vld [vmem:[#allocation2 + $0x20] sm:$0xff] }
  0x28   : > { %264 = vst.msk [vmem:[#allocation2 + $0xc1] sm:$0xff] %vm171_vm0, %v231_v15  ;;  %265 = vst.msk [vmem:[#allocation2 + $0xc9] sm:$0xff] %vm171_vm0, %v232_v16  ;;  %v287_v27 = vld [vmem:[#allocation2 + $0x28] sm:$0x3]  ;;  %v567_v28 = vrot.slane %v4692_v25, 2  ;;  %v568_v29 = vrot.slane %v4694_v26, 2 }
  0x29   : > { %266 = vst.msk [vmem:[#allocation2 + $0xd9] sm:$0xff] %vm171_vm0, %v233_v17  ;;  %267 = vst.msk [vmem:[#allocation2 + $0xe1] sm:$0xff] %vm171_vm0, %v234_v18  ;;  %v390_v30 = vrot.slane %v4692_v25, 1  ;;  %v391_v31 = vrot.slane %v4694_v26, 1  ;;  %v4703_v32 = vld [vmem:[#allocation2 + $0x38] sm:$0xff]  ;;  %v570_v33 = vrot.slane %v287_v27, 2 }
  0x2a   : > { %268 = vst.msk [vmem:[#allocation2 + $0xf1] sm:$0xff] %vm171_vm0, %v235_v19  ;;  %269 = vst.msk [vmem:[#allocation2 + $0xf9] sm:$0xff] %vm171_vm0, %v236_v20  ;;  %v393_v34 = vrot.slane %v287_v27, 1  ;;  %v290_v35 = vld [vmem:[#allocation2 + $0x40] sm:$0x3]  ;;  %v4705_v36 = vld [vmem:[#allocation2 + $0x30] sm:$0xff]  ;;  %v569_v37 = vsel %vm561_vm3, %v567_v28, %v568_v29 }
  0x2b   : > { %270 = vst.msk [vmem:[#allocation2 + $0x109] sm:$0xff] %vm171_vm0, %v237_v21  ;;  %271 = vst.msk [vmem:[#allocation2 + $0x111] sm:$0xff] %vm171_vm0, %v238_v22  ;;  %v392_v38 = vsel %vm384_vm4, %v390_v30, %v391_v31  ;;  %646 = vrot.lane.b32.xlu1 %v569_v37, %s4557_s19  ;;  %v396_v39 = vrot.slane %v4703_v32, 1  ;;  %v571_v40 = vsel %vm561_vm3, %v568_v29, %v570_v33  ;;  %v398_v42 = vrot.slane %v290_v35, 1  ;;  %v4721_v49 = vld [vmem:[#allocation2 + $0x50] sm:$0xff]  ;;  %v4723_v51 = vld [vmem:[#allocation2 + $0x48] sm:$0xff] }
  0x2c   : > { %272 = vst.msk [vmem:[#allocation2 + $0x121] sm:$0xff] %vm171_vm0, %v239_v23  ;;  %273 = vst.msk [vmem:[#allocation2 + $0x129] sm:$0xff] %vm171_vm0, %v240_v24  ;;  %469 = vrot.lane.b32.xlu0 %v392_v38, %s4558_s20  ;;  %v394_v41 = vsel %vm384_vm4, %v391_v31, %v393_v34  ;;  %v395_v43 = vrot.slane %v4705_v36, 1  ;;  %v573_v44 = vrot.slane %v4703_v32, 2  ;;  %v575_v47 = vrot.slane %v290_v35, 2  ;;  %v4741_v63 = vld [vmem:[#allocation2 + $0x68] sm:$0xff] }
  0x2d   : > { %v399_v45 = vsel %vm384_vm4, %v396_v39, %v398_v42  ;;  %v572_v48 = vrot.slane %v4705_v36, 2  ;;  %v293_v50 = vld [vmem:[#allocation2 + $0x58] sm:$0x3]  ;;  %v401_v52 = vrot.slane %v4721_v49, 1  ;;  %v400_v56 = vrot.slane %v4723_v51, 1  ;;  %274 = vst.msk [vmem:[#allocation2 + $0x139] sm:$0xff] %vm171_vm0, %v241_v57 }
  0x2e   : > { %v397_v46 = vsel %vm384_vm4, %v395_v43, %v396_v39  ;;  %v576_v53 = vsel %vm561_vm3, %v573_v44, %v575_v47  ;;  %v403_v55 = vrot.slane %v293_v50, 1  ;;  %275 = vst.msk [vmem:[#allocation2 + $0x141] sm:$0xff] %vm171_vm0, %v242_v58  ;;  %v578_v62 = vrot.slane %v4721_v49, 2  ;;  %276 = vst.msk [vmem:[#allocation2 + $0x151] sm:$0xff] %vm171_vm0, %v243_v59  ;;  %v296_v9 = vld [vmem:[#allocation2 + $0x70] sm:$0x3] }
  0x2f   : > { %648 = vrot.lane.b32.xlu1 %v571_v40, %s4557_s19  ;;  %v574_v54 = vsel %vm561_vm3, %v572_v48, %v573_v44  ;;  %277 = vst.msk [vmem:[#allocation2 + $0x159] sm:$0xff] %vm171_vm0, %v244_v60  ;;  %278 = vst.msk [vmem:[#allocation2 + $0x169] sm:$0xff] %vm171_vm0, %v245_v61  ;;  %v402_v3 = vsel %vm384_vm4, %v400_v56, %v401_v52  ;;  %v580_v4 = vrot.slane %v293_v50, 2  ;;  %v577_v5 = vrot.slane %v4723_v51, 2  ;;  %v4760_v10 = vld [vmem:[#allocation2 + $0x60] sm:$0xff]  ;;  %v4779_v23 = vld [vmem:[#allocation2 + $0x78] sm:$0xff] }
  0x30   : > { %471 = vrot.lane.b32.xlu0 %v394_v41, %s4558_s20  ;;  %v404_v2 = vsel %vm384_vm4, %v401_v52, %v403_v55  ;;  %279 = vst.msk [vmem:[#allocation2 + $0x171] sm:$0xff] %vm171_vm0, %v246_v0  ;;  %280 = vst.msk [vmem:[#allocation2 + $0x181] sm:$0xff] %vm171_vm0, %v247_v7  ;;  %v406_v11 = vrot.slane %v4741_v63, 1  ;;  %v408_v14 = vrot.slane %v296_v9, 1  ;;  %v405_v15 = vrot.slane %v4760_v10, 1  ;;  %v4777_v21 = vld [vmem:[#allocation2 + $0x80] sm:$0xff] }
  0x31   : > { %281 = vst.msk [vmem:[#allocation2 + $0x189] sm:$0xff] %vm171_vm0, %v248_v8  ;;  %v581_v12 = vsel %vm561_vm3, %v578_v62, %v580_v4  ;;  %v579_v13 = vsel %vm561_vm3, %v577_v5, %v578_v62  ;;  %v583_v16 = vrot.slane %v4741_v63, 2  ;;  %v585_v19 = vrot.slane %v296_v9, 2  ;;  %v299_v22 = vld [vmem:[#allocation2 + $0x88] sm:$0x3]  ;;  %v4793_v38 = vld [vmem:[#allocation2 + $0x98] sm:$0xff] }
  0x32   : > { %v409_v17 = vsel %vm384_vm4, %v406_v11, %v408_v14  ;;  %v407_v18 = vsel %vm384_vm4, %v405_v15, %v406_v11  ;;  %v582_v20 = vrot.slane %v4760_v10, 2  ;;  %v411_v24 = vrot.slane %v4777_v21, 1  ;;  %v302_v39 = vld [vmem:[#allocation2 + $0xa0] sm:$0x3]  ;;  %v4795_v40 = vld [vmem:[#allocation2 + $0x90] sm:$0xff]  ;;  %v4811_v55 = vld [vmem:[#allocation2 + $0xa8] sm:$0xff] }
  0x33   : > { %475 = vrot.lane.b32.xlu1 %v399_v45, %s4558_s20  ;;  %v586_v27 = vsel %vm561_vm3, %v583_v16, %v585_v19  ;;  %v413_v29 = vrot.slane %v299_v22, 1  ;;  %v410_v30 = vrot.slane %v4779_v23, 1  ;;  %v588_v31 = vrot.slane %v4777_v21, 2  ;;  %v308_v4 = vld [vmem:[#allocation2 + $0xd0] sm:$0x3]  ;;  %v4827_v5 = vld [vmem:[#allocation2 + $0xc0] sm:$0xff] }
  0x34   : > { %473 = vrot.lane.b32.xlu0 %v397_v46, %s4558_s20  ;;  %v584_v28 = vsel %vm561_vm3, %v582_v20, %v583_v16  ;;  %v590_v35 = vrot.slane %v299_v22, 2  ;;  %v587_v37 = vrot.slane %v4779_v23, 2  ;;  %v416_v41 = vrot.slane %v4793_v38, 1  ;;  %v4843_v19 = vld [vmem:[#allocation2 + $0xd8] sm:$0xff] }
  0x35   : > { %v414_v33 = vsel %vm384_vm4, %v411_v24, %v413_v29  ;;  %v412_v34 = vsel %vm384_vm4, %v410_v30, %v411_v24  ;;  %v418_v44 = vrot.slane %v302_v39, 1  ;;  %v415_v45 = vrot.slane %v4795_v40, 1  ;;  %v4854_v29 = vld [vmem:[%s7114_s1 + $0x28] sm:$0xf] }
  0x36   : > { %v591_v42 = vsel %vm561_vm3, %v588_v31, %v590_v35  ;;  %v589_v43 = vsel %vm561_vm3, %v587_v37, %v588_v31  ;;  %v593_v46 = vrot.slane %v4793_v38, 2  ;;  %v595_v50 = vrot.slane %v302_v39, 2  ;;  %4322 = vmatprep.subr.msk.mxu0 %vm934_vm5, %v4854_v29  ;;  %v4864_v37 = vld [vmem:[#allocation2 + $0xf8] sm:$0xff]  ;;  %v314_v39 = vld [vmem:[#allocation2 + $0x100] sm:$0x3] }
  0x37   : > { %652 = vrot.lane.b32.xlu1 %v576_v53, %s4557_s19  ;;  %v419_v47 = vsel %vm384_vm4, %v416_v41, %v418_v44  ;;  %v417_v48 = vsel %vm384_vm4, %v415_v45, %v416_v41  ;;  %v592_v52 = vrot.slane %v4795_v40, 2  ;;  %v4809_v53 = vld [vmem:[#allocation2 + $0xb0] sm:$0xff]  ;;  %v420_v60 = vrot.slane %v4811_v55, 1 }
  0x38   : > { %650 = vrot.lane.b32.xlu0 %v574_v54, %s4557_s19  ;;  %v305_v54 = vld [vmem:[#allocation2 + $0xb8] sm:$0x3]  ;;  %v421_v56 = vrot.slane %v4809_v53, 1  ;;  %v596_v57 = vsel %vm561_vm3, %v593_v46, %v595_v50  ;;  %v598_v61 = vrot.slane %v4809_v53, 2  ;;  %v428_v9 = vrot.slane %v308_v4, 1  ;;  %v4866_v41 = vld [vmem:[#allocation2 + $0xf0] sm:$0xff] }
  0x39   : > { %v594_v58 = vsel %vm561_vm3, %v592_v52, %v593_v46  ;;  %v423_v59 = vrot.slane %v305_v54, 1  ;;  %v600_v1 = vrot.slane %v305_v54, 2  ;;  %v425_v11 = vrot.slane %v4827_v5, 1 }
  0x3a   : > { %v422_v0 = vsel %vm384_vm4, %v420_v60, %v421_v56  ;;  %v605_v15 = vrot.slane %v308_v4, 2  ;;  %v602_v16 = vrot.slane %v4827_v5, 2  ;;  %v607_v35 = vrot.slane %v4843_v19, 2 }
  0x3b   : > { %479 = vrot.lane.b32.xlu1 %v404_v2, %s4558_s20  ;;  %v424_v62 = vsel %vm384_vm4, %v421_v56, %v423_v59  ;;  %v597_v2 = vrot.slane %v4811_v55, 2  ;;  %v601_v7 = vsel %vm561_vm3, %v598_v61, %v600_v1  ;;  %v438_v45 = vrot.slane %v314_v39, 1  ;;  %v4880_v56 = vld [vmem:[#allocation2 + $0x110] sm:$0xff] }
  0x3c   : > { %477 = vrot.lane.b32.xlu0 %v402_v3, %s4558_s20  ;;  %v4825_v3 = vld [vmem:[#allocation2 + $0xc8] sm:$0xff]  ;;  %v435_v46 = vrot.slane %v4866_v41, 1  ;;  %v615_v52 = vrot.slane %v314_v39, 2  ;;  %v612_v54 = vrot.slane %v4866_v41, 2  ;;  %v441_v59 = vrot.slane %v4880_v56, 1 }
  0x3d   : > { %v426_v6 = vrot.slane %v4825_v3, 1  ;;  %v599_v8 = vsel %vm561_vm3, %v597_v2, %v598_v61  ;;  %v618_v1 = vrot.slane %v4880_v56, 2 }
  0x3f   : > { %656 = vrot.lane.b32.xlu1 %v581_v12, %s4557_s19  ;;  %v603_v12 = vrot.slane %v4825_v3, 2  ;;  %v427_v14 = vsel %vm384_vm4, %v425_v11, %v426_v6  ;;  %v4898_v11 = vld [vmem:[#allocation2 + $0x120] sm:$0xff] }
  0x40   : > { %654 = vrot.lane.b32.xlu0 %v579_v13, %s4557_s19  ;;  %v429_v13 = vsel %vm384_vm4, %v426_v6, %v428_v9  ;;  %v320_v9 = vld [vmem:[#allocation2 + $0x130] sm:$0x3] }
  0x41   : > { %v606_v22 = vsel %vm561_vm3, %v603_v12, %v605_v15  ;;  %v604_v24 = vsel %vm561_vm3, %v602_v16, %v603_v12  ;;  %v448_v15 = vrot.slane %v320_v9, 1  ;;  %v445_v16 = vrot.slane %v4898_v11, 1 }
  0x43   : > { %483 = vrot.lane.b32.xlu1 %v409_v17, %s4558_s20  ;;  %v4841_v17 = vld [vmem:[#allocation2 + $0xe0] sm:$0xff] }
  0x44   : > { %481 = vrot.lane.b32.xlu0 %v407_v18, %s4558_s20  ;;  %v311_v18 = vld [vmem:[#allocation2 + $0xe8] sm:$0x3]  ;;  %v431_v20 = vrot.slane %v4841_v17, 1  ;;  %v608_v30 = vrot.slane %v4841_v17, 2 }
  0x46   : > { %v609_v44 = vsel %vm561_vm3, %v607_v35, %v608_v30 }
  0x47   : > { %660 = vrot.lane.b32.xlu1 %v586_v27, %s4557_s19  ;;  %v433_v27 = vrot.slane %v311_v18, 1 }
  0x48   : > { %658 = vrot.lane.b32.xlu0 %v584_v28, %s4557_s19  ;;  %v430_v28 = vrot.slane %v4843_v19, 1 }
  0x49   : > { %v434_v31 = vsel %vm384_vm4, %v431_v20, %v433_v27  ;;  %v622_v27 = vrot.slane %v4898_v11, 2 }
  0x4b   : > { %487 = vrot.lane.b32.xlu1 %v414_v33, %s4558_s20  ;;  %v432_v33 = vsel %vm384_vm4, %v430_v28, %v431_v20  ;;  %v4912_v28 = vld [vmem:[#allocation2 + $0x140] sm:$0xff] }
  0x4c   : > { %485 = vrot.lane.b32.xlu0 %v412_v34, %s4558_s20  ;;  %v610_v34 = vrot.slane %v311_v18, 2 }
  0x4f   : > { %664 = vrot.lane.b32.xlu1 %v591_v42, %s4557_s19  ;;  %v436_v42 = vrot.slane %v4864_v37, 1 }
  0x50   : > { %662 = vrot.lane.b32.xlu0 %v589_v43, %s4557_s19  ;;  %v611_v43 = vsel %vm561_vm3, %v608_v30, %v610_v34  ;;  %v323_v30 = vld [vmem:[#allocation2 + $0x148] sm:$0x3] }
  0x51   : > { %v437_v50 = vsel %vm384_vm4, %v435_v46, %v436_v42  ;;  %v453_v39 = vrot.slane %v323_v30, 1  ;;  %v630_v46 = vrot.slane %v323_v30, 2  ;;  %v4960_v30 = vld [vmem:[#allocation2 + $0x188] sm:$0xff] }
  0x53   : > { %491 = vrot.lane.b32.xlu1 %v419_v47, %s4558_s20  ;;  %v613_v47 = vrot.slane %v4864_v37, 2 }
  0x54   : > { %489 = vrot.lane.b32.xlu0 %v417_v48, %s4558_s20  ;;  %v439_v48 = vsel %vm384_vm4, %v436_v42, %v438_v45 }
  0x55   : > { %v616_v60 = vsel %vm561_vm3, %v613_v47, %v615_v52  ;;  %v614_v61 = vsel %vm561_vm3, %v612_v54, %v613_v47  ;;  %v4930_v52 = vld [vmem:[#allocation2 + $0x150] sm:$0xff] }
  0x57   : > { %668 = vrot.lane.b32.xlu1 %v596_v57, %s4557_s19  ;;  %v317_v57 = vld [vmem:[#allocation2 + $0x118] sm:$0x3] }
  0x58   : > { %666 = vrot.lane.b32.xlu0 %v594_v58, %s4557_s19  ;;  %v4882_v58 = vld [vmem:[#allocation2 + $0x108] sm:$0xff]  ;;  %v620_v6 = vrot.slane %v317_v57, 2 }
  0x5b   : > { %495 = vrot.lane.b32.xlu1 %v424_v62, %s4558_s20  ;;  %v443_v62 = vrot.slane %v317_v57, 1 }
  0x5c   : > { %493 = vrot.lane.b32.xlu0 %v422_v0, %s4558_s20  ;;  %v440_v0 = vrot.slane %v4882_v58, 1 }
  0x5d   : > { %v444_v2 = vsel %vm384_vm4, %v441_v59, %v443_v62 }
  0x5e   : > { %v442_v4 = vsel %vm384_vm4, %v440_v0, %v441_v59 }
  0x5f   : > { %672 = vrot.lane.b32.xlu1 %v601_v7, %s4557_s19  ;;  %v617_v7 = vrot.slane %v4882_v58, 2 }
  0x60   : > { %670 = vrot.lane.b32.xlu0 %v599_v8, %s4557_s19  ;;  %v4896_v8 = vld [vmem:[#allocation2 + $0x128] sm:$0xff] }
  0x61   : > { %v446_v12 = vrot.slane %v4896_v8, 1  ;;  %v623_v18 = vrot.slane %v4896_v8, 2 }
  0x63   : > { %499 = vrot.lane.b32.xlu1 %v429_v13, %s4558_s20  ;;  %v621_v13 = vsel %vm561_vm3, %v618_v1, %v620_v6  ;;  %v449_v20 = vsel %vm384_vm4, %v446_v12, %v448_v15  ;;  %v624_v35 = vsel %vm561_vm3, %v622_v27, %v623_v18  ;;  %v4944_v6 = vld [vmem:[#allocation2 + $0x170] sm:$0xff] }
  0x64   : > { %497 = vrot.lane.b32.xlu0 %v427_v14, %s4558_s20  ;;  %v619_v14 = vsel %vm561_vm3, %v617_v7, %v618_v1  ;;  %v329_v7 = vld [vmem:[#allocation2 + $0x178] sm:$0x3] }
  0x65   : > { %v463_v15 = vrot.slane %v329_v7, 1 }
  0x67   : > { %676 = vrot.lane.b32.xlu1 %v606_v22, %s4557_s19  ;;  %v447_v22 = vsel %vm384_vm4, %v445_v16, %v446_v12  ;;  %v461_v12 = vrot.slane %v4944_v6, 1 }
  0x68   : > { %674 = vrot.lane.b32.xlu0 %v604_v24, %s4557_s19  ;;  %v625_v24 = vrot.slane %v320_v9, 2  ;;  %v4946_v9 = vld [vmem:[#allocation2 + $0x168] sm:$0xff] }
  0x69   : > { %v460_v16 = vrot.slane %v4946_v9, 1  ;;  %v637_v27 = vrot.slane %v4946_v9, 2 }
  0x6a   : > { %v626_v34 = vsel %vm561_vm3, %v623_v18, %v625_v24  ;;  %v638_v18 = vrot.slane %v4944_v6, 2  ;;  %v640_v24 = vrot.slane %v329_v7, 2  ;;  %v284_v7 = vld [vmem:[#allocation2 + $0x10] sm:$0x3] }
  0x6b   : > { %503 = vrot.lane.b32.xlu1 %v434_v31, %s4558_s20  ;;  %v4914_v31 = vld [vmem:[#allocation2 + $0x138] sm:$0xff] }
  0x6c   : > { %501 = vrot.lane.b32.xlu0 %v432_v33, %s4558_s20  ;;  %v451_v33 = vrot.slane %v4912_v28, 1  ;;  %v450_v42 = vrot.slane %v4914_v31, 1  ;;  %v627_v47 = vrot.slane %v4914_v31, 2 }
  0x6e   : > { %v452_v45 = vsel %vm384_vm4, %v450_v42, %v451_v33  ;;  %v639_v42 = vsel %vm561_vm3, %v637_v27, %v638_v18 }
  0x6f   : > { %680 = vrot.lane.b32.xlu1 %v611_v43, %s4557_s19  ;;  %v628_v43 = vrot.slane %v4912_v28, 2 }
  0x70   : > { %678 = vrot.lane.b32.xlu0 %v609_v44, %s4557_s19  ;;  %v454_v44 = vsel %vm384_vm4, %v451_v33, %v453_v39  ;;  %v332_v33 = vld [vmem:[#allocation2 + $0x190] sm:$0x3]  ;;  %v641_v39 = vsel %vm561_vm3, %v638_v18, %v640_v24  ;;  %v388_v18 = vrot.slane %v284_v7, 1 }
  0x71   : > { %v631_v57 = vsel %vm561_vm3, %v628_v43, %v630_v46  ;;  %v629_v59 = vsel %vm561_vm3, %v627_v47, %v628_v43  ;;  %v811_v43 = vrot.slane %v332_v33, 1  ;;  %v4972_v46 = vld [vmem:[#allocation2 + $0x8] sm:$0xff] }
  0x72   : > { %v563_v27 = vrot.slane %v4972_v46, 2 }
  0x73   : > { %507 = vrot.lane.b32.xlu1 %v439_v48, %s4558_s20  ;;  %v4928_v48 = vld [vmem:[#allocation2 + $0x158] sm:$0xff] }
  0x74   : > { %505 = vrot.lane.b32.xlu0 %v437_v50, %s4558_s20  ;;  %v326_v50 = vld [vmem:[#allocation2 + $0x160] sm:$0x3]  ;;  %v456_v54 = vrot.slane %v4928_v48, 1  ;;  %v633_v62 = vrot.slane %v4928_v48, 2 }
  0x77   : > { %684 = vrot.lane.b32.xlu1 %v616_v60, %s4557_s19  ;;  %v458_v60 = vrot.slane %v326_v50, 1 }
  0x78   : > { %682 = vrot.lane.b32.xlu0 %v614_v61, %s4557_s19  ;;  %v455_v61 = vrot.slane %v4930_v52, 1 }
  0x79   : > { %v459_v0 = vsel %vm384_vm4, %v456_v54, %v458_v60  ;;  %v386_v60 = vrot.slane %v4972_v46, 1 }
  0x7a   : > { %v457_v1 = vsel %vm384_vm4, %v455_v61, %v456_v54  ;;  %v804_v61 = vld [vmem:[%s7114_s1 + $0x8] sm:$0xf] }
  0x7b   : > { %511 = vrot.lane.b32.xlu1 %v444_v2, %s4558_s20  ;;  %v635_v2 = vrot.slane %v326_v50, 2  ;;  %4270 = vmatprep.subr.msk.mxu1 %vm934_vm5, %v804_v61 }
  0x7c   : > { %509 = vrot.lane.b32.xlu0 %v442_v4, %s4558_s20  ;;  %v632_v4 = vrot.slane %v4930_v52, 2  ;;  %4271 = vmatpush3.msk.msra.mxu1 %vm934_vm5, %v804_v61  ;;  %v335_v61 = vld [vmem:[#allocation2 + $0x1a8] sm:$0x3] }
  0x7f   : > { %688 = vrot.lane.b32.xlu1 %v621_v13, %s4557_s19  ;;  %v636_v13 = vsel %vm561_vm3, %v633_v62, %v635_v2 }
  0x80   : > { %686 = vrot.lane.b32.xlu0 %v619_v14, %s4557_s19  ;;  %v634_v14 = vsel %vm561_vm3, %v632_v4, %v633_v62 }
  0x83   : > { %515 = vrot.lane.b32.xlu1 %v449_v20, %s4558_s20  ;;  %v464_v20 = vsel %vm384_vm4, %v461_v12, %v463_v15  ;;  %v3872_v15 = vld [vmem:[%s7114_s1 + $0x20] sm:$0xff] }
  0x84   : > { %513 = vrot.lane.b32.xlu0 %v447_v22, %s4558_s20  ;;  %v462_v22 = vsel %vm384_vm4, %v460_v16, %v461_v12 }
  0x87   : > { %692 = vrot.lane.b32.xlu1 %v626_v34, %s4557_s19  ;;  %v4962_v34 = vld [vmem:[#allocation2 + $0x180] sm:$0xff] }
  0x88   : > { %690 = vrot.lane.b32.xlu0 %v624_v35, %s4557_s19  ;;  %v809_v35 = vrot.slane %v4960_v30, 1 }
  0x8b   : > { %519 = vrot.lane.b32.xlu1 %v454_v44, %s4558_s20  ;;  %v808_v44 = vrot.slane %v4962_v34, 1 }
  0x8c   : > { %517 = vrot.lane.b32.xlu0 %v452_v45, %s4558_s20  ;;  %v4970_v45 = vld [vmem:[#allocation2] sm:$0xff] }
  0x8d   : > { %v810_v62 = vsel %vm384_vm4, %v808_v44, %v809_v35 }
  0x8f   : > { %696 = vrot.lane.b32.xlu1 %v631_v57, %s4557_s19 }
  0x90   : > { %694 = vrot.lane.b32.xlu0 %v629_v59, %s4557_s19  ;;  %v385_v59 = vrot.slane %v4970_v45, 1 }
  0x93   : > { %523 = vrot.lane.b32.xlu1 %v459_v0, %s4558_s20  ;;  %v819_v0 = vrot.slane %v4962_v34, 2 }
  0x94   : > { %521 = vrot.lane.b32.xlu0 %v457_v1, %s4558_s20  ;;  %v820_v1 = vrot.slane %v4960_v30, 2 }
  0x96   : > { %v821_v16 = vsel %vm561_vm3, %v819_v0, %v820_v1 }
  0x97   : > { %700 = vrot.lane.b32.xlu1 %v636_v13, %s4557_s19  ;;  %v803_v13 = vld [vmem:[%s7114_s1] sm:$0xff] }
  0x98   : > { %698 = vrot.lane.b32.xlu0 %v634_v14, %s4557_s19  ;;  %4272 = vmatprep.subr.mxu1 %v803_v13 }
  0x99   : > { %4273 = vmatpush3.msra.mxu1 %v803_v13 }
  0x9b   : > { %527 = vrot.lane.b32.xlu1 %v464_v20, %s4558_s20  ;;  %v822_v20 = vrot.slane %v332_v33, 2  ;;  %v562_v33 = vrot.slane %v4970_v45, 2 }
  0x9c   : > { %525 = vrot.lane.b32.xlu0 %v462_v22, %s4558_s20 }
  0x9d   : > { %v647_v47 = vpop.permute.xlu1 %646 }
  0x9e   : > { %v470_v50 = vpop.permute.xlu0 %469 }
  0x9f   : > { %v740_v54 = vsel %vm171_vm0, %v4692_v25, %v470_v50  ;;  %704 = vrot.lane.b32.xlu1 %v641_v39, %s4557_s19  ;;  %v812_v25 = vsel %vm384_vm4, %v809_v35, %v811_v43  ;;  %v389_v35 = vsel %vm384_vm4, %v386_v60, %v388_v18  ;;  %v823_v39 = vsel %vm561_vm3, %v820_v1, %v822_v20  ;;  %v5023_v50 = vld [vmem:[#allocation2 + $0x198] sm:$0xff] }
  0xa0   : > { %702 = vrot.lane.b32.xlu0 %v639_v42, %s4557_s19  ;;  %v4979_v57 = vsel %vm770_vm6, %v740_v54, %v647_v47  ;;  %v565_v42 = vrot.slane %v284_v7, 2  ;;  %v5025_v54 = vld [vmem:[#allocation2 + $0x1a0] sm:$0xff]  ;;  %v1411_v7 = vrot.slane %v5023_v50, 2  ;;  %v1414_v20 = vrot.slane %v335_v61, 2 }
  0xa1   : > { %4222 = vmatprep.mubr.msk.f32.mxu0 %vm837_vm7, %v4979_v57  ;;  %v649_v2 = vpop.permute.xlu1 %648 }
  0xa2   : > { %v472_v4 = vpop.permute.xlu0 %471 }
  0xa3   : > { %v741_v12 = vsel %vm171_vm0, %v4694_v26, %v472_v4  ;;  %815 = vrot.lane.b32.xlu1 %v812_v25, %s4558_s20  ;;  %v387_v26 = vsel %vm384_vm4, %v385_v59, %v386_v60  ;;  %v1400_v25 = vrot.slane %v5023_v50, 1 }
  0xa4   : > { %813 = vrot.lane.b32.xlu0 %v810_v62, %s4558_s20  ;;  %v5002_v14 = vsel %vm770_vm6, %v741_v12, %v649_v2  ;;  %v1401_v62 = vrot.slane %v5025_v54, 1  ;;  %v1403_v2 = vrot.slane %v335_v61, 1  ;;  %v1412_v12 = vrot.slane %v5025_v54, 2 }
  0xa5   : > { %4223 = vmatmul.mubr.msk.f32.vlgmr.msra.gmra.mxu0 %vm837_vm7, %v5002_v14  ;;  %v476_v22 = vpop.permute.xlu1 %475 }
  0xa6   : > { %v474_v24 = vpop.permute.xlu0 %473  ;;  %4323 = vmatpush3.msk.msra.mxu0 %vm934_vm5, %v4854_v29  ;;  %v743_v43 = vsel %vm171_vm0, %v4703_v32, %v476_v22  ;;  %v566_v32 = vsel %vm561_vm3, %v563_v27, %v565_v42  ;;  %v1402_v4 = vsel %vm384_vm4, %v1400_v25, %v1401_v62  ;;  %v1404_v18 = vsel %vm384_vm4, %v1401_v62, %v1403_v2 }
  0xa7   : > { %4324 = vmatprep.subr.mxu0 %v3872_v15  ;;  %465 = vrot.lane.b32.xlu1 %v387_v26, %s4558_s20  ;;  %v742_v29 = vsel %vm171_vm0, %v4705_v36, %v474_v24  ;;  %v564_v36 = vsel %vm561_vm3, %v562_v33, %v563_v27 }
  0xa8   : > { %824 = vrot.lane.b32.xlu0 %v821_v16, %s4557_s19  ;;  %4325 = vmatpush3.msra.mxu0 %v3872_v15 }
  0xa9   : > { %v653_v44 = vpop.permute.xlu1 %652 }
  0xaa   : > { %v651_v47 = vpop.permute.xlu0 %650  ;;  %v5028_v59 = vsel %vm770_vm6, %v743_v43, %v653_v44 }
  0xab   : > { %v5031_v60 = vsel %vm770_vm6, %v742_v29, %v651_v47  ;;  %467 = vrot.lane.b32.xlu1 %v389_v35, %s4558_s20  ;;  %v1415_v35 = vsel %vm561_vm3, %v1412_v12, %v1414_v20 }
  0xac   : > { %826 = vrot.lane.b32.xlu0 %v823_v39, %s4557_s19  ;;  %4225 = vmatprep.mubr.msk.f32.mxu0 %vm837_vm7, %v5031_v60 }
  0xad   : > { %4226 = vmatmul.mubr.msk.f32.gmra.mxu0 %vm837_vm7, %v5028_v59  ;;  %v480_v0 = vpop.permute.xlu1 %479 }
  0xae   : > { %v478_v1 = vpop.permute.xlu0 %477  ;;  %v745_v13 = vsel %vm171_vm0, %v4721_v49, %v480_v0  ;;  %v1413_v49 = vsel %vm561_vm3, %v1411_v7, %v1412_v12 }
  0xaf   : > { %644 = vrot.lane.b32.xlu1 %v566_v32, %s4557_s19  ;;  %v744_v15 = vsel %vm171_vm0, %v4723_v51, %v478_v1 }
  0xb0   : > { %642 = vrot.lane.b32.xlu0 %v564_v36, %s4557_s19 }
  0xb1   : > { %v657_v26 = vpop.permute.xlu1 %656 }
  0xb2   : > { %v655_v16 = vpop.permute.xlu0 %654  ;;  %v5054_v22 = vsel %vm770_vm6, %v745_v13, %v657_v26 }
  0xb3   : > { %v5057_v24 = vsel %vm770_vm6, %v744_v15, %v655_v16  ;;  %1407 = vrot.lane.b32.xlu1 %v1404_v18, %s4558_s20 }
  0xb4   : > { %4228 = vmatprep.mubr.msk.f32.mxu0 %vm837_vm7, %v5057_v24  ;;  %1405 = vrot.lane.b32.xlu0 %v1402_v4, %s4558_s20 }
  0xb5   : > { %4229 = vmatmul.mubr.msk.f32.gmra.mxu0 %vm837_vm7, %v5054_v22  ;;  %v484_v51 = vpop.permute.xlu1 %483 }
  0xb6   : > { %v482_v27 = vpop.permute.xlu0 %481  ;;  %v747_v39 = vsel %vm171_vm0, %v4741_v63, %v484_v51 }
  0xb7   : > { %1418 = vrot.lane.b32.xlu1 %v1415_v35, %s4557_s19  ;;  %v746_v42 = vsel %vm171_vm0, %v4760_v10, %v482_v27 }
  0xb8   : > { %1416 = vrot.lane.b32.xlu0 %v1413_v49, %s4557_s19 }
  0xb9   : > { %v661_v33 = vpop.permute.xlu1 %660 }
  0xba   : > { %v659_v43 = vpop.permute.xlu0 %658  ;;  %v5074_v29 = vsel %vm770_vm6, %v747_v39, %v661_v33 }
  0xbb   : > { %v5077_v44 = vsel %vm770_vm6, %v746_v42, %v659_v43 }
  0xbc   : > { %4231 = vmatprep.mubr.msk.f32.mxu0 %vm837_vm7, %v5077_v44 }
  0xbd   : > { %4232 = vmatmul.mubr.msk.f32.gmra.mxu0 %vm837_vm7, %v5074_v29  ;;  %v488_v47 = vpop.permute.xlu1 %487 }
  0xbe   : > { %v486_v61 = vpop.permute.xlu0 %485  ;;  %v749_v63 = vsel %vm171_vm0, %v4777_v21, %v488_v47 }
  0xbf   : > { %v748_v10 = vsel %vm171_vm0, %v4779_v23, %v486_v61 }
  0xc1   : > { %v665_v32 = vpop.permute.xlu1 %664 }
  0xc2   : > { %v663_v36 = vpop.permute.xlu0 %662  ;;  %v5088_v25 = vsel %vm770_vm6, %v749_v63, %v665_v32 }
  0xc3   : > { %v5091_v62 = vsel %vm770_vm6, %v748_v10, %v663_v36 }
  0xc4   : > { %4234 = vmatprep.mubr.msk.f32.mxu0 %vm837_vm7, %v5091_v62 }
  0xc5   : > { %4235 = vmatmul.mubr.msk.f32.gmra.mxu0 %vm837_vm7, %v5088_v25  ;;  %v492_v0 = vpop.permute.xlu1 %491 }
  0xc6   : > { %v490_v1 = vpop.permute.xlu0 %489  ;;  %v751_v21 = vsel %vm171_vm0, %v4793_v38, %v492_v0 }
  0xc7   : > { %v750_v23 = vsel %vm171_vm0, %v4795_v40, %v490_v1 }
  0xc9   : > { %v669_v2 = vpop.permute.xlu1 %668 }
  0xca   : > { %v667_v4 = vpop.permute.xlu0 %666  ;;  %v5102_v7 = vsel %vm770_vm6, %v751_v21, %v669_v2 }
  0xcb   : > { %v5105_v12 = vsel %vm770_vm6, %v750_v23, %v667_v4 }
  0xcc   : > { %4237 = vmatprep.mubr.msk.f32.mxu0 %vm837_vm7, %v5105_v12 }
  0xcd   : > { %4238 = vmatmul.mubr.msk.f32.gmra.mxu0 %vm837_vm7, %v5102_v7  ;;  %v496_v13 = vpop.permute.xlu1 %495 }
  0xce   : > { %v494_v15 = vpop.permute.xlu0 %493  ;;  %v753_v38 = vsel %vm171_vm0, %v4809_v53, %v496_v13 }
  0xcf   : > { %v752_v40 = vsel %vm171_vm0, %v4811_v55, %v494_v15 }
  0xd1   : > { %v673_v26 = vpop.permute.xlu1 %672 }
  0xd2   : > { %v671_v16 = vpop.permute.xlu0 %670  ;;  %v5116_v18 = vsel %vm770_vm6, %v753_v38, %v673_v26 }
  0xd3   : > { %v5119_v20 = vsel %vm770_vm6, %v752_v40, %v671_v16 }
  0xd4   : > { %4240 = vmatprep.mubr.msk.f32.mxu0 %vm837_vm7, %v5119_v20 }
  0xd5   : > { %4241 = vmatmul.mubr.msk.f32.gmra.mxu0 %vm837_vm7, %v5116_v18  ;;  %v500_v49 = vpop.permute.xlu1 %499 }
  0xd6   : > { %v498_v51 = vpop.permute.xlu0 %497  ;;  %v755_v53 = vsel %vm171_vm0, %v4825_v3, %v500_v49 }
  0xd7   : > { %v754_v55 = vsel %vm171_vm0, %v4827_v5, %v498_v51 }
  0xd9   : > { %v677_v27 = vpop.permute.xlu1 %676 }
  0xda   : > { %v675_v35 = vpop.permute.xlu0 %674  ;;  %v5130_v39 = vsel %vm770_vm6, %v755_v53, %v677_v27 }
  0xdb   : > { %v5133_v42 = vsel %vm770_vm6, %v754_v55, %v675_v35 }
  0xdc   : > { %4243 = vmatprep.mubr.msk.f32.mxu0 %vm837_vm7, %v5133_v42 }
  0xdd   : > { %4244 = vmatmul.mubr.msk.f32.gmra.mxu0 %vm837_vm7, %v5130_v39  ;;  %v504_v33 = vpop.permute.xlu1 %503 }
  0xde   : > { %v502_v43 = vpop.permute.xlu0 %501  ;;  %v757_v3 = vsel %vm171_vm0, %v4841_v17, %v504_v33 }
  0xdf   : > { %v756_v5 = vsel %vm171_vm0, %v4843_v19, %v502_v43 }
  0xe1   : > { %v681_v47 = vpop.permute.xlu1 %680 }
  0xe2   : > { %v679_v61 = vpop.permute.xlu0 %678  ;;  %v5144_v63 = vsel %vm770_vm6, %v757_v3, %v681_v47 }
  0xe3   : > { %v5147_v10 = vsel %vm770_vm6, %v756_v5, %v679_v61 }
  0xe4   : > { %4246 = vmatprep.mubr.msk.f32.mxu0 %vm837_vm7, %v5147_v10 }
  0xe5   : > { %4247 = vmatmul.mubr.msk.f32.gmra.mxu0 %vm837_vm7, %v5144_v63  ;;  %v508_v32 = vpop.permute.xlu1 %507 }
  0xe6   : > { %v506_v36 = vpop.permute.xlu0 %505  ;;  %v759_v17 = vsel %vm171_vm0, %v4864_v37, %v508_v32 }
  0xe7   : > { %v758_v19 = vsel %vm171_vm0, %v4866_v41, %v506_v36 }
  0xe9   : > { %v685_v0 = vpop.permute.xlu1 %684 }
  0xea   : > { %v683_v1 = vpop.permute.xlu0 %682  ;;  %v5158_v21 = vsel %vm770_vm6, %v759_v17, %v685_v0 }
  0xeb   : > { %v5161_v23 = vsel %vm770_vm6, %v758_v19, %v683_v1 }
  0xec   : > { %4249 = vmatprep.mubr.msk.f32.mxu0 %vm837_vm7, %v5161_v23 }
  0xed   : > { %4250 = vmatmul.mubr.msk.f32.gmra.mxu0 %vm837_vm7, %v5158_v21  ;;  %v512_v2 = vpop.permute.xlu1 %511 }
  0xee   : > { %v510_v4 = vpop.permute.xlu0 %509  ;;  %v761_v37 = vsel %vm171_vm0, %v4880_v56, %v512_v2 }
  0xef   : > { %v760_v41 = vsel %vm171_vm0, %v4882_v58, %v510_v4 }
  0xf1   : > { %v689_v13 = vpop.permute.xlu1 %688 }
  0xf2   : > { %v687_v15 = vpop.permute.xlu0 %686  ;;  %v5172_v38 = vsel %vm770_vm6, %v761_v37, %v689_v13 }
  0xf3   : > { %v5175_v40 = vsel %vm770_vm6, %v760_v41, %v687_v15 }
  0xf4   : > { %4252 = vmatprep.mubr.msk.f32.mxu0 %vm837_vm7, %v5175_v40 }
  0xf5   : > { %4253 = vmatmul.mubr.msk.f32.gmra.mxu0 %vm837_vm7, %v5172_v38  ;;  %v516_v26 = vpop.permute.xlu1 %515 }
  0xf6   : > { %v514_v16 = vpop.permute.xlu0 %513  ;;  %v763_v56 = vsel %vm171_vm0, %v4896_v8, %v516_v26 }
  0xf7   : > { %v762_v58 = vsel %vm171_vm0, %v4898_v11, %v514_v16 }
  0xf9   : > { %v693_v49 = vpop.permute.xlu1 %692 }
  0xfa   : > { %v691_v51 = vpop.permute.xlu0 %690  ;;  %v5186_v53 = vsel %vm770_vm6, %v763_v56, %v693_v49 }
  0xfb   : > { %v5189_v55 = vsel %vm770_vm6, %v762_v58, %v691_v51 }
  0xfc   : > { %4255 = vmatprep.mubr.msk.f32.mxu0 %vm837_vm7, %v5189_v55 }
  0xfd   : > { %4256 = vmatmul.mubr.msk.f32.gmra.mxu0 %vm837_vm7, %v5186_v53  ;;  %v520_v27 = vpop.permute.xlu1 %519 }
  0xfe   : > { %v518_v35 = vpop.permute.xlu0 %517  ;;  %v765_v8 = vsel %vm171_vm0, %v4912_v28, %v520_v27 }
  0xff   : > { %v764_v11 = vsel %vm171_vm0, %v4914_v31, %v518_v35 }
 0x101   : > { %v697_v33 = vpop.permute.xlu1 %696 }
 0x102   : > { %v695_v43 = vpop.permute.xlu0 %694  ;;  %v5200_v3 = vsel %vm770_vm6, %v765_v8, %v697_v33 }
 0x103   : > { %v5203_v5 = vsel %vm770_vm6, %v764_v11, %v695_v43 }
 0x104   : > { %4258 = vmatprep.mubr.msk.f32.mxu0 %vm837_vm7, %v5203_v5 }
 0x105   : > { %4259 = vmatmul.mubr.msk.f32.gmra.mxu0 %vm837_vm7, %v5200_v3  ;;  %v524_v47 = vpop.permute.xlu1 %523 }
 0x106   : > { %v522_v61 = vpop.permute.xlu0 %521  ;;  %v767_v28 = vsel %vm171_vm0, %v4928_v48, %v524_v47 }
 0x107   : > { %v766_v31 = vsel %vm171_vm0, %v4930_v52, %v522_v61 }
 0x109   : > { %v701_v32 = vpop.permute.xlu1 %700 }
 0x10a   : > { %v699_v36 = vpop.permute.xlu0 %698  ;;  %v5214_v17 = vsel %vm770_vm6, %v767_v28, %v701_v32 }
 0x10b   : > { %v5217_v19 = vsel %vm770_vm6, %v766_v31, %v699_v36 }
 0x10c   : > { %4261 = vmatprep.mubr.msk.f32.mxu0 %vm837_vm7, %v5217_v19 }
 0x10d   : > { %4262 = vmatmul.mubr.msk.f32.gmra.mxu0 %vm837_vm7, %v5214_v17  ;;  %v528_v0 = vpop.permute.xlu1 %527 }
 0x10e   : > { %v526_v1 = vpop.permute.xlu0 %525  ;;  %v769_v48 = vsel %vm171_vm0, %v4944_v6, %v528_v0 }
 0x10f   : > { %v768_v52 = vsel %vm171_vm0, %v4946_v9, %v526_v1 }
 0x111   : > { %v705_v2 = vpop.permute.xlu1 %704 }
 0x112   : > { %v703_v4 = vpop.permute.xlu0 %702  ;;  %v5228_v37 = vsel %vm770_vm6, %v769_v48, %v705_v2 }
 0x113   : > { %v5231_v41 = vsel %vm770_vm6, %v768_v52, %v703_v4 }
 0x114   : > { %4264 = vmatprep.mubr.msk.f32.mxu0 %vm837_vm7, %v5231_v41 }
 0x115   : > { %4265 = vmatmul.mubr.msk.f32.gmra.mxu0 %vm837_vm7, %v5228_v37  ;;  %v816_v13 = vpop.permute.xlu1 %815 }
 0x116   : > { %v814_v15 = vpop.permute.xlu0 %813  ;;  %v831_v56 = vsel %vm171_vm0, %v4960_v30, %v816_v13 }
 0x117   : > { %v830_v6 = vsel %vm171_vm0, %v4962_v34, %v814_v15 }
 0x119   : > { %v466_v9 = vpop.permute.xlu1 %465 }
 0x11a   : > { %v825_v26 = vpop.permute.xlu0 %824  ;;  %v738_v34 = vsel %vm171_vm0, %v4970_v45, %v466_v9 }
 0x11b   : > { %v5240_v16 = vsel %vm770_vm6, %v830_v6, %v825_v26 }
 0x11c   : > { %4267 = vmatprep.mubr.msk.f32.mxu0 %vm837_vm7, %v5240_v16 }
 0x11d   : > { %v468_v58 = vpop.permute.xlu1 %467 }
 0x11e   : > { %v827_v49 = vpop.permute.xlu0 %826  ;;  %v739_v27 = vsel %vm171_vm0, %v4972_v46, %v468_v58 }
 0x11f   : > { %v5247_v51 = vsel %vm770_vm6, %v831_v56, %v827_v49 }
 0x120   : > { %4268 = vmatmul.mubr.msk.f32.gmra.mxu0 %vm837_vm7, %v5247_v51 }
 0x121   : > { %4326 = vmatprep.mubr.msk.f32.mxu0 %vm837_vm7, %v5031_v60  ;;  %v645_v35 = vpop.permute.xlu1 %644 }
 0x122   : > { %v643_v8 = vpop.permute.xlu0 %642  ;;  %v772_v30 = vsel %vm770_vm6, %v739_v27, %v645_v35 }
 0x123   : > { %v771_v11 = vsel %vm770_vm6, %v738_v34, %v643_v8 }
 0x124   : > { %4274 = vmatprep.mubr.msk.f32.mxu1 %vm837_vm7, %v771_v11  ;;  %4327 = vmatmul.mubr.msk.f32.vlgmr.msra.gmra.mxu0 %vm837_vm7, %v5028_v59 }
 0x125   : > { %4275 = vmatmul.mubr.msk.f32.vlgmr.msra.gmra.mxu1 %vm837_vm7, %v772_v30  ;;  %4329 = vmatprep.mubr.msk.f32.mxu0 %vm837_vm7, %v5057_v24  ;;  %v1408_v46 = vpop.permute.xlu1 %1407 }
 0x126   : > { %4277 = vmatprep.mubr.msk.f32.mxu1 %vm837_vm7, %v4979_v57  ;;  %v1406_v45 = vpop.permute.xlu0 %1405 }
 0x127   : > { %v1422_v57 = vsel %vm171_vm0, %v5023_v50, %v1406_v45 }
 0x128   : > { %4330 = vmatmul.mubr.msk.f32.gmra.mxu0 %vm837_vm7, %v5054_v22 }
 0x129   : > { %4278 = vmatmul.mubr.msk.f32.gmra.mxu1 %vm837_vm7, %v5002_v14  ;;  %4332 = vmatprep.mubr.msk.f32.mxu0 %vm837_vm7, %v5077_v44 }
 0x12a   : > { %4280 = vmatprep.mubr.msk.f32.mxu1 %vm837_vm7, %v5031_v60  ;;  %v1417_v14 = vpop.permute.xlu0 %1416 }
 0x12b   : > { %v1424_v60 = vsel %vm770_vm6, %v1422_v57, %v1417_v14 }
 0x12c   : > { %4333 = vmatmul.mubr.msk.f32.gmra.mxu0 %vm837_vm7, %v5074_v29 }
 0x12d   : > { %4281 = vmatmul.mubr.msk.f32.gmra.mxu1 %vm837_vm7, %v5028_v59  ;;  %4335 = vmatprep.mubr.msk.f32.mxu0 %vm837_vm7, %v5091_v62  ;;  %v1423_v59 = vsel %vm171_vm0, %v5025_v54, %v1408_v46 }
 0x12e   : > { %4283 = vmatprep.mubr.msk.f32.mxu1 %vm837_vm7, %v5057_v24 }
 0x130   : > { %4336 = vmatmul.mubr.msk.f32.gmra.mxu0 %vm837_vm7, %v5088_v25 }
 0x131   : > { %4284 = vmatmul.mubr.msk.f32.gmra.mxu1 %vm837_vm7, %v5054_v22  ;;  %4338 = vmatprep.mubr.msk.f32.mxu0 %vm837_vm7, %v5105_v12  ;;  %v1419_v22 = vpop.permute.xlu1 %1418 }
 0x132   : > { %4286 = vmatprep.mubr.msk.f32.mxu1 %vm837_vm7, %v5077_v44  ;;  %v1425_v50 = vsel %vm770_vm6, %v1423_v59, %v1419_v22 }
 0x134   : > { %4339 = vmatmul.mubr.msk.f32.gmra.mxu0 %vm837_vm7, %v5102_v7 }
 0x135   : > { %4287 = vmatmul.mubr.msk.f32.gmra.mxu1 %vm837_vm7, %v5074_v29  ;;  %4341 = vmatprep.mubr.msk.f32.mxu0 %vm837_vm7, %v5119_v20 }
 0x136   : > { %4289 = vmatprep.mubr.msk.f32.mxu1 %vm837_vm7, %v5091_v62 }
 0x138   : > { %4342 = vmatmul.mubr.msk.f32.gmra.mxu0 %vm837_vm7, %v5116_v18 }
 0x139   : > { %4290 = vmatmul.mubr.msk.f32.gmra.mxu1 %vm837_vm7, %v5088_v25  ;;  %4344 = vmatprep.mubr.msk.f32.mxu0 %vm837_vm7, %v5133_v42 }
 0x13a   : > { %4292 = vmatprep.mubr.msk.f32.mxu1 %vm837_vm7, %v5105_v12 }
 0x13c   : > { %4345 = vmatmul.mubr.msk.f32.gmra.mxu0 %vm837_vm7, %v5130_v39 }
 0x13d   : > { %4293 = vmatmul.mubr.msk.f32.gmra.mxu1 %vm837_vm7, %v5102_v7  ;;  %4347 = vmatprep.mubr.msk.f32.mxu0 %vm837_vm7, %v5147_v10 }
 0x13e   : > { %4295 = vmatprep.mubr.msk.f32.mxu1 %vm837_vm7, %v5119_v20 }
 0x140   : > { %4348 = vmatmul.mubr.msk.f32.gmra.mxu0 %vm837_vm7, %v5144_v63 }
 0x141   : > { %4296 = vmatmul.mubr.msk.f32.gmra.mxu1 %vm837_vm7, %v5116_v18  ;;  %4350 = vmatprep.mubr.msk.f32.mxu0 %vm837_vm7, %v5161_v23 }
 0x142   : > { %4298 = vmatprep.mubr.msk.f32.mxu1 %vm837_vm7, %v5133_v42 }
 0x144   : > { %4351 = vmatmul.mubr.msk.f32.gmra.mxu0 %vm837_vm7, %v5158_v21 }
 0x145   : > { %4299 = vmatmul.mubr.msk.f32.gmra.mxu1 %vm837_vm7, %v5130_v39  ;;  %4353 = vmatprep.mubr.msk.f32.mxu0 %vm837_vm7, %v5175_v40 }
 0x146   : > { %4301 = vmatprep.mubr.msk.f32.mxu1 %vm837_vm7, %v5147_v10 }
 0x148   : > { %4354 = vmatmul.mubr.msk.f32.gmra.mxu0 %vm837_vm7, %v5172_v38 }
 0x149   : > { %4302 = vmatmul.mubr.msk.f32.gmra.mxu1 %vm837_vm7, %v5144_v63  ;;  %4356 = vmatprep.mubr.msk.f32.mxu0 %vm837_vm7, %v5189_v55 }
 0x14a   : > { %4304 = vmatprep.mubr.msk.f32.mxu1 %vm837_vm7, %v5161_v23 }
 0x14c   : > { %4357 = vmatmul.mubr.msk.f32.gmra.mxu0 %vm837_vm7, %v5186_v53 }
 0x14d   : > { %4305 = vmatmul.mubr.msk.f32.gmra.mxu1 %vm837_vm7, %v5158_v21  ;;  %4359 = vmatprep.mubr.msk.f32.mxu0 %vm837_vm7, %v5203_v5 }
 0x14e   : > { %4307 = vmatprep.mubr.msk.f32.mxu1 %vm837_vm7, %v5175_v40 }
 0x150   : > { %4360 = vmatmul.mubr.msk.f32.gmra.mxu0 %vm837_vm7, %v5200_v3 }
 0x151   : > { %4308 = vmatmul.mubr.msk.f32.gmra.mxu1 %vm837_vm7, %v5172_v38  ;;  %4362 = vmatprep.mubr.msk.f32.mxu0 %vm837_vm7, %v5217_v19 }
 0x152   : > { %4310 = vmatprep.mubr.msk.f32.mxu1 %vm837_vm7, %v5189_v55 }
 0x154   : > { %4363 = vmatmul.mubr.msk.f32.gmra.mxu0 %vm837_vm7, %v5214_v17 }
 0x155   : > { %4311 = vmatmul.mubr.msk.f32.gmra.mxu1 %vm837_vm7, %v5186_v53  ;;  %4365 = vmatprep.mubr.msk.f32.mxu0 %vm837_vm7, %v5231_v41 }
 0x156   : > { %4313 = vmatprep.mubr.msk.f32.mxu1 %vm837_vm7, %v5203_v5 }
 0x158   : > { %4366 = vmatmul.mubr.msk.f32.gmra.mxu0 %vm837_vm7, %v5228_v37 }
 0x159   : > { %4314 = vmatmul.mubr.msk.f32.gmra.mxu1 %vm837_vm7, %v5200_v3  ;;  %4368 = vmatprep.mubr.msk.f32.mxu0 %vm837_vm7, %v5240_v16 }
 0x15a   : > { %4316 = vmatprep.mubr.msk.f32.mxu1 %vm837_vm7, %v5217_v19 }
 0x15c   : > { %4369 = vmatmul.mubr.msk.f32.gmra.mxu0 %vm837_vm7, %v5247_v51 }
 0x15d   : > { %4317 = vmatmul.mubr.msk.f32.gmra.mxu1 %vm837_vm7, %v5214_v17  ;;  %4371 = vmatprep.mubr.msk.f32.mxu0 %vm837_vm7, %v1424_v60 }
 0x15e   : > { %4319 = vmatprep.mubr.msk.f32.mxu1 %vm837_vm7, %v5231_v41 }
 0x160   : > { %4372 = vmatmul.mubr.msk.f32.gmra.mxu0 %vm837_vm7, %v1425_v50 }
 0x161   : > { %4320 = vmatmul.mubr.msk.f32.gmra.mxu1 %vm837_vm7, %v5228_v37 }
 0x165   : > { %v4224_v54 = vpop.f32.mrf.mxu0 }
 0x167   : > { %v1004_v24 = vpop.f32.mrf.mxu0 }
 0x16d   : > { %v4227_v29 = vpop.f32.mrf.mxu0 }
 0x16f   : > { %v1014_v44 = vpop.f32.mrf.mxu0 }
 0x175   : > { %v4230_v25 = vpop.f32.mrf.mxu0 }
 0x177   : > { %v1024_v62 = vpop.f32.mrf.mxu0 }
 0x17d   : > { %v4233_v7 = vpop.f32.mrf.mxu0 }
 0x17f   : > { %v1034_v12 = vpop.f32.mrf.mxu0 }
 0x185   : > { %v5387_v18 = vpop.f32.mrf.mxu0 }
 0x187   : > { %v5389_v20 = vpop.f32.mrf.mxu0 }
 0x18d   : > { %v5391_v39 = vpop.f32.mrf.mxu0 }
 0x18f   : > { %v5393_v42 = vpop.f32.mrf.mxu0 }
 0x195   : > { %v5395_v63 = vpop.f32.mrf.mxu0 }
 0x197   : > { %v5397_v10 = vpop.f32.mrf.mxu0 }
 0x19d   : > { %v5399_v21 = vpop.f32.mrf.mxu0 }
 0x19f   : > { %v5401_v23 = vpop.f32.mrf.mxu0 }
 0x1a5   : > { %v5403_v38 = vpop.f32.mrf.mxu0 }
 0x1a7   : > { %v5405_v40 = vpop.f32.mrf.mxu0 }
 0x1ad   : > { %v5407_v53 = vpop.f32.mrf.mxu0 }
 0x1af   : > { %v5409_v55 = vpop.f32.mrf.mxu0 }
 0x1b5   : > { %v5411_v33 = vpop.f32.mrf.mxu0 }
 0x1b7   : > { %v5413_v43 = vpop.f32.mrf.mxu0 }
 0x1bd   : > { %v5415_v3 = vpop.f32.mrf.mxu0 }
 0x1bf   : > { %v5417_v5 = vpop.f32.mrf.mxu0 }
 0x1c5   : > { %v5419_v47 = vpop.f32.mrf.mxu0 }
 0x1c7   : > { %v5421_v61 = vpop.f32.mrf.mxu0 }
 0x1cd   : > { %v5423_v28 = vpop.f32.mrf.mxu0 }
 0x1cf   : > { %v5425_v31 = vpop.f32.mrf.mxu0 }
 0x1d5   : > { %v5427_v32 = vpop.f32.mrf.mxu0 }
 0x1d7   : > { %v5429_v36 = vpop.f32.mrf.mxu0 }
 0x1e0   : > { %v5431_v17 = vpop.f32.mrf.mxu0 }
 0x1e2   : > { %v5433_v19 = vpop.f32.mrf.mxu0 }
 0x1e4   : > { %v4328_v0 = vpop.f32.mrf.mxu0 }
 0x1e5   : > { %v4276_v1 = vpop.f32.mrf.mxu1 }
 0x1e6   : > { %v1244_v48 = vadd.f32 %v4276_v1, %v4224_v54  ;;  %v1504_v52 = vpop.f32.mrf.mxu0 }
 0x1e7   : > { %v1238_v2 = vpop.f32.mrf.mxu1 }
 0x1e8   : > { %v1239_v4 = vadd.f32 %v1238_v2, %v1004_v24  ;;  %v4331_v37 = vpop.f32.mrf.mxu0  ;;  %v5435_v13 = vadd.f32 %v4328_v0, %v1244_v48 }
 0x1e9   : > { %v4279_v41 = vpop.f32.mrf.mxu1 }
 0x1ea   : > { %v5437_v15 = vadd.f32 %v1504_v52, %v1239_v4  ;;  %v1254_v6 = vadd.f32 %v4279_v41, %v4227_v29  ;;  %v1514_v9 = vpop.f32.mrf.mxu0  ;;  %v1696_v51 = vsel %vm171_vm0, %v5435_v13, 0.0 }
 0x1eb   : > { %v1248_v26 = vpop.f32.mrf.mxu1 }
 0x1ec   : > { %v1695_v16 = vsel %vm171_vm0, %v5437_v15, 0.0  ;;  %v1249_v56 = vadd.f32 %v1248_v26, %v1014_v44  ;;  %v4334_v58 = vpop.f32.mrf.mxu0  ;;  %v5443_v34 = vadd.f32 %v4331_v37, %v1254_v6 }
 0x1ed   : > { %v4282_v49 = vpop.f32.mrf.mxu1  ;;  %v1697_v30 = vadd.f32 %v1696_v51, %v1695_v16 }
 0x1ee   : > { %v5445_v27 = vadd.f32 %v1514_v9, %v1249_v56  ;;  %v1264_v35 = vadd.f32 %v4282_v49, %v4230_v25  ;;  %v1524_v8 = vpop.f32.mrf.mxu0  ;;  %v1700_v60 = vsel %vm171_vm0, %v5443_v34, 0.0 }
 0x1ef   : > { %v1258_v11 = vpop.f32.mrf.mxu1 }
 0x1f0   : > { %v1698_v45 = vsel %vm171_vm0, %v5445_v27, 0.0  ;;  %v1259_v46 = vadd.f32 %v1258_v11, %v1024_v62  ;;  %v4337_v57 = vpop.f32.mrf.mxu0  ;;  %v5451_v22 = vadd.f32 %v4334_v58, %v1264_v35 }
 0x1f1   : > { %v1699_v14 = vadd.f32 %v1698_v45, %v1697_v30  ;;  %v4285_v59 = vpop.f32.mrf.mxu1 }
 0x1f2   : > { %v5453_v50 = vadd.f32 %v1524_v8, %v1259_v46  ;;  %v1274_v54 = vadd.f32 %v4285_v59, %v4233_v7  ;;  %v1534_v24 = vpop.f32.mrf.mxu0  ;;  %v1704_v52 = vsel %vm171_vm0, %v5451_v22, 0.0 }
 0x1f3   : > { %v1701_v29 = vadd.f32 %v1700_v60, %v1699_v14  ;;  %v1268_v44 = vpop.f32.mrf.mxu1 }
 0x1f4   : > { %v1702_v25 = vsel %vm171_vm0, %v5453_v50, 0.0  ;;  %v1269_v0 = vadd.f32 %v1268_v44, %v1034_v12  ;;  %v4340_v1 = vpop.f32.mrf.mxu0  ;;  %v5459_v2 = vadd.f32 %v4337_v57, %v1274_v54 }
 0x1f5   : > { %v1703_v62 = vadd.f32 %v1702_v25, %v1701_v29  ;;  %v4288_v48 = vpop.f32.mrf.mxu1 }
 0x1f6   : > { %v5461_v4 = vadd.f32 %v1534_v24, %v1269_v0  ;;  %v1284_v37 = vadd.f32 %v4288_v48, %v5387_v18  ;;  %v1544_v7 = vpop.f32.mrf.mxu0  ;;  %v1708_v58 = vsel %vm171_vm0, %v5459_v2, 0.0 }
 0x1f7   : > { %v1705_v41 = vadd.f32 %v1704_v52, %v1703_v62  ;;  %v1278_v6 = vpop.f32.mrf.mxu1 }
 0x1f8   : > { %v1706_v9 = vsel %vm171_vm0, %v5461_v4, 0.0  ;;  %v1279_v12 = vadd.f32 %v1278_v6, %v5389_v20  ;;  %v4343_v26 = vpop.f32.mrf.mxu0  ;;  %v5469_v49 = vadd.f32 %v4340_v1, %v1284_v37 }
 0x1f9   : > { %v1707_v16 = vadd.f32 %v1706_v9, %v1705_v41  ;;  %v4291_v56 = vpop.f32.mrf.mxu1 }
 0x1fa   : > { %v5471_v51 = vadd.f32 %v1544_v7, %v1279_v12  ;;  %v1294_v18 = vadd.f32 %v4291_v56, %v5391_v39  ;;  %v1554_v35 = vpop.f32.mrf.mxu0  ;;  %v1712_v14 = vsel %vm171_vm0, %v5469_v49, 0.0 }
 0x1fb   : > { %v1709_v8 = vadd.f32 %v1708_v58, %v1707_v16  ;;  %v1288_v30 = vpop.f32.mrf.mxu1 }
 0x1fc   : > { %v1710_v11 = vsel %vm171_vm0, %v5471_v51, 0.0  ;;  %v1289_v20 = vadd.f32 %v1288_v30, %v5393_v42  ;;  %v4346_v45 = vpop.f32.mrf.mxu0  ;;  %v5479_v59 = vadd.f32 %v4343_v26, %v1294_v18 }
 0x1fd   : > { %v1711_v46 = vadd.f32 %v1710_v11, %v1709_v8  ;;  %v4294_v57 = vpop.f32.mrf.mxu1 }
 0x1fe   : > { %v5481_v60 = vadd.f32 %v1554_v35, %v1289_v20  ;;  %v1304_v39 = vadd.f32 %v4294_v57, %v5395_v63  ;;  %v1564_v54 = vpop.f32.mrf.mxu0  ;;  %v1716_v62 = vsel %vm171_vm0, %v5479_v59, 0.0 }
 0x1ff   : > { %v1713_v24 = vadd.f32 %v1712_v14, %v1711_v46  ;;  %v1298_v29 = vpop.f32.mrf.mxu1 }
 0x200   : > { %v1714_v44 = vsel %vm171_vm0, %v5481_v60, 0.0  ;;  %v1299_v42 = vadd.f32 %v1298_v29, %v5397_v10  ;;  %v4349_v25 = vpop.f32.mrf.mxu0  ;;  %v5489_v48 = vadd.f32 %v4346_v45, %v1304_v39 }
 0x201   : > { %v1715_v0 = vadd.f32 %v1714_v44, %v1713_v24  ;;  %v4297_v1 = vpop.f32.mrf.mxu1 }
 0x202   : > { %v5491_v52 = vadd.f32 %v1564_v54, %v1299_v42  ;;  %v1314_v63 = vadd.f32 %v4297_v1, %v5399_v21  ;;  %v1574_v37 = vpop.f32.mrf.mxu0  ;;  %v1720_v16 = vsel %vm171_vm0, %v5489_v48, 0.0 }
 0x203   : > { %v1717_v7 = vadd.f32 %v1716_v62, %v1715_v0  ;;  %v1308_v41 = vpop.f32.mrf.mxu1 }
 0x204   : > { %v1718_v6 = vsel %vm171_vm0, %v5491_v52, 0.0  ;;  %v1309_v10 = vadd.f32 %v1308_v41, %v5401_v23  ;;  %v4352_v9 = vpop.f32.mrf.mxu0  ;;  %v5499_v56 = vadd.f32 %v4349_v25, %v1314_v63 }
 0x205   : > { %v1719_v12 = vadd.f32 %v1718_v6, %v1717_v7  ;;  %v4300_v26 = vpop.f32.mrf.mxu1 }
 0x206   : > { %v5501_v58 = vadd.f32 %v1574_v37, %v1309_v10  ;;  %v1324_v21 = vadd.f32 %v4300_v26, %v5403_v38  ;;  %v1584_v18 = vpop.f32.mrf.mxu0  ;;  %v1724_v46 = vsel %vm171_vm0, %v5499_v56, 0.0 }
 0x207   : > { %v1721_v35 = vadd.f32 %v1720_v16, %v1719_v12  ;;  %v1318_v8 = vpop.f32.mrf.mxu1 }
 0x208   : > { %v1722_v30 = vsel %vm171_vm0, %v5501_v58, 0.0  ;;  %v1319_v23 = vadd.f32 %v1318_v8, %v5405_v40  ;;  %v4355_v11 = vpop.f32.mrf.mxu0  ;;  %v5509_v57 = vadd.f32 %v4352_v9, %v1324_v21 }
 0x209   : > { %v1723_v20 = vadd.f32 %v1722_v30, %v1721_v35  ;;  %v4303_v45 = vpop.f32.mrf.mxu1 }
 0x20a   : > { %v5511_v14 = vadd.f32 %v1584_v18, %v1319_v23  ;;  %v1334_v38 = vadd.f32 %v4303_v45, %v5407_v53  ;;  %v1594_v39 = vpop.f32.mrf.mxu0  ;;  %v1728_v0 = vsel %vm171_vm0, %v5509_v57, 0.0 }
 0x20b   : > { %v1725_v54 = vadd.f32 %v1724_v46, %v1723_v20  ;;  %v1328_v24 = vpop.f32.mrf.mxu1 }
 0x20c   : > { %v1726_v29 = vsel %vm171_vm0, %v5511_v14, 0.0  ;;  %v1329_v40 = vadd.f32 %v1328_v24, %v5409_v55  ;;  %v4358_v44 = vpop.f32.mrf.mxu0  ;;  %v5519_v1 = vadd.f32 %v4355_v11, %v1334_v38 }
 0x20d   : > { %v1727_v42 = vadd.f32 %v1726_v29, %v1725_v54  ;;  %v4306_v25 = vpop.f32.mrf.mxu1 }
 0x20e   : > { %v5521_v62 = vadd.f32 %v1594_v39, %v1329_v40  ;;  %v1344_v53 = vadd.f32 %v4306_v25, %v5411_v33  ;;  %v1604_v63 = vpop.f32.mrf.mxu0  ;;  %v1732_v12 = vsel %vm171_vm0, %v5519_v1, 0.0 }
 0x20f   : > { %v1729_v37 = vadd.f32 %v1728_v0, %v1727_v42  ;;  %v1338_v7 = vpop.f32.mrf.mxu1 }
 0x210   : > { %v1730_v41 = vsel %vm171_vm0, %v5521_v62, 0.0  ;;  %v1339_v55 = vadd.f32 %v1338_v7, %v5413_v43  ;;  %v4361_v6 = vpop.f32.mrf.mxu0  ;;  %v5529_v26 = vadd.f32 %v4358_v44, %v1344_v53 }
 0x211   : > { %v1731_v10 = vadd.f32 %v1730_v41, %v1729_v37  ;;  %v4309_v9 = vpop.f32.mrf.mxu1 }
 0x212   : > { %v5531_v16 = vadd.f32 %v1604_v63, %v1339_v55  ;;  %v1354_v33 = vadd.f32 %v4309_v9, %v5415_v3  ;;  %v1614_v21 = vpop.f32.mrf.mxu0  ;;  %v1736_v20 = vsel %vm171_vm0, %v5529_v26, 0.0 }
 0x213   : > { %v1733_v18 = vadd.f32 %v1732_v12, %v1731_v10  ;;  %v1348_v35 = vpop.f32.mrf.mxu1 }
 0x214   : > { %v1734_v8 = vsel %vm171_vm0, %v5531_v16, 0.0  ;;  %v1349_v43 = vadd.f32 %v1348_v35, %v5417_v5  ;;  %v4364_v30 = vpop.f32.mrf.mxu0  ;;  %v5539_v45 = vadd.f32 %v4361_v6, %v1354_v33 }
 0x215   : > { %v1735_v23 = vadd.f32 %v1734_v8, %v1733_v18  ;;  %v4312_v11 = vpop.f32.mrf.mxu1 }
 0x216   : > { %v5541_v46 = vadd.f32 %v1614_v21, %v1349_v43  ;;  %v1364_v3 = vadd.f32 %v4312_v11, %v5419_v47  ;;  %v1624_v38 = vpop.f32.mrf.mxu0  ;;  %v1740_v42 = vsel %vm171_vm0, %v5539_v45, 0.0 }
 0x217   : > { %v1737_v39 = vadd.f32 %v1736_v20, %v1735_v23  ;;  %v1358_v54 = vpop.f32.mrf.mxu1 }
 0x218   : > { %v1738_v24 = vsel %vm171_vm0, %v5541_v46, 0.0  ;;  %v1359_v5 = vadd.f32 %v1358_v54, %v5421_v61  ;;  %v4367_v29 = vpop.f32.mrf.mxu0  ;;  %v5549_v25 = vadd.f32 %v4364_v30, %v1364_v3 }
 0x219   : > { %v1739_v40 = vadd.f32 %v1738_v24, %v1737_v39  ;;  %v4315_v44 = vpop.f32.mrf.mxu1 }
 0x21a   : > { %v5551_v0 = vadd.f32 %v1624_v38, %v1359_v5  ;;  %v1374_v47 = vadd.f32 %v4315_v44, %v5423_v28  ;;  %v1634_v53 = vpop.f32.mrf.mxu0  ;;  %v1744_v10 = vsel %vm171_vm0, %v5549_v25, 0.0 }
 0x21b   : > { %v1741_v63 = vadd.f32 %v1740_v42, %v1739_v40  ;;  %v1368_v37 = vpop.f32.mrf.mxu1 }
 0x21c   : > { %v1742_v7 = vsel %vm171_vm0, %v5551_v0, 0.0  ;;  %v1369_v61 = vadd.f32 %v1368_v37, %v5425_v31  ;;  %v4370_v41 = vpop.f32.mrf.mxu0  ;;  %v5559_v9 = vadd.f32 %v4367_v29, %v1374_v47 }
 0x21d   : > { %v1743_v55 = vadd.f32 %v1742_v7, %v1741_v63  ;;  %v4318_v6 = vpop.f32.mrf.mxu1  ;;  %v1998_v7 = vld [vmem:[#allocation2] sm:$0xff] }
 0x21e   : > { %v1689_v12 = vadd.f32 %v1634_v53, %v1369_v61  ;;  %v1384_v33 = vadd.f32 %v4318_v6, %v5427_v32  ;;  %v1644_v28 = vpop.f32.mrf.mxu0  ;;  %v1748_v23 = vsel %vm171_vm0, %v5559_v9, 0.0  ;;  %v1999_v61 = vld [vmem:[#allocation2 + $0x8] sm:$0xff] }
 0x21f   : > { %v1745_v21 = vadd.f32 %v1744_v10, %v1743_v55  ;;  %v1378_v18 = vpop.f32.mrf.mxu1  ;;  %v2100_v55 = vrot.slane %v1998_v7, 1 }
 0x220   : > { %v1746_v35 = vsel %vm171_vm0, %v1689_v12, 0.0  ;;  %v1379_v8 = vadd.f32 %v1378_v18, %v5429_v36  ;;  %v4373_v31 = vpop.f32.mrf.mxu0  ;;  %v1692_v11 = vadd.f32 %v4370_v41, %v1384_v33 }
 0x221   : > { %v1747_v43 = vadd.f32 %v1746_v35, %v1745_v21  ;;  %v4321_v30 = vpop.f32.mrf.mxu1  ;;  %v2000_v21 = vld [vmem:[#allocation2 + $0x10] sm:$0x3] }
 0x222   : > { %v1691_v20 = vadd.f32 %v1644_v28, %v1379_v8  ;;  %v1394_v3 = vadd.f32 %v4321_v30, %v5431_v17  ;;  %v1654_v5 = vpop.f32.mrf.mxu0  ;;  %v1752_v36 = vsel %vm171_vm0, %v1692_v11, 0.0  ;;  %v2103_v18 = vrot.slane %v2000_v21, 1 }
 0x223   : > { %v1749_v38 = vadd.f32 %v1748_v23, %v1747_v43  ;;  %v1388_v39 = vpop.f32.mrf.mxu1 }
 0x224   : > { %v1750_v32 = vsel %vm171_vm0, %v1691_v20, 0.0  ;;  %v1389_v54 = vadd.f32 %v1388_v39, %v5433_v19  ;;  %v1694_v29 = vadd.f32 %v4373_v31, %v1394_v3  ;;  %v2101_v19 = vrot.slane %v1999_v61, 1 }
 0x225   : > { %v1751_v24 = vadd.f32 %v1750_v32, %v1749_v38 }
 0x226   : > { %v1693_v40 = vadd.f32 %v1654_v5, %v1389_v54  ;;  %v1756_v53 = vsel %vm171_vm0, %v1694_v29, 0.0  ;;  %v2102_v10 = vsel %vm384_vm4, %v2100_v55, %v2101_v19  ;;  %v2104_v8 = vsel %vm384_vm4, %v2101_v19, %v2103_v18 }
 0x227   : > { %v1753_v44 = vadd.f32 %v1752_v36, %v1751_v24  ;;  %2180 = vrot.lane.b32.xlu1 %v2102_v10, %s4558_s20 }
 0x228   : > { %v1754_v42 = vsel %vm171_vm0, %v1693_v40, 0.0 }
 0x229   : > { %v1755_v47 = vadd.f32 %v1754_v42, %v1753_v44 }
 0x22b   : > { %v1757_v63 = vadd.f32 %v1756_v53, %v1755_v47  ;;  %2182 = vrot.lane.b32.xlu1 %v2104_v8, %s4558_s20 }
 0x22d   : > { %v1758_v17 = vrot.slane %v1757_v63, 4 }
 0x22f   : > { %v1759_v37 = vadd.f32 %v1758_v17, %v1757_v63 }
 0x231   : > { %v1760_v41 = vrot.slane %v1759_v37, 2 }
 0x233   : > { %v1761_v6 = vadd.f32 %v1760_v41, %v1759_v37 }
 0x235   : > { %v1762_v33 = vrot.slane %v1761_v6, 1 }
 0x237   : > { %v1763_v28 = vadd.f32 %v1762_v33, %v1761_v6 }
 0x239   : > { %v1765_v35 = vmul.f32 0.00390625, %v1763_v28 }
 0x23b   : > { %v5577_v43 = vsub.f32 %v5481_v60, %v1765_v35  ;;  %v5580_v31 = vsub.f32 %v5479_v59, %v1765_v35  ;;  %v5583_v30 = vsub.f32 %v5491_v52, %v1765_v35  ;;  %v5586_v23 = vsub.f32 %v5489_v48, %v1765_v35 }
 0x23c   : > { %v5589_v3 = vsub.f32 %v5501_v58, %v1765_v35  ;;  %v5592_v38 = vsub.f32 %v5499_v56, %v1765_v35  ;;  %v5595_v39 = vsub.f32 %v5511_v14, %v1765_v35  ;;  %v5598_v60 = vsub.f32 %v5509_v57, %v1765_v35 }
 0x23d   : > { %v5601_v59 = vsub.f32 %v5521_v62, %v1765_v35  ;;  %v5604_v52 = vsub.f32 %v5519_v1, %v1765_v35  ;;  %v5607_v48 = vsub.f32 %v5531_v16, %v1765_v35  ;;  %v5610_v58 = vsub.f32 %v5529_v26, %v1765_v35 }
 0x23e   : > { %v5613_v56 = vsub.f32 %v5541_v46, %v1765_v35  ;;  %v5616_v14 = vsub.f32 %v5539_v45, %v1765_v35  ;;  %v5619_v57 = vsub.f32 %v5551_v0, %v1765_v35  ;;  %v5622_v62 = vsub.f32 %v5549_v25, %v1765_v35 }
 0x23f   : > { %v5624_v1 = vsub.f32 %v1689_v12, %v1765_v35  ;;  %v5627_v16 = vsub.f32 %v5559_v9, %v1765_v35  ;;  %v5629_v32 = vsub.f32 %v1691_v20, %v1765_v35  ;;  %v5631_v26 = vsub.f32 %v1692_v11, %v1765_v35 }
 0x240   : > { %v5633_v46 = vsub.f32 %v1693_v40, %v1765_v35  ;;  %v5635_v54 = vsub.f32 %v1694_v29, %v1765_v35  ;;  %v5638_v45 = vsub.f32 %v5437_v15, %v1765_v35  ;;  %v5641_v0 = vsub.f32 %v5435_v13, %v1765_v35 }
 0x241   : > { %v5644_v25 = vsub.f32 %v5445_v27, %v1765_v35  ;;  %v5647_v9 = vsub.f32 %v5443_v34, %v1765_v35  ;;  %v5654_v20 = vsub.f32 %v5453_v50, %v1765_v35  ;;  %v5659_v13 = vsub.f32 %v5451_v22, %v1765_v35 }
 0x242   : > { %v1798_v12 = vmul.f32 %v5638_v45, %v5638_v45  ;;  %v1799_v11 = vmul.f32 %v5641_v0, %v5641_v0  ;;  %v5666_v36 = vsub.f32 %v5461_v4, %v1765_v35  ;;  %v5672_v22 = vsub.f32 %v5459_v2, %v1765_v35 }
 0x243   : > { %v1800_v15 = vmul.f32 %v5644_v25, %v5644_v25  ;;  %v1801_v27 = vmul.f32 %v5647_v9, %v5647_v9  ;;  %v1802_v50 = vmul.f32 %v5654_v20, %v5654_v20  ;;  %v1803_v44 = vmul.f32 %v5659_v13, %v5659_v13 }
 0x244   : > { %v1830_v34 = vsel %vm171_vm0, %v1798_v12, 0.0  ;;  %v1831_v24 = vsel %vm171_vm0, %v1799_v11, 0.0  ;;  %v5678_v53 = vsub.f32 %v5471_v51, %v1765_v35  ;;  %v1804_v4 = vmul.f32 %v5666_v36, %v5666_v36 }
 0x245   : > { %v1832_v5 = vadd.f32 %v1831_v24, %v1830_v34  ;;  %v1833_v29 = vsel %vm171_vm0, %v1800_v15, 0.0  ;;  %v1835_v42 = vsel %vm171_vm0, %v1801_v27, 0.0  ;;  %v1837_v63 = vsel %vm171_vm0, %v1802_v50, 0.0 }
 0x246   : > { %v5684_v37 = vsub.f32 %v5469_v49, %v1765_v35  ;;  %v1805_v2 = vmul.f32 %v5672_v22, %v5672_v22  ;;  %v1839_v7 = vsel %vm171_vm0, %v1803_v44, 0.0  ;;  %v1806_v41 = vmul.f32 %v5678_v53, %v5678_v53 }
 0x247   : > { %v1834_v40 = vadd.f32 %v1833_v29, %v1832_v5  ;;  %v1841_v51 = vsel %vm171_vm0, %v1804_v4, 0.0  ;;  %v1808_v49 = vmul.f32 %v5577_v43, %v5577_v43  ;;  %v1809_v21 = vmul.f32 %v5580_v31, %v5580_v31 }
 0x248   : > { %v1807_v19 = vmul.f32 %v5684_v37, %v5684_v37  ;;  %v1843_v6 = vsel %vm171_vm0, %v1805_v2, 0.0  ;;  %v1845_v33 = vsel %vm171_vm0, %v1806_v41, 0.0  ;;  %v1810_v8 = vmul.f32 %v5583_v30, %v5583_v30 }
 0x249   : > { %v1836_v47 = vadd.f32 %v1835_v42, %v1834_v40  ;;  %v1849_v12 = vsel %vm171_vm0, %v1808_v49, 0.0  ;;  %v1811_v15 = vmul.f32 %v5586_v23, %v5586_v23  ;;  %v1851_v27 = vsel %vm171_vm0, %v1809_v21, 0.0 }
 0x24a   : > { %v1847_v18 = vsel %vm171_vm0, %v1807_v19, 0.0  ;;  %v1812_v24 = vmul.f32 %v5589_v3, %v5589_v3  ;;  %v1853_v5 = vsel %vm171_vm0, %v1810_v8, 0.0  ;;  %v1813_v29 = vmul.f32 %v5592_v38, %v5592_v38 }
 0x24b   : > { %v1838_v17 = vadd.f32 %v1837_v63, %v1836_v47  ;;  %v1855_v40 = vsel %vm171_vm0, %v1811_v15, 0.0  ;;  %v1814_v42 = vmul.f32 %v5595_v39, %v5595_v39  ;;  %v1815_v63 = vmul.f32 %v5598_v60, %v5598_v60 }
 0x24c   : > { %v1857_v47 = vsel %vm171_vm0, %v1812_v24, 0.0 }
 0x24d   : > { %v1840_v61 = vadd.f32 %v1839_v7, %v1838_v17  ;;  %v1859_v17 = vsel %vm171_vm0, %v1813_v29, 0.0  ;;  %v1816_v7 = vmul.f32 %v5601_v59, %v5601_v59 }
 0x24f   : > { %v1842_v55 = vadd.f32 %v1841_v51, %v1840_v61  ;;  %v1861_v61 = vsel %vm171_vm0, %v1814_v42, 0.0  ;;  %v1817_v51 = vmul.f32 %v5604_v52, %v5604_v52 }
 0x251   : > { %v1844_v10 = vadd.f32 %v1843_v6, %v1842_v55  ;;  %v1863_v55 = vsel %vm171_vm0, %v1815_v63, 0.0  ;;  %v1818_v6 = vmul.f32 %v5607_v48, %v5607_v48 }
 0x253   : > { %v1846_v28 = vadd.f32 %v1845_v33, %v1844_v10  ;;  %v1865_v10 = vsel %vm171_vm0, %v1816_v7, 0.0  ;;  %v1819_v33 = vmul.f32 %v5610_v58, %v5610_v58 }
 0x255   : > { %v1848_v35 = vadd.f32 %v1847_v18, %v1846_v28  ;;  %v1867_v28 = vsel %vm171_vm0, %v1817_v51, 0.0  ;;  %v1820_v18 = vmul.f32 %v5613_v56, %v5613_v56 }
 0x257   : > { %v1850_v11 = vadd.f32 %v1849_v12, %v1848_v35  ;;  %v1869_v35 = vsel %vm171_vm0, %v1818_v6, 0.0  ;;  %v1821_v12 = vmul.f32 %v5616_v14, %v5616_v14 }
 0x259   : > { %v1852_v34 = vadd.f32 %v1851_v27, %v1850_v11  ;;  %v1871_v11 = vsel %vm171_vm0, %v1819_v33, 0.0  ;;  %v1822_v27 = vmul.f32 %v5619_v57, %v5619_v57 }
 0x25b   : > { %v1854_v50 = vadd.f32 %v1853_v5, %v1852_v34  ;;  %v1873_v34 = vsel %vm171_vm0, %v1820_v18, 0.0  ;;  %v1823_v5 = vmul.f32 %v5622_v62, %v5622_v62 }
 0x25d   : > { %v1856_v44 = vadd.f32 %v1855_v40, %v1854_v50  ;;  %v1875_v50 = vsel %vm171_vm0, %v1821_v12, 0.0  ;;  %v1824_v40 = vmul.f32 %v5624_v1, %v5624_v1 }
 0x25f   : > { %v1858_v4 = vadd.f32 %v1857_v47, %v1856_v44  ;;  %v1877_v44 = vsel %vm171_vm0, %v1822_v27, 0.0  ;;  %v1825_v47 = vmul.f32 %v5627_v16, %v5627_v16 }
 0x261   : > { %v1860_v2 = vadd.f32 %v1859_v17, %v1858_v4  ;;  %v1879_v4 = vsel %vm171_vm0, %v1823_v5, 0.0  ;;  %v1826_v17 = vmul.f32 %v5629_v32, %v5629_v32 }
 0x263   : > { %v1862_v41 = vadd.f32 %v1861_v61, %v1860_v2  ;;  %v1881_v2 = vsel %vm171_vm0, %v1824_v40, 0.0  ;;  %v1827_v61 = vmul.f32 %v5631_v26, %v5631_v26 }
 0x265   : > { %v1864_v19 = vadd.f32 %v1863_v55, %v1862_v41  ;;  %v1883_v41 = vsel %vm171_vm0, %v1825_v47, 0.0  ;;  %v1828_v55 = vmul.f32 %v5633_v46, %v5633_v46 }
 0x267   : > { %v1866_v49 = vadd.f32 %v1865_v10, %v1864_v19  ;;  %v1885_v19 = vsel %vm171_vm0, %v1826_v17, 0.0  ;;  %v1829_v10 = vmul.f32 %v5635_v54, %v5635_v54 }
 0x269   : > { %v1868_v21 = vadd.f32 %v1867_v28, %v1866_v49  ;;  %v1887_v49 = vsel %vm171_vm0, %v1827_v61, 0.0  ;;  %v1889_v28 = vsel %vm171_vm0, %v1828_v55, 0.0  ;;  %v1891_v18 = vsel %vm171_vm0, %v1829_v10, 0.0 }
 0x26b   : > { %v1870_v8 = vadd.f32 %v1869_v35, %v1868_v21 }
 0x26d   : > { %v1872_v15 = vadd.f32 %v1871_v11, %v1870_v8 }
 0x26f   : > { %v1874_v24 = vadd.f32 %v1873_v34, %v1872_v15 }
 0x271   : > { %v1876_v29 = vadd.f32 %v1875_v50, %v1874_v24 }
 0x273   : > { %v1878_v42 = vadd.f32 %v1877_v44, %v1876_v29 }
 0x275   : > { %v1880_v63 = vadd.f32 %v1879_v4, %v1878_v42 }
 0x277   : > { %v1882_v7 = vadd.f32 %v1881_v2, %v1880_v63 }
 0x279   : > { %v1884_v51 = vadd.f32 %v1883_v41, %v1882_v7 }
 0x27b   : > { %v1886_v6 = vadd.f32 %v1885_v19, %v1884_v51 }
 0x27d   : > { %v1888_v33 = vadd.f32 %v1887_v49, %v1886_v6 }
 0x27f   : > { %v1890_v21 = vadd.f32 %v1889_v28, %v1888_v33 }
 0x281   : > { %v1892_v35 = vadd.f32 %v1891_v18, %v1890_v21  ;;  %v3907_v18 = vld [vmem:[%s7115_s2 + $0x10] sm:$0xff] }
 0x283   : > { %v1893_v8 = vrot.slane %v1892_v35, 4 }
 0x285   : > { %v1894_v12 = vadd.f32 %v1893_v8, %v1892_v35 }
 0x287   : > { %v1895_v11 = vrot.slane %v1894_v12, 2 }
 0x289   : > { %v1896_v15 = vadd.f32 %v1895_v11, %v1894_v12 }
 0x28b   : > { %v1897_v27 = vrot.slane %v1896_v15, 1 }
 0x28d   : > { %v1898_v34 = vadd.f32 %v1897_v27, %v1896_v15 }
 0x28f   : > { %v1899_v24 = vmul.f32 0.00390625, %v1898_v34 }
 0x291   : > { %v1900_v5 = vadd.f32 1e-05, %v1899_v24 }
 0x293   : > { %4541 = vrsqrt.f32 %v1900_v5 }
 0x2a0   : > { %v4542_v50 = vpop.eup %4541 }
 0x2a1   : > { %v1932_v29 = vmul.f32 %v4542_v50, %v5633_v46  ;;  %v1902_v40 = vmul.f32 %v4542_v50, %v5638_v45  ;;  %v1903_v44 = vmul.f32 %v4542_v50, %v5641_v0  ;;  %v1904_v42 = vmul.f32 %v4542_v50, %v5644_v25 }
 0x2a2   : > { %v1905_v47 = vmul.f32 %v4542_v50, %v5647_v9  ;;  %v1906_v4 = vmul.f32 %v4542_v50, %v5654_v20  ;;  %v1907_v63 = vmul.f32 %v4542_v50, %v5659_v13  ;;  %v1908_v17 = vmul.f32 %v4542_v50, %v5666_v36 }
 0x2a3   : > { %v1964_v2 = vmax.f32 %v1932_v29, 0.0  ;;  %v1909_v7 = vmul.f32 %v4542_v50, %v5672_v22  ;;  %v1910_v61 = vmul.f32 %v4542_v50, %v5678_v53  ;;  %v1911_v46 = vmul.f32 %v4542_v50, %v5684_v37 }
 0x2a4   : > { %v1912_v45 = vmul.f32 %v4542_v50, %v5577_v43  ;;  %v1913_v0 = vmul.f32 %v4542_v50, %v5580_v31  ;;  %v1914_v25 = vmul.f32 %v4542_v50, %v5583_v30  ;;  %v1915_v9 = vmul.f32 %v4542_v50, %v5586_v23 }
 0x2a5   : > { %1996 = vst.msk [vmem:[#allocation2 + $0x181] sm:$0xff] %vm171_vm0, %v1964_v2  ;;  %v1916_v20 = vmul.f32 %v4542_v50, %v5589_v3  ;;  %v5781_v13 = vmul.f32 %v4542_v50, %v5592_v38  ;;  %v5784_v36 = vmul.f32 %v4542_v50, %v5595_v39  ;;  %v5787_v22 = vmul.f32 %v4542_v50, %v5598_v60 }
 0x2a6   : > { %v5790_v43 = vmul.f32 %v4542_v50, %v5601_v59  ;;  %v5793_v31 = vmul.f32 %v4542_v50, %v5604_v52  ;;  %v5796_v30 = vmul.f32 %v4542_v50, %v5607_v48  ;;  %v5799_v23 = vmul.f32 %v4542_v50, %v5610_v58 }
 0x2a7   : > { %v5802_v3 = vmul.f32 %v4542_v50, %v5613_v56  ;;  %v5805_v38 = vmul.f32 %v4542_v50, %v5616_v14  ;;  %v5808_v39 = vmul.f32 %v4542_v50, %v5619_v57  ;;  %v5811_v60 = vmul.f32 %v4542_v50, %v5622_v62 }
 0x2a8   : > { %v5814_v59 = vmul.f32 %v4542_v50, %v5624_v1  ;;  %v5817_v52 = vmul.f32 %v4542_v50, %v5627_v16  ;;  %v5820_v48 = vmul.f32 %v4542_v50, %v5629_v32  ;;  %v5823_v58 = vmul.f32 %v4542_v50, %v5631_v26  ;;  %v3908_v16 = vld [vmem:[%s7115_s2 + $0x18] sm:$0xf] }
 0x2a9   : > { %v5826_v56 = vmul.f32 %v4542_v50, %v5635_v54  ;;  %v1934_v14 = vmax.f32 %v1902_v40, 0.0  ;;  %v1935_v57 = vmax.f32 %v1903_v44, 0.0  ;;  %v1936_v53 = vmax.f32 %v1904_v42, 0.0  ;;  %4374 = vmatprep.subr.msk.mxu1 %vm934_vm5, %v3908_v16 }
 0x2aa   : > { %v1937_v62 = vmax.f32 %v1905_v47, 0.0  ;;  %v1938_v37 = vmax.f32 %v1906_v4, 0.0  ;;  %v1939_v41 = vmax.f32 %v1907_v63, 0.0  ;;  %v1940_v1 = vmax.f32 %v1908_v17, 0.0  ;;  %4375 = vmatpush3.msk.msra.mxu1 %vm934_vm5, %v3908_v16 }
 0x2ab   : > { %v1941_v51 = vmax.f32 %v1909_v7, 0.0  ;;  %v1942_v32 = vmax.f32 %v1910_v61, 0.0  ;;  %v1943_v55 = vmax.f32 %v1911_v46, 0.0  ;;  %v1944_v19 = vmax.f32 %v1912_v45, 0.0  ;;  %1966 = vst.msk [vmem:[#allocation2 + $0x19] sm:$0xff] %vm171_vm0, %v1934_v14  ;;  %1967 = vst.msk [vmem:[#allocation2 + $0x21] sm:$0xff] %vm171_vm0, %v1935_v57  ;;  %4376 = vmatprep.subr.mxu1 %v3907_v18 }
 0x2ac   : > { %1968 = vst.msk [vmem:[#allocation2 + $0x31] sm:$0xff] %vm171_vm0, %v1936_v53  ;;  %v1945_v26 = vmax.f32 %v1913_v0, 0.0  ;;  %v1946_v54 = vmax.f32 %v1914_v25, 0.0  ;;  %v1947_v6 = vmax.f32 %v1915_v9, 0.0  ;;  %v1948_v10 = vmax.f32 %v1916_v20, 0.0  ;;  %1969 = vst.msk [vmem:[#allocation2 + $0x39] sm:$0xff] %vm171_vm0, %v1937_v62  ;;  %4377 = vmatpush3.msra.mxu1 %v3907_v18 }
 0x2ad   : > { %1970 = vst.msk [vmem:[#allocation2 + $0x49] sm:$0xff] %vm171_vm0, %v1938_v37  ;;  %1971 = vst.msk [vmem:[#allocation2 + $0x51] sm:$0xff] %vm171_vm0, %v1939_v41  ;;  %v1949_v49 = vmax.f32 %v5781_v13, 0.0  ;;  %v1950_v33 = vmax.f32 %v5784_v36, 0.0  ;;  %v1951_v28 = vmax.f32 %v5787_v22, 0.0  ;;  %v1952_v21 = vmax.f32 %v5790_v43, 0.0 }
 0x2ae   : > { %1972 = vst.msk [vmem:[#allocation2 + $0x61] sm:$0xff] %vm171_vm0, %v1940_v1  ;;  %1973 = vst.msk [vmem:[#allocation2 + $0x69] sm:$0xff] %vm171_vm0, %v1941_v51  ;;  %v1953_v35 = vmax.f32 %v5793_v31, 0.0  ;;  %v1954_v8 = vmax.f32 %v5796_v30, 0.0  ;;  %v1955_v12 = vmax.f32 %v5799_v23, 0.0  ;;  %v1956_v11 = vmax.f32 %v5802_v3, 0.0 }
 0x2af   : > { %1974 = vst.msk [vmem:[#allocation2 + $0x79] sm:$0xff] %vm171_vm0, %v1942_v32  ;;  %1975 = vst.msk [vmem:[#allocation2 + $0x81] sm:$0xff] %vm171_vm0, %v1943_v55  ;;  %v1957_v15 = vmax.f32 %v5805_v38, 0.0  ;;  %v1958_v27 = vmax.f32 %v5808_v39, 0.0  ;;  %v1959_v34 = vmax.f32 %v5811_v60, 0.0  ;;  %v1960_v24 = vmax.f32 %v5814_v59, 0.0 }
 0x2b0   : > { %1976 = vst.msk [vmem:[#allocation2 + $0x91] sm:$0xff] %vm171_vm0, %v1944_v19  ;;  %1977 = vst.msk [vmem:[#allocation2 + $0x99] sm:$0xff] %vm171_vm0, %v1945_v26  ;;  %v1961_v5 = vmax.f32 %v5817_v52, 0.0  ;;  %v1962_v50 = vmax.f32 %v5820_v48, 0.0  ;;  %v1963_v29 = vmax.f32 %v5823_v58, 0.0  ;;  %v1965_v40 = vmax.f32 %v5826_v56, 0.0 }
 0x2b1   : > { %1978 = vst.msk [vmem:[#allocation2 + $0xa9] sm:$0xff] %vm171_vm0, %v1946_v54  ;;  %1979 = vst.msk [vmem:[#allocation2 + $0xb1] sm:$0xff] %vm171_vm0, %v1947_v6 }
 0x2b2   : > { %1980 = vst.msk [vmem:[#allocation2 + $0xc1] sm:$0xff] %vm171_vm0, %v1948_v10  ;;  %1981 = vst.msk [vmem:[#allocation2 + $0xc9] sm:$0xff] %vm171_vm0, %v1949_v49  ;;  %v5883_v44 = vld [vmem:[#allocation2 + $0x20] sm:$0xff]  ;;  %v2003_v42 = vld [vmem:[#allocation2 + $0x28] sm:$0x3] }
 0x2b3   : > { %1982 = vst.msk [vmem:[#allocation2 + $0xd9] sm:$0xff] %vm171_vm0, %v1950_v33  ;;  %1983 = vst.msk [vmem:[#allocation2 + $0xe1] sm:$0xff] %vm171_vm0, %v1951_v28  ;;  %v5885_v47 = vld [vmem:[#allocation2 + $0x18] sm:$0xff]  ;;  %v2106_v4 = vrot.slane %v5883_v44, 1  ;;  %v2108_v63 = vrot.slane %v2003_v42, 1  ;;  %v2282_v2 = vrot.slane %v5883_v44, 2 }
 0x2b4   : > { %1984 = vst.msk [vmem:[#allocation2 + $0xf1] sm:$0xff] %vm171_vm0, %v1952_v21  ;;  %1985 = vst.msk [vmem:[#allocation2 + $0xf9] sm:$0xff] %vm171_vm0, %v1953_v35  ;;  %v2105_v17 = vrot.slane %v5885_v47, 1  ;;  %v2284_v46 = vrot.slane %v2003_v42, 2  ;;  %v2281_v45 = vrot.slane %v5885_v47, 2  ;;  %v5893_v0 = vld [vmem:[#allocation2 + $0x38] sm:$0xff] }
 0x2b5   : > { %1986 = vst.msk [vmem:[#allocation2 + $0x109] sm:$0xff] %vm171_vm0, %v1954_v8  ;;  %1987 = vst.msk [vmem:[#allocation2 + $0x111] sm:$0xff] %vm171_vm0, %v1955_v12  ;;  %v2109_v7 = vsel %vm384_vm4, %v2106_v4, %v2108_v63  ;;  %v2006_v25 = vld [vmem:[#allocation2 + $0x40] sm:$0x3]  ;;  %v5897_v9 = vld [vmem:[#allocation2 + $0x30] sm:$0xff]  ;;  %v2111_v20 = vrot.slane %v5893_v0, 1 }
 0x2b6   : > { %1988 = vst.msk [vmem:[#allocation2 + $0x121] sm:$0xff] %vm171_vm0, %v1956_v11  ;;  %1989 = vst.msk [vmem:[#allocation2 + $0x129] sm:$0xff] %vm171_vm0, %v1957_v15  ;;  %v2107_v61 = vsel %vm384_vm4, %v2105_v17, %v2106_v4  ;;  %2186 = vrot.lane.b32.xlu1 %v2109_v7, %s4558_s20  ;;  %v2285_v13 = vsel %vm561_vm3, %v2282_v2, %v2284_v46  ;;  %v2283_v36 = vsel %vm561_vm3, %v2281_v45, %v2282_v2  ;;  %v5909_v39 = vld [vmem:[#allocation2 + $0x50] sm:$0xff]  ;;  %v2009_v60 = vld [vmem:[#allocation2 + $0x58] sm:$0x3] }
 0x2b7   : > { %1990 = vst.msk [vmem:[#allocation2 + $0x139] sm:$0xff] %vm171_vm0, %v1958_v27  ;;  %1991 = vst.msk [vmem:[#allocation2 + $0x141] sm:$0xff] %vm171_vm0, %v1959_v34  ;;  %2184 = vrot.lane.b32.xlu0 %v2107_v61, %s4558_s20  ;;  %v2113_v22 = vrot.slane %v2006_v25, 1  ;;  %v2110_v43 = vrot.slane %v5897_v9, 1  ;;  %v2287_v31 = vrot.slane %v5893_v0, 2  ;;  %v2289_v3 = vrot.slane %v2006_v25, 2 }
 0x2b8   : > { %1992 = vst.msk [vmem:[#allocation2 + $0x151] sm:$0xff] %vm171_vm0, %v1960_v24  ;;  %1993 = vst.msk [vmem:[#allocation2 + $0x159] sm:$0xff] %vm171_vm0, %v1961_v5  ;;  %v2286_v38 = vrot.slane %v5897_v9, 2  ;;  %v5913_v59 = vld [vmem:[#allocation2 + $0x48] sm:$0xff]  ;;  %v2116_v52 = vrot.slane %v5909_v39, 1  ;;  %v2118_v56 = vrot.slane %v2009_v60, 1 }
 0x2b9   : > { %1994 = vst.msk [vmem:[#allocation2 + $0x169] sm:$0xff] %vm171_vm0, %v1962_v50  ;;  %1995 = vst.msk [vmem:[#allocation2 + $0x171] sm:$0xff] %vm171_vm0, %v1963_v29  ;;  %v2114_v30 = vsel %vm384_vm4, %v2111_v20, %v2113_v22  ;;  %v2112_v23 = vsel %vm384_vm4, %v2110_v43, %v2111_v20  ;;  %v2290_v48 = vsel %vm561_vm3, %v2287_v31, %v2289_v3  ;;  %v2115_v14 = vrot.slane %v5913_v59, 1  ;;  %v5925_v1 = vld [vmem:[#allocation2 + $0x68] sm:$0xff]  ;;  %v2012_v16 = vld [vmem:[#allocation2 + $0x70] sm:$0x3] }
 0x2ba   : > { %1997 = vst.msk [vmem:[#allocation2 + $0x189] sm:$0xff] %vm171_vm0, %v1965_v40  ;;  %2362 = vrot.lane.b32.xlu1 %v2285_v13, %s4557_s19  ;;  %v2288_v58 = vsel %vm561_vm3, %v2286_v38, %v2287_v31  ;;  %v2292_v57 = vrot.slane %v5909_v39, 2  ;;  %v2119_v53 = vsel %vm384_vm4, %v2116_v52, %v2118_v56  ;;  %v2294_v37 = vrot.slane %v2009_v60, 2  ;;  %v5929_v51 = vld [vmem:[#allocation2 + $0x60] sm:$0xff]  ;;  %v2015_v18 = vld [vmem:[#allocation2 + $0x88] sm:$0x3] }
 0x2bb   : > { %2360 = vrot.lane.b32.xlu0 %v2283_v36, %s4557_s19  ;;  %v2117_v62 = vsel %vm384_vm4, %v2115_v14, %v2116_v52  ;;  %v2291_v41 = vrot.slane %v5913_v59, 2  ;;  %v2121_v32 = vrot.slane %v5925_v1, 1  ;;  %v2123_v26 = vrot.slane %v2012_v16, 1  ;;  %v5941_v21 = vld [vmem:[#allocation2 + $0x80] sm:$0xff]  ;;  %v5945_v35 = vld [vmem:[#allocation2 + $0x78] sm:$0xff]  ;;  %v5961_v4 = vld [vmem:[#allocation2 + $0x90] sm:$0xff] }
 0x2bc   : > { %v2295_v55 = vsel %vm561_vm3, %v2292_v57, %v2294_v37  ;;  %v2120_v54 = vrot.slane %v5929_v51, 1  ;;  %v2297_v6 = vrot.slane %v5925_v1, 2  ;;  %v2299_v33 = vrot.slane %v2012_v16, 2  ;;  %v5957_v40 = vld [vmem:[#allocation2 + $0x98] sm:$0xff]  ;;  %v2018_v42 = vld [vmem:[#allocation2 + $0xa0] sm:$0x3] }
 0x2bd   : > { %v2293_v19 = vsel %vm561_vm3, %v2291_v41, %v2292_v57  ;;  %v2124_v10 = vsel %vm384_vm4, %v2121_v32, %v2123_v26  ;;  %v2296_v28 = vrot.slane %v5929_v51, 2  ;;  %v2126_v8 = vrot.slane %v5941_v21, 1  ;;  %v5973_v36 = vld [vmem:[#allocation2 + $0xb0] sm:$0xff]  ;;  %v2021_v22 = vld [vmem:[#allocation2 + $0xb8] sm:$0x3]  ;;  %v5977_v43 = vld [vmem:[#allocation2 + $0xa8] sm:$0xff] }
 0x2be   : > { %2190 = vrot.lane.b32.xlu1 %v2114_v30, %s4558_s20  ;;  %v2122_v49 = vsel %vm384_vm4, %v2120_v54, %v2121_v32  ;;  %v2300_v12 = vsel %vm561_vm3, %v2297_v6, %v2299_v33  ;;  %v2128_v15 = vrot.slane %v2015_v18, 1  ;;  %v2125_v27 = vrot.slane %v5945_v35, 1  ;;  %v5989_v14 = vld [vmem:[#allocation2 + $0xc8] sm:$0xff]  ;;  %v2024_v57 = vld [vmem:[#allocation2 + $0xd0] sm:$0x3]  ;;  %v6009_v33 = vld [vmem:[#allocation2 + $0xd8] sm:$0xff] }
 0x2bf   : > { %2188 = vrot.lane.b32.xlu0 %v2112_v23, %s4558_s20  ;;  %v2298_v11 = vsel %vm561_vm3, %v2296_v28, %v2297_v6  ;;  %v2302_v34 = vrot.slane %v5941_v21, 2  ;;  %v2304_v50 = vrot.slane %v2015_v18, 2  ;;  %v2301_v29 = vrot.slane %v5945_v35, 2  ;;  %v2517_v28 = vld [vmem:[%s7115_s2 + $0x8] sm:$0xf] }
 0x2c0   : > { %v2129_v24 = vsel %vm384_vm4, %v2126_v8, %v2128_v15  ;;  %v2127_v5 = vsel %vm384_vm4, %v2125_v27, %v2126_v8  ;;  %v2131_v63 = vrot.slane %v5957_v40, 1  ;;  %v2133_v7 = vrot.slane %v2018_v42, 1  ;;  %4426 = vmatprep.subr.msk.mxu0 %vm934_vm5, %v2517_v28  ;;  %v6018_v18 = vld [vmem:[%s7115_s2 + $0x28] sm:$0xf] }
 0x2c1   : > { %v2305_v17 = vsel %vm561_vm3, %v2302_v34, %v2304_v50  ;;  %v2303_v2 = vsel %vm561_vm3, %v2301_v29, %v2302_v34  ;;  %v2130_v61 = vrot.slane %v5961_v4, 1  ;;  %v2307_v46 = vrot.slane %v5957_v40, 2  ;;  %4427 = vmatpush3.msk.msra.mxu0 %vm934_vm5, %v2517_v28  ;;  %4478 = vmatprep.subr.msk.mxu1 %vm934_vm5, %v6018_v18 }
 0x2c2   : > { %2366 = vrot.lane.b32.xlu1 %v2290_v48, %s4557_s19  ;;  %v2134_v45 = vsel %vm384_vm4, %v2131_v63, %v2133_v7  ;;  %v2309_v20 = vrot.slane %v2018_v42, 2  ;;  %v2306_v13 = vrot.slane %v5961_v4, 2  ;;  %v2136_v31 = vrot.slane %v5973_v36, 1  ;;  %v6033_v42 = vld [vmem:[#allocation2 + $0xf8] sm:$0xff] }
 0x2c3   : > { %2364 = vrot.lane.b32.xlu0 %v2288_v58, %s4557_s19  ;;  %v2132_v25 = vsel %vm384_vm4, %v2130_v61, %v2131_v63  ;;  %v2138_v3 = vrot.slane %v2021_v22, 1  ;;  %v2135_v38 = vrot.slane %v5977_v43, 1  ;;  %v2312_v60 = vrot.slane %v5973_v36, 2  ;;  %v2030_v63 = vld [vmem:[#allocation2 + $0x100] sm:$0x3] }
 0x2c4   : > { %v2310_v30 = vsel %vm561_vm3, %v2307_v46, %v2309_v20  ;;  %v2308_v23 = vsel %vm561_vm3, %v2306_v13, %v2307_v46  ;;  %v2314_v58 = vrot.slane %v2021_v22, 2  ;;  %v2311_v56 = vrot.slane %v5977_v43, 2 }
 0x2c5   : > { %v2139_v52 = vsel %vm384_vm4, %v2136_v31, %v2138_v3  ;;  %v2137_v48 = vsel %vm384_vm4, %v2135_v38, %v2136_v31  ;;  %v2143_v16 = vrot.slane %v2024_v57, 1  ;;  %v2319_v54 = vrot.slane %v2024_v57, 2  ;;  %v6053_v3 = vld [vmem:[#allocation2 + $0x108] sm:$0xff] }
 0x2c6   : > { %2194 = vrot.lane.b32.xlu1 %v2119_v53, %s4558_s20  ;;  %v5993_v53 = vld [vmem:[#allocation2 + $0xc0] sm:$0xff]  ;;  %v2315_v37 = vsel %vm561_vm3, %v2312_v60, %v2314_v58  ;;  %v2313_v41 = vsel %vm561_vm3, %v2311_v56, %v2312_v60  ;;  %v2145_v27 = vrot.slane %v6009_v33, 1  ;;  %v2321_v29 = vrot.slane %v6009_v33, 2 }
 0x2c7   : > { %2192 = vrot.lane.b32.xlu0 %v2117_v62, %s4558_s20  ;;  %v2141_v62 = vrot.slane %v5989_v14, 1  ;;  %v2140_v32 = vrot.slane %v5993_v53, 1  ;;  %v2316_v6 = vrot.slane %v5993_v53, 2  ;;  %v2153_v46 = vrot.slane %v2030_v63, 1 }
 0x2c8   : > { %v2329_v22 = vrot.slane %v2030_v63, 2  ;;  %v2155_v58 = vrot.slane %v6053_v3, 1 }
 0x2c9   : > { %v2142_v26 = vsel %vm384_vm4, %v2140_v32, %v2141_v62  ;;  %v2036_v32 = vld [vmem:[#allocation2 + $0x130] sm:$0x3] }
 0x2ca   : > { %2370 = vrot.lane.b32.xlu1 %v2295_v55, %s4557_s19  ;;  %v2317_v55 = vrot.slane %v5989_v14, 2 }
 0x2cb   : > { %2368 = vrot.lane.b32.xlu0 %v2293_v19, %s4557_s19  ;;  %v2144_v19 = vsel %vm384_vm4, %v2141_v62, %v2143_v16  ;;  %v6065_v16 = vld [vmem:[#allocation2 + $0x128] sm:$0xff] }
 0x2cc   : > { %v2337_v28 = vrot.slane %v6065_v16, 2 }
 0x2ce   : > { %2198 = vrot.lane.b32.xlu1 %v2124_v10, %s4558_s20  ;;  %v6005_v10 = vld [vmem:[#allocation2 + $0xe0] sm:$0xff] }
 0x2cf   : > { %2196 = vrot.lane.b32.xlu0 %v2122_v49, %s4558_s20  ;;  %v2027_v49 = vld [vmem:[#allocation2 + $0xe8] sm:$0x3]  ;;  %v2146_v8 = vrot.slane %v6005_v10, 1  ;;  %v2322_v34 = vrot.slane %v6005_v10, 2 }
 0x2d0   : > { %v2148_v15 = vrot.slane %v2027_v49, 1  ;;  %v2324_v50 = vrot.slane %v2027_v49, 2 }
 0x2d1   : > { %v2323_v61 = vsel %vm561_vm3, %v2321_v29, %v2322_v34 }
 0x2d2   : > { %2374 = vrot.lane.b32.xlu1 %v2300_v12, %s4557_s19  ;;  %v2320_v12 = vsel %vm561_vm3, %v2317_v55, %v2319_v54  ;;  %v2325_v7 = vsel %vm561_vm3, %v2322_v34, %v2324_v50  ;;  %v2039_v34 = vld [vmem:[#allocation2 + $0x148] sm:$0x3] }
 0x2d3   : > { %2372 = vrot.lane.b32.xlu0 %v2298_v11, %s4557_s19  ;;  %v2318_v11 = vsel %vm561_vm3, %v2316_v6, %v2317_v55  ;;  %v6069_v55 = vld [vmem:[#allocation2 + $0x120] sm:$0xff]  ;;  %v2163_v6 = vrot.slane %v2036_v32, 1 }
 0x2d4   : > { %v2160_v49 = vrot.slane %v6069_v55, 1 }
 0x2d6   : > { %2202 = vrot.lane.b32.xlu1 %v2129_v24, %s4558_s20  ;;  %v2149_v24 = vsel %vm384_vm4, %v2146_v8, %v2148_v15  ;;  %v2336_v15 = vrot.slane %v6069_v55, 2 }
 0x2d7   : > { %2200 = vrot.lane.b32.xlu0 %v2127_v5, %s4558_s20  ;;  %v2147_v5 = vsel %vm384_vm4, %v2145_v27, %v2146_v8  ;;  %v6081_v27 = vld [vmem:[#allocation2 + $0x140] sm:$0xff] }
 0x2d8   : > { %v2166_v50 = vrot.slane %v6081_v27, 1  ;;  %v2338_v63 = vsel %vm561_vm3, %v2336_v15, %v2337_v28 }
 0x2da   : > { %2378 = vrot.lane.b32.xlu1 %v2305_v17, %s4557_s19  ;;  %v6037_v17 = vld [vmem:[#allocation2 + $0xf0] sm:$0xff] }
 0x2db   : > { %2376 = vrot.lane.b32.xlu0 %v2303_v2, %s4557_s19  ;;  %v2151_v2 = vrot.slane %v6033_v42, 1  ;;  %v2326_v31 = vrot.slane %v6037_v17, 2 }
 0x2dd   : > { %v2154_v20 = vsel %vm384_vm4, %v2151_v2, %v2153_v46 }
 0x2de   : > { %2206 = vrot.lane.b32.xlu1 %v2134_v45, %s4558_s20  ;;  %v2150_v45 = vrot.slane %v6037_v17, 1 }
 0x2df   : > { %2204 = vrot.lane.b32.xlu0 %v2132_v25, %s4558_s20  ;;  %v2327_v25 = vrot.slane %v6033_v42, 2 }
 0x2e0   : > { %v2152_v13 = vsel %vm384_vm4, %v2150_v45, %v2151_v2  ;;  %v2168_v2 = vrot.slane %v2039_v34, 1 }
 0x2e1   : > { %v2330_v60 = vsel %vm561_vm3, %v2327_v25, %v2329_v22  ;;  %v2042_v22 = vld [vmem:[#allocation2 + $0x160] sm:$0x3] }
 0x2e2   : > { %2382 = vrot.lane.b32.xlu1 %v2310_v30, %s4557_s19  ;;  %v6049_v30 = vld [vmem:[#allocation2 + $0x110] sm:$0xff]  ;;  %v2169_v46 = vsel %vm384_vm4, %v2166_v50, %v2168_v2 }
 0x2e3   : > { %2380 = vrot.lane.b32.xlu0 %v2308_v23, %s4557_s19  ;;  %v2033_v23 = vld [vmem:[#allocation2 + $0x118] sm:$0x3]  ;;  %v2156_v38 = vrot.slane %v6049_v30, 1  ;;  %v2332_v56 = vrot.slane %v6049_v30, 2  ;;  %v2048_v2 = vld [vmem:[#allocation2 + $0x190] sm:$0x3] }
 0x2e5   : > { %v2157_v62 = vsel %vm384_vm4, %v2155_v58, %v2156_v38  ;;  %v6112_v58 = vpop.permute.xlu1 %2180 }
 0x2e6   : > { %2210 = vrot.lane.b32.xlu1 %v2139_v52, %s4558_s20  ;;  %v2328_v52 = vsel %vm561_vm3, %v2326_v31, %v2327_v25  ;;  %v2344_v25 = vrot.slane %v2039_v34, 2  ;;  %v6104_v31 = vld [vmem:[#allocation2 + $0x150] sm:$0xff] }
 0x2e7   : > { %2208 = vrot.lane.b32.xlu0 %v2137_v48, %s4558_s20  ;;  %v2158_v48 = vrot.slane %v2033_v23, 1 }
 0x2e9   : > { %v2159_v57 = vsel %vm384_vm4, %v2156_v38, %v2158_v48  ;;  %v2170_v48 = vrot.slane %v6104_v31, 1 }
 0x2ea   : > { %2386 = vrot.lane.b32.xlu1 %v2315_v37, %s4557_s19  ;;  %v2334_v37 = vrot.slane %v2033_v23, 2 }
 0x2eb   : > { %2384 = vrot.lane.b32.xlu0 %v2313_v41, %s4557_s19  ;;  %v2331_v41 = vrot.slane %v6053_v3, 2 }
 0x2ed   : > { %v2333_v54 = vsel %vm561_vm3, %v2331_v41, %v2332_v56  ;;  %v2346_v41 = vrot.slane %v6104_v31, 2 }
 0x2ee   : > { %2214 = vrot.lane.b32.xlu1 %v2144_v19, %s4558_s20  ;;  %v2161_v19 = vrot.slane %v6065_v16, 1 }
 0x2ef   : > { %2212 = vrot.lane.b32.xlu0 %v2142_v26, %s4558_s20  ;;  %v2335_v26 = vsel %vm561_vm3, %v2332_v56, %v2334_v37  ;;  %v2349_v37 = vrot.slane %v2042_v22, 2 }
 0x2f0   : > { %v2164_v8 = vsel %vm384_vm4, %v2161_v19, %v2163_v6 }
 0x2f2   : > { %2390 = vrot.lane.b32.xlu1 %v2320_v12, %s4557_s19  ;;  %v2162_v12 = vsel %vm384_vm4, %v2160_v49, %v2161_v19  ;;  %v2045_v19 = vld [vmem:[#allocation2 + $0x178] sm:$0x3] }
 0x2f3   : > { %2388 = vrot.lane.b32.xlu0 %v2318_v11, %s4557_s19  ;;  %v2339_v11 = vrot.slane %v2036_v32, 2  ;;  %v6118_v32 = vld [vmem:[#allocation2 + $0x170] sm:$0xff] }
 0x2f5   : > { %v2340_v29 = vsel %vm561_vm3, %v2337_v28, %v2339_v11  ;;  %v2178_v28 = vrot.slane %v2045_v19, 1  ;;  %v2352_v11 = vrot.slane %v6118_v32, 2 }
 0x2f6   : > { %2218 = vrot.lane.b32.xlu1 %v2149_v24, %s4558_s20  ;;  %v6085_v24 = vld [vmem:[#allocation2 + $0x138] sm:$0xff] }
 0x2f7   : > { %2216 = vrot.lane.b32.xlu0 %v2147_v5, %s4558_s20  ;;  %v2516_v5 = vld [vmem:[%s7115_s2] sm:$0xff] }
 0x2f8   : > { %4428 = vmatprep.subr.mxu0 %v2516_v5 }
 0x2f9   : > { %4429 = vmatpush3.msra.mxu0 %v2516_v5  ;;  %v2354_v5 = vrot.slane %v2045_v19, 2  ;;  %v6157_v19 = vld [vmem:[#allocation2 + $0x1a0] sm:$0xff] }
 0x2fa   : > { %2394 = vrot.lane.b32.xlu1 %v2325_v7, %s4557_s19  ;;  %v2165_v7 = vrot.slane %v6085_v24, 1 }
 0x2fb   : > { %2392 = vrot.lane.b32.xlu0 %v2323_v61, %s4557_s19  ;;  %v2342_v61 = vrot.slane %v6081_v27, 2 }
 0x2fc   : > { %v2167_v45 = vsel %vm384_vm4, %v2165_v7, %v2166_v50 }
 0x2fd   : > { %v2345_v38 = vsel %vm561_vm3, %v2342_v61, %v2344_v25 }
 0x2fe   : > { %2222 = vrot.lane.b32.xlu1 %v2154_v20, %s4558_s20  ;;  %v2341_v20 = vrot.slane %v6085_v24, 2 }
 0x2ff   : > { %2220 = vrot.lane.b32.xlu0 %v2152_v13, %s4558_s20  ;;  %v6100_v13 = vld [vmem:[#allocation2 + $0x158] sm:$0xff] }
 0x300   : > { %v2171_v23 = vrot.slane %v6100_v13, 1  ;;  %v2347_v56 = vrot.slane %v6100_v13, 2 }
 0x302   : > { %2398 = vrot.lane.b32.xlu1 %v2330_v60, %s4557_s19  ;;  %v2343_v60 = vsel %vm561_vm3, %v2341_v20, %v2342_v61  ;;  %v2350_v6 = vsel %vm561_vm3, %v2347_v56, %v2349_v37  ;;  %v2348_v49 = vsel %vm561_vm3, %v2346_v41, %v2347_v56 }
 0x303   : > { %2396 = vrot.lane.b32.xlu0 %v2328_v52, %s4557_s19  ;;  %v2173_v52 = vrot.slane %v2042_v22, 1  ;;  %v2524_v22 = vrot.slane %v2048_v2, 1 }
 0x306   : > { %2226 = vrot.lane.b32.xlu1 %v2159_v57, %s4558_s20  ;;  %v2174_v57 = vsel %vm384_vm4, %v2171_v23, %v2173_v52 }
 0x307   : > { %2224 = vrot.lane.b32.xlu0 %v2157_v62, %s4558_s20  ;;  %v2172_v62 = vsel %vm384_vm4, %v2170_v48, %v2171_v23  ;;  %v6148_v23 = vld [vmem:[#allocation2 + $0x8] sm:$0xff] }
 0x30a   : > { %2402 = vrot.lane.b32.xlu1 %v2335_v26, %s4557_s19  ;;  %v6122_v26 = vld [vmem:[#allocation2 + $0x168] sm:$0xff] }
 0x30b   : > { %2400 = vrot.lane.b32.xlu0 %v2333_v54, %s4557_s19  ;;  %v2176_v54 = vrot.slane %v6118_v32, 1  ;;  %v2351_v50 = vrot.slane %v6122_v26, 2 }
 0x30d   : > { %v2179_v15 = vsel %vm384_vm4, %v2176_v54, %v2178_v28  ;;  %v2353_v25 = vsel %vm561_vm3, %v2351_v50, %v2352_v11 }
 0x30e   : > { %2230 = vrot.lane.b32.xlu1 %v2164_v8, %s4558_s20  ;;  %v2175_v8 = vrot.slane %v6122_v26, 1 }
 0x30f   : > { %2228 = vrot.lane.b32.xlu0 %v2162_v12, %s4558_s20  ;;  %v6130_v12 = vpop.permute.xlu1 %2182 }
 0x310   : > { %v2177_v34 = vsel %vm384_vm4, %v2175_v8, %v2176_v54  ;;  %v2051_v54 = vld [vmem:[#allocation2 + $0x1a8] sm:$0x3]  ;;  %v3112_v8 = vrot.slane %v6157_v19, 1 }
 0x312   : > { %2406 = vrot.lane.b32.xlu1 %v2340_v29, %s4557_s19  ;;  %v6136_v29 = vld [vmem:[#allocation2 + $0x180] sm:$0xff] }
 0x313   : > { %2404 = vrot.lane.b32.xlu0 %v2338_v63, %s4557_s19  ;;  %v6140_v63 = vld [vmem:[#allocation2 + $0x188] sm:$0xff]  ;;  %v2532_v37 = vrot.slane %v6136_v29, 2 }
 0x314   : > { %v2522_v20 = vrot.slane %v6140_v63, 1  ;;  %v2533_v41 = vrot.slane %v6140_v63, 2 }
 0x316   : > { %2234 = vrot.lane.b32.xlu1 %v2169_v46, %s4558_s20  ;;  %v2521_v46 = vrot.slane %v6136_v29, 1  ;;  %v2534_v50 = vsel %vm561_vm3, %v2532_v37, %v2533_v41 }
 0x317   : > { %2232 = vrot.lane.b32.xlu0 %v2167_v45, %s4558_s20  ;;  %v2355_v45 = vsel %vm561_vm3, %v2352_v11, %v2354_v5  ;;  %v3114_v11 = vrot.slane %v2051_v54, 1  ;;  %v3975_v5 = vld [vmem:[%s7115_s2 + $0x20] sm:$0xff] }
 0x318   : > { %v2523_v28 = vsel %vm384_vm4, %v2521_v46, %v2522_v20 }
 0x31a   : > { %2410 = vrot.lane.b32.xlu1 %v2345_v38, %s4557_s19  ;;  %v2277_v38 = vrot.slane %v6148_v23, 2 }
 0x31b   : > { %2408 = vrot.lane.b32.xlu0 %v2343_v60, %s4557_s19  ;;  %v4546_v60 = vld [vmem:[#allocation2 + $0x10] sm:$0x3] }
 0x31c   : > { %v2279_v52 = vrot.slane %v4546_v60, 2  ;;  %v3123_v60 = vrot.slane %v6157_v19, 2 }
 0x31e   : > { %2238 = vrot.lane.b32.xlu1 %v2174_v57, %s4558_s20 }
 0x31f   : > { %2236 = vrot.lane.b32.xlu0 %v2172_v62, %s4558_s20 }
 0x322   : > { %2414 = vrot.lane.b32.xlu1 %v2350_v6, %s4557_s19 }
 0x323   : > { %2412 = vrot.lane.b32.xlu0 %v2348_v49, %s4557_s19 }
 0x326   : > { %2242 = vrot.lane.b32.xlu1 %v2179_v15, %s4558_s20 }
 0x327   : > { %2240 = vrot.lane.b32.xlu0 %v2177_v34, %s4558_s20 }
 0x328   : > { %v2187_v7 = vpop.permute.xlu1 %2186 }
 0x329   : > { %v2185_v61 = vpop.permute.xlu0 %2184  ;;  %v2455_v48 = vsel %vm171_vm0, %v5883_v44, %v2187_v7  ;;  %v2525_v44 = vsel %vm384_vm4, %v2522_v20, %v2524_v22  ;;  %v2535_v7 = vrot.slane %v2048_v2, 2 }
 0x32a   : > { %2418 = vrot.lane.b32.xlu1 %v2355_v45, %s4557_s19  ;;  %v2454_v56 = vsel %vm171_vm0, %v5885_v47, %v2185_v61  ;;  %v2280_v47 = vsel %vm561_vm3, %v2277_v38, %v2279_v52  ;;  %v6183_v61 = vld [vmem:[#allocation2] sm:$0xff]  ;;  %v3115_v45 = vsel %vm384_vm4, %v3112_v8, %v3114_v11  ;;  %v3125_v52 = vrot.slane %v2051_v54, 2 }
 0x32b   : > { %2416 = vrot.lane.b32.xlu0 %v2353_v25, %s4557_s19  ;;  %v2276_v46 = vrot.slane %v6183_v61, 2 }
 0x32c   : > { %v2363_v57 = vpop.permute.xlu1 %2362  ;;  %v3126_v54 = vsel %vm561_vm3, %v3123_v60, %v3125_v52 }
 0x32d   : > { %v2361_v62 = vpop.permute.xlu0 %2360  ;;  %v6160_v6 = vsel %vm770_vm6, %v2455_v48, %v2363_v57  ;;  %v2536_v57 = vsel %vm561_vm3, %v2533_v41, %v2535_v7 }
 0x32e   : > { %v6163_v49 = vsel %vm770_vm6, %v2454_v56, %v2361_v62  ;;  %2528 = vrot.lane.b32.xlu1 %v2525_v44, %s4558_s20 }
 0x32f   : > { %2526 = vrot.lane.b32.xlu0 %v2523_v28, %s4558_s20  ;;  %4378 = vmatprep.mubr.msk.f32.mxu1 %vm837_vm7, %v6163_v49 }
 0x330   : > { %4379 = vmatmul.mubr.msk.f32.vlgmr.msra.gmra.mxu1 %vm837_vm7, %v6160_v6  ;;  %v2191_v15 = vpop.permute.xlu1 %2190 }
 0x331   : > { %v2189_v34 = vpop.permute.xlu0 %2188  ;;  %4479 = vmatpush3.msk.msra.mxu1 %vm934_vm5, %v6018_v18  ;;  %v2457_v25 = vsel %vm171_vm0, %v5893_v0, %v2191_v15  ;;  %v6191_v18 = vld [vmem:[#allocation2 + $0x198] sm:$0xff]  ;;  %v2278_v0 = vsel %vm561_vm3, %v2276_v46, %v2277_v38 }
 0x332   : > { %2358 = vrot.lane.b32.xlu1 %v2280_v47, %s4557_s19  ;;  %4480 = vmatprep.subr.mxu1 %v3975_v5  ;;  %v2456_v2 = vsel %vm171_vm0, %v5897_v9, %v2189_v34  ;;  %v3111_v9 = vrot.slane %v6191_v18, 1  ;;  %v3122_v44 = vrot.slane %v6191_v18, 2 }
 0x333   : > { %2537 = vrot.lane.b32.xlu0 %v2534_v50, %s4557_s19  ;;  %4481 = vmatpush3.msra.mxu1 %v3975_v5 }
 0x334   : > { %v2367_v20 = vpop.permute.xlu1 %2366  ;;  %v3113_v41 = vsel %vm384_vm4, %v3111_v9, %v3112_v8 }
 0x335   : > { %v2365_v22 = vpop.permute.xlu0 %2364  ;;  %v6195_v48 = vsel %vm770_vm6, %v2457_v25, %v2367_v20 }
 0x336   : > { %v6198_v56 = vsel %vm770_vm6, %v2456_v2, %v2365_v22  ;;  %3118 = vrot.lane.b32.xlu1 %v3115_v45, %s4558_s20 }
 0x337   : > { %2539 = vrot.lane.b32.xlu0 %v2536_v57, %s4557_s19  ;;  %4381 = vmatprep.mubr.msk.f32.mxu1 %vm837_vm7, %v6198_v56 }
 0x338   : > { %4382 = vmatmul.mubr.msk.f32.gmra.mxu1 %vm837_vm7, %v6195_v48  ;;  %v2195_v62 = vpop.permute.xlu1 %2194 }
 0x339   : > { %v2193_v37 = vpop.permute.xlu0 %2192  ;;  %v2459_v28 = vsel %vm171_vm0, %v5909_v39, %v2195_v62  ;;  %v3124_v39 = vsel %vm561_vm3, %v3122_v44, %v3123_v60 }
 0x33a   : > { %3129 = vrot.lane.b32.xlu1 %v3126_v54, %s4557_s19  ;;  %v2458_v38 = vsel %vm171_vm0, %v5913_v59, %v2193_v37 }
 0x33b   : > { %2356 = vrot.lane.b32.xlu0 %v2278_v0, %s4557_s19 }
 0x33c   : > { %v2371_v47 = vpop.permute.xlu1 %2370 }
 0x33d   : > { %v2369_v11 = vpop.permute.xlu0 %2368  ;;  %v6219_v15 = vsel %vm770_vm6, %v2459_v28, %v2371_v47 }
 0x33e   : > { %v6222_v34 = vsel %vm770_vm6, %v2458_v38, %v2369_v11 }
 0x33f   : > { %4384 = vmatprep.mubr.msk.f32.mxu1 %vm837_vm7, %v6222_v34  ;;  %3116 = vrot.lane.b32.xlu0 %v3113_v41, %s4558_s20 }
 0x340   : > { %4385 = vmatmul.mubr.msk.f32.gmra.mxu1 %vm837_vm7, %v6219_v15  ;;  %v2199_v8 = vpop.permute.xlu1 %2198 }
 0x341   : > { %v2197_v59 = vpop.permute.xlu0 %2196  ;;  %v2461_v5 = vsel %vm171_vm0, %v5925_v1, %v2199_v8 }
 0x342   : > { %v2460_v50 = vsel %vm171_vm0, %v5929_v51, %v2197_v59 }
 0x343   : > { %3127 = vrot.lane.b32.xlu0 %v3124_v39, %s4557_s19 }
 0x344   : > { %v2375_v7 = vpop.permute.xlu1 %2374 }
 0x345   : > { %v2373_v46 = vpop.permute.xlu0 %2372  ;;  %v6236_v45 = vsel %vm770_vm6, %v2461_v5, %v2375_v7 }
 0x346   : > { %v6239_v25 = vsel %vm770_vm6, %v2460_v50, %v2373_v46 }
 0x347   : > { %4387 = vmatprep.mubr.msk.f32.mxu1 %vm837_vm7, %v6239_v25 }
 0x348   : > { %4388 = vmatmul.mubr.msk.f32.gmra.mxu1 %vm837_vm7, %v6236_v45  ;;  %v2203_v2 = vpop.permute.xlu1 %2202 }
 0x349   : > { %v2201_v20 = vpop.permute.xlu0 %2200  ;;  %v2463_v1 = vsel %vm171_vm0, %v5941_v21, %v2203_v2 }
 0x34a   : > { %v2462_v51 = vsel %vm171_vm0, %v5945_v35, %v2201_v20 }
 0x34c   : > { %v2379_v22 = vpop.permute.xlu1 %2378 }
 0x34d   : > { %v2377_v60 = vpop.permute.xlu0 %2376  ;;  %v6250_v52 = vsel %vm770_vm6, %v2463_v1, %v2379_v22 }
 0x34e   : > { %v6253_v57 = vsel %vm770_vm6, %v2462_v51, %v2377_v60 }
 0x34f   : > { %4390 = vmatprep.mubr.msk.f32.mxu1 %vm837_vm7, %v6253_v57 }
 0x350   : > { %4391 = vmatmul.mubr.msk.f32.gmra.mxu1 %vm837_vm7, %v6250_v52  ;;  %v2207_v0 = vpop.permute.xlu1 %2206 }
 0x351   : > { %v2205_v9 = vpop.permute.xlu0 %2204  ;;  %v2465_v21 = vsel %vm171_vm0, %v5957_v40, %v2207_v0 }
 0x352   : > { %v2464_v35 = vsel %vm171_vm0, %v5961_v4, %v2205_v9 }
 0x354   : > { %v2383_v62 = vpop.permute.xlu1 %2382 }
 0x355   : > { %v2381_v37 = vpop.permute.xlu0 %2380  ;;  %v6264_v54 = vsel %vm770_vm6, %v2465_v21, %v2383_v62 }
 0x356   : > { %v6267_v41 = vsel %vm770_vm6, %v2464_v35, %v2381_v37 }
 0x357   : > { %4393 = vmatprep.mubr.msk.f32.mxu1 %vm837_vm7, %v6267_v41 }
 0x358   : > { %4394 = vmatmul.mubr.msk.f32.gmra.mxu1 %vm837_vm7, %v6264_v54  ;;  %v2211_v44 = vpop.permute.xlu1 %2210 }
 0x359   : > { %v2209_v28 = vpop.permute.xlu0 %2208  ;;  %v2467_v40 = vsel %vm171_vm0, %v5973_v36, %v2211_v44 }
 0x35a   : > { %v2466_v4 = vsel %vm171_vm0, %v5977_v43, %v2209_v28 }
 0x35c   : > { %v2387_v38 = vpop.permute.xlu1 %2386 }
 0x35d   : > { %v2385_v47 = vpop.permute.xlu0 %2384  ;;  %v6278_v11 = vsel %vm770_vm6, %v2467_v40, %v2387_v38 }
 0x35e   : > { %v6281_v39 = vsel %vm770_vm6, %v2466_v4, %v2385_v47 }
 0x35f   : > { %4396 = vmatprep.mubr.msk.f32.mxu1 %vm837_vm7, %v6281_v39 }
 0x360   : > { %4397 = vmatmul.mubr.msk.f32.gmra.mxu1 %vm837_vm7, %v6278_v11  ;;  %v2215_v8 = vpop.permute.xlu1 %2214 }
 0x361   : > { %v2213_v59 = vpop.permute.xlu0 %2212  ;;  %v2469_v36 = vsel %vm171_vm0, %v5989_v14, %v2215_v8 }
 0x362   : > { %v2468_v43 = vsel %vm171_vm0, %v5993_v53, %v2213_v59 }
 0x364   : > { %v2391_v5 = vpop.permute.xlu1 %2390 }
 0x365   : > { %v2389_v50 = vpop.permute.xlu0 %2388  ;;  %v6292_v7 = vsel %vm770_vm6, %v2469_v36, %v2391_v5 }
 0x366   : > { %v6295_v46 = vsel %vm770_vm6, %v2468_v43, %v2389_v50 }
 0x367   : > { %4399 = vmatprep.mubr.msk.f32.mxu1 %vm837_vm7, %v6295_v46 }
 0x368   : > { %4400 = vmatmul.mubr.msk.f32.gmra.mxu1 %vm837_vm7, %v6292_v7  ;;  %v2219_v2 = vpop.permute.xlu1 %2218 }
 0x369   : > { %v2217_v20 = vpop.permute.xlu0 %2216  ;;  %v2471_v14 = vsel %vm171_vm0, %v6005_v10, %v2219_v2 }
 0x36a   : > { %v2470_v53 = vsel %vm171_vm0, %v6009_v33, %v2217_v20 }
 0x36c   : > { %v2395_v1 = vpop.permute.xlu1 %2394 }
 0x36d   : > { %v2393_v51 = vpop.permute.xlu0 %2392  ;;  %v6306_v22 = vsel %vm770_vm6, %v2471_v14, %v2395_v1 }
 0x36e   : > { %v6309_v60 = vsel %vm770_vm6, %v2470_v53, %v2393_v51 }
 0x36f   : > { %4402 = vmatprep.mubr.msk.f32.mxu1 %vm837_vm7, %v6309_v60 }
 0x370   : > { %4403 = vmatmul.mubr.msk.f32.gmra.mxu1 %vm837_vm7, %v6306_v22  ;;  %v2223_v0 = vpop.permute.xlu1 %2222 }
 0x371   : > { %v2221_v9 = vpop.permute.xlu0 %2220  ;;  %v2473_v10 = vsel %vm171_vm0, %v6033_v42, %v2223_v0 }
 0x372   : > { %v2472_v33 = vsel %vm171_vm0, %v6037_v17, %v2221_v9 }
 0x374   : > { %v2399_v21 = vpop.permute.xlu1 %2398 }
 0x375   : > { %v2397_v35 = vpop.permute.xlu0 %2396  ;;  %v6320_v62 = vsel %vm770_vm6, %v2473_v10, %v2399_v21 }
 0x376   : > { %v6323_v37 = vsel %vm770_vm6, %v2472_v33, %v2397_v35 }
 0x377   : > { %4405 = vmatprep.mubr.msk.f32.mxu1 %vm837_vm7, %v6323_v37 }
 0x378   : > { %4406 = vmatmul.mubr.msk.f32.gmra.mxu1 %vm837_vm7, %v6320_v62  ;;  %v2227_v44 = vpop.permute.xlu1 %2226 }
 0x379   : > { %v2225_v28 = vpop.permute.xlu0 %2224  ;;  %v2475_v42 = vsel %vm171_vm0, %v6049_v30, %v2227_v44 }
 0x37a   : > { %v2474_v17 = vsel %vm171_vm0, %v6053_v3, %v2225_v28 }
 0x37c   : > { %v2403_v40 = vpop.permute.xlu1 %2402 }
 0x37d   : > { %v2401_v4 = vpop.permute.xlu0 %2400  ;;  %v6334_v38 = vsel %vm770_vm6, %v2475_v42, %v2403_v40 }
 0x37e   : > { %v6337_v47 = vsel %vm770_vm6, %v2474_v17, %v2401_v4 }
 0x37f   : > { %4408 = vmatprep.mubr.msk.f32.mxu1 %vm837_vm7, %v6337_v47 }
 0x380   : > { %4409 = vmatmul.mubr.msk.f32.gmra.mxu1 %vm837_vm7, %v6334_v38  ;;  %v2231_v8 = vpop.permute.xlu1 %2230 }
 0x381   : > { %v2229_v59 = vpop.permute.xlu0 %2228  ;;  %v2477_v30 = vsel %vm171_vm0, %v6065_v16, %v2231_v8 }
 0x382   : > { %v2476_v3 = vsel %vm171_vm0, %v6069_v55, %v2229_v59 }
 0x384   : > { %v2407_v36 = vpop.permute.xlu1 %2406 }
 0x385   : > { %v2405_v43 = vpop.permute.xlu0 %2404  ;;  %v6348_v5 = vsel %vm770_vm6, %v2477_v30, %v2407_v36 }
 0x386   : > { %v6351_v50 = vsel %vm770_vm6, %v2476_v3, %v2405_v43 }
 0x387   : > { %4411 = vmatprep.mubr.msk.f32.mxu1 %vm837_vm7, %v6351_v50 }
 0x388   : > { %4412 = vmatmul.mubr.msk.f32.gmra.mxu1 %vm837_vm7, %v6348_v5  ;;  %v2235_v2 = vpop.permute.xlu1 %2234 }
 0x389   : > { %v2233_v20 = vpop.permute.xlu0 %2232  ;;  %v2479_v16 = vsel %vm171_vm0, %v6081_v27, %v2235_v2 }
 0x38a   : > { %v2478_v55 = vsel %vm171_vm0, %v6085_v24, %v2233_v20 }
 0x38c   : > { %v2411_v14 = vpop.permute.xlu1 %2410 }
 0x38d   : > { %v2409_v53 = vpop.permute.xlu0 %2408  ;;  %v6362_v1 = vsel %vm770_vm6, %v2479_v16, %v2411_v14 }
 0x38e   : > { %v6365_v51 = vsel %vm770_vm6, %v2478_v55, %v2409_v53 }
 0x38f   : > { %4414 = vmatprep.mubr.msk.f32.mxu1 %vm837_vm7, %v6365_v51 }
 0x390   : > { %4415 = vmatmul.mubr.msk.f32.gmra.mxu1 %vm837_vm7, %v6362_v1  ;;  %v2239_v0 = vpop.permute.xlu1 %2238 }
 0x391   : > { %v2237_v9 = vpop.permute.xlu0 %2236  ;;  %v2481_v27 = vsel %vm171_vm0, %v6100_v13, %v2239_v0 }
 0x392   : > { %v2480_v24 = vsel %vm171_vm0, %v6104_v31, %v2237_v9 }
 0x394   : > { %v2415_v10 = vpop.permute.xlu1 %2414 }
 0x395   : > { %v2413_v33 = vpop.permute.xlu0 %2412  ;;  %v6376_v21 = vsel %vm770_vm6, %v2481_v27, %v2415_v10 }
 0x396   : > { %v6379_v35 = vsel %vm770_vm6, %v2480_v24, %v2413_v33 }
 0x397   : > { %4417 = vmatprep.mubr.msk.f32.mxu1 %vm837_vm7, %v6379_v35 }
 0x398   : > { %4418 = vmatmul.mubr.msk.f32.gmra.mxu1 %vm837_vm7, %v6376_v21  ;;  %v2243_v44 = vpop.permute.xlu1 %2242 }
 0x399   : > { %v2241_v28 = vpop.permute.xlu0 %2240  ;;  %v2483_v13 = vsel %vm171_vm0, %v6118_v32, %v2243_v44 }
 0x39a   : > { %v2482_v31 = vsel %vm171_vm0, %v6122_v26, %v2241_v28 }
 0x39c   : > { %v2419_v42 = vpop.permute.xlu1 %2418 }
 0x39d   : > { %v2417_v17 = vpop.permute.xlu0 %2416  ;;  %v6390_v40 = vsel %vm770_vm6, %v2483_v13, %v2419_v42 }
 0x39e   : > { %v6393_v4 = vsel %vm770_vm6, %v2482_v31, %v2417_v17 }
 0x39f   : > { %4420 = vmatprep.mubr.msk.f32.mxu1 %vm837_vm7, %v6393_v4 }
 0x3a0   : > { %4421 = vmatmul.mubr.msk.f32.gmra.mxu1 %vm837_vm7, %v6390_v40  ;;  %v2529_v26 = vpop.permute.xlu1 %2528 }
 0x3a1   : > { %v2527_v8 = vpop.permute.xlu0 %2526  ;;  %v2544_v3 = vsel %vm171_vm0, %v6140_v63, %v2529_v26  ;;  %v2453_v63 = vsel %vm171_vm0, %v6148_v23, %v6130_v12 }
 0x3a2   : > { %v2543_v32 = vsel %vm171_vm0, %v6136_v29, %v2527_v8  ;;  %v2452_v29 = vsel %vm171_vm0, %v6183_v61, %v6112_v58 }
 0x3a4   : > { %v2359_v2 = vpop.permute.xlu1 %2358 }
 0x3a5   : > { %v2538_v59 = vpop.permute.xlu0 %2537  ;;  %v2485_v55 = vsel %vm770_vm6, %v2453_v63, %v2359_v2 }
 0x3a6   : > { %v6402_v30 = vsel %vm770_vm6, %v2543_v32, %v2538_v59 }
 0x3a7   : > { %4423 = vmatprep.mubr.msk.f32.mxu1 %vm837_vm7, %v6402_v30 }
 0x3a8   : > { %v3119_v12 = vpop.permute.xlu1 %3118 }
 0x3a9   : > { %v2540_v36 = vpop.permute.xlu0 %2539 }
 0x3aa   : > { %v6409_v43 = vsel %vm770_vm6, %v2544_v3, %v2540_v36 }
 0x3ab   : > { %4424 = vmatmul.mubr.msk.f32.gmra.mxu1 %vm837_vm7, %v6409_v43 }
 0x3ac   : > { %4482 = vmatprep.mubr.msk.f32.mxu1 %vm837_vm7, %v6198_v56 }
 0x3ad   : > { %v2357_v20 = vpop.permute.xlu0 %2356 }
 0x3ae   : > { %v2484_v16 = vsel %vm770_vm6, %v2452_v29, %v2357_v20 }
 0x3af   : > { %4430 = vmatprep.mubr.msk.f32.mxu0 %vm837_vm7, %v2484_v16  ;;  %4483 = vmatmul.mubr.msk.f32.vlgmr.msra.gmra.mxu1 %vm837_vm7, %v6195_v48 }
 0x3b0   : > { %4431 = vmatmul.mubr.msk.f32.vlgmr.msra.gmra.mxu0 %vm837_vm7, %v2485_v55  ;;  %4485 = vmatprep.mubr.msk.f32.mxu1 %vm837_vm7, %v6222_v34 }
 0x3b1   : > { %4433 = vmatprep.mubr.msk.f32.mxu0 %vm837_vm7, %v6163_v49  ;;  %v3117_v58 = vpop.permute.xlu0 %3116  ;;  %v3134_v49 = vsel %vm171_vm0, %v6157_v19, %v3119_v12 }
 0x3b2   : > { %v3133_v23 = vsel %vm171_vm0, %v6191_v18, %v3117_v58 }
 0x3b3   : > { %4486 = vmatmul.mubr.msk.f32.gmra.mxu1 %vm837_vm7, %v6219_v15 }
 0x3b4   : > { %4434 = vmatmul.mubr.msk.f32.gmra.mxu0 %vm837_vm7, %v6160_v6  ;;  %4488 = vmatprep.mubr.msk.f32.mxu1 %vm837_vm7, %v6239_v25 }
 0x3b5   : > { %4436 = vmatprep.mubr.msk.f32.mxu0 %vm837_vm7, %v6198_v56  ;;  %v3128_v6 = vpop.permute.xlu0 %3127 }
 0x3b6   : > { %v3135_v61 = vsel %vm770_vm6, %v3133_v23, %v3128_v6 }
 0x3b7   : > { %4489 = vmatmul.mubr.msk.f32.gmra.mxu1 %vm837_vm7, %v6236_v45 }
 0x3b8   : > { %4437 = vmatmul.mubr.msk.f32.gmra.mxu0 %vm837_vm7, %v6195_v48  ;;  %4491 = vmatprep.mubr.msk.f32.mxu1 %vm837_vm7, %v6253_v57  ;;  %v3130_v48 = vpop.permute.xlu1 %3129 }
 0x3b9   : > { %4439 = vmatprep.mubr.msk.f32.mxu0 %vm837_vm7, %v6222_v34  ;;  %v3136_v18 = vsel %vm770_vm6, %v3134_v49, %v3130_v48 }
 0x3bb   : > { %4492 = vmatmul.mubr.msk.f32.gmra.mxu1 %vm837_vm7, %v6250_v52 }
 0x3bc   : > { %4440 = vmatmul.mubr.msk.f32.gmra.mxu0 %vm837_vm7, %v6219_v15  ;;  %4494 = vmatprep.mubr.msk.f32.mxu1 %vm837_vm7, %v6267_v41 }
 0x3bd   : > { %4442 = vmatprep.mubr.msk.f32.mxu0 %vm837_vm7, %v6239_v25 }
 0x3bf   : > { %4495 = vmatmul.mubr.msk.f32.gmra.mxu1 %vm837_vm7, %v6264_v54 }
 0x3c0   : > { %4443 = vmatmul.mubr.msk.f32.gmra.mxu0 %vm837_vm7, %v6236_v45  ;;  %4497 = vmatprep.mubr.msk.f32.mxu1 %vm837_vm7, %v6281_v39 }
 0x3c1   : > { %4445 = vmatprep.mubr.msk.f32.mxu0 %vm837_vm7, %v6253_v57 }
 0x3c3   : > { %4498 = vmatmul.mubr.msk.f32.gmra.mxu1 %vm837_vm7, %v6278_v11 }
 0x3c4   : > { %4446 = vmatmul.mubr.msk.f32.gmra.mxu0 %vm837_vm7, %v6250_v52  ;;  %4500 = vmatprep.mubr.msk.f32.mxu1 %vm837_vm7, %v6295_v46 }
 0x3c5   : > { %4448 = vmatprep.mubr.msk.f32.mxu0 %vm837_vm7, %v6267_v41 }
 0x3c7   : > { %4501 = vmatmul.mubr.msk.f32.gmra.mxu1 %vm837_vm7, %v6292_v7 }
 0x3c8   : > { %4449 = vmatmul.mubr.msk.f32.gmra.mxu0 %vm837_vm7, %v6264_v54  ;;  %4503 = vmatprep.mubr.msk.f32.mxu1 %vm837_vm7, %v6309_v60 }
 0x3c9   : > { %4451 = vmatprep.mubr.msk.f32.mxu0 %vm837_vm7, %v6281_v39 }
 0x3cb   : > { %4504 = vmatmul.mubr.msk.f32.gmra.mxu1 %vm837_vm7, %v6306_v22 }
 0x3cc   : > { %4452 = vmatmul.mubr.msk.f32.gmra.mxu0 %vm837_vm7, %v6278_v11  ;;  %4506 = vmatprep.mubr.msk.f32.mxu1 %vm837_vm7, %v6323_v37 }
 0x3cd   : > { %4454 = vmatprep.mubr.msk.f32.mxu0 %vm837_vm7, %v6295_v46 }
 0x3cf   : > { %4507 = vmatmul.mubr.msk.f32.gmra.mxu1 %vm837_vm7, %v6320_v62 }
 0x3d0   : > { %4455 = vmatmul.mubr.msk.f32.gmra.mxu0 %vm837_vm7, %v6292_v7  ;;  %4509 = vmatprep.mubr.msk.f32.mxu1 %vm837_vm7, %v6337_v47 }
 0x3d1   : > { %4457 = vmatprep.mubr.msk.f32.mxu0 %vm837_vm7, %v6309_v60 }
 0x3d3   : > { %4510 = vmatmul.mubr.msk.f32.gmra.mxu1 %vm837_vm7, %v6334_v38 }
 0x3d4   : > { %4458 = vmatmul.mubr.msk.f32.gmra.mxu0 %vm837_vm7, %v6306_v22  ;;  %4512 = vmatprep.mubr.msk.f32.mxu1 %vm837_vm7, %v6351_v50 }
 0x3d5   : > { %4460 = vmatprep.mubr.msk.f32.mxu0 %vm837_vm7, %v6323_v37 }
 0x3d7   : > { %4513 = vmatmul.mubr.msk.f32.gmra.mxu1 %vm837_vm7, %v6348_v5 }
 0x3d8   : > { %4461 = vmatmul.mubr.msk.f32.gmra.mxu0 %vm837_vm7, %v6320_v62  ;;  %4515 = vmatprep.mubr.msk.f32.mxu1 %vm837_vm7, %v6365_v51 }
 0x3d9   : > { %4463 = vmatprep.mubr.msk.f32.mxu0 %vm837_vm7, %v6337_v47 }
 0x3db   : > { %4516 = vmatmul.mubr.msk.f32.gmra.mxu1 %vm837_vm7, %v6362_v1 }
 0x3dc   : > { %4464 = vmatmul.mubr.msk.f32.gmra.mxu0 %vm837_vm7, %v6334_v38  ;;  %4518 = vmatprep.mubr.msk.f32.mxu1 %vm837_vm7, %v6379_v35 }
 0x3dd   : > { %4466 = vmatprep.mubr.msk.f32.mxu0 %vm837_vm7, %v6351_v50 }
 0x3df   : > { %4519 = vmatmul.mubr.msk.f32.gmra.mxu1 %vm837_vm7, %v6376_v21 }
 0x3e0   : > { %4467 = vmatmul.mubr.msk.f32.gmra.mxu0 %vm837_vm7, %v6348_v5  ;;  %4521 = vmatprep.mubr.msk.f32.mxu1 %vm837_vm7, %v6393_v4 }
 0x3e1   : > { %4469 = vmatprep.mubr.msk.f32.mxu0 %vm837_vm7, %v6365_v51 }
 0x3e3   : > { %4522 = vmatmul.mubr.msk.f32.gmra.mxu1 %vm837_vm7, %v6390_v40 }
 0x3e4   : > { %4470 = vmatmul.mubr.msk.f32.gmra.mxu0 %vm837_vm7, %v6362_v1  ;;  %4524 = vmatprep.mubr.msk.f32.mxu1 %vm837_vm7, %v6402_v30 }
 0x3e5   : > { %4472 = vmatprep.mubr.msk.f32.mxu0 %vm837_vm7, %v6379_v35 }
 0x3e7   : > { %4525 = vmatmul.mubr.msk.f32.gmra.mxu1 %vm837_vm7, %v6409_v43 }
 0x3e8   : > { %4473 = vmatmul.mubr.msk.f32.gmra.mxu0 %vm837_vm7, %v6376_v21  ;;  %4527 = vmatprep.mubr.msk.f32.mxu1 %vm837_vm7, %v3135_v61 }
 0x3e9   : > { %4475 = vmatprep.mubr.msk.f32.mxu0 %vm837_vm7, %v6393_v4 }
 0x3eb   : > { %4528 = vmatmul.mubr.msk.f32.gmra.mxu1 %vm837_vm7, %v3136_v18 }
 0x3ec   : > { %4476 = vmatmul.mubr.msk.f32.gmra.mxu0 %vm837_vm7, %v6390_v40 }
 0x3f0   : > { %v4380_v19 = vpop.f32.mrf.mxu1 }
 0x3f2   : > { %v2715_v56 = vpop.f32.mrf.mxu1 }
 0x3f8   : > { %v4383_v15 = vpop.f32.mrf.mxu1 }
 0x3fa   : > { %v2725_v34 = vpop.f32.mrf.mxu1 }
 0x400   : > { %v4386_v45 = vpop.f32.mrf.mxu1 }
 0x402   : > { %v2735_v25 = vpop.f32.mrf.mxu1 }
 0x408   : > { %v4389_v52 = vpop.f32.mrf.mxu1 }
 0x40a   : > { %v2745_v57 = vpop.f32.mrf.mxu1 }
 0x410   : > { %v6551_v54 = vpop.f32.mrf.mxu1 }
 0x412   : > { %v6553_v41 = vpop.f32.mrf.mxu1 }
 0x418   : > { %v6555_v11 = vpop.f32.mrf.mxu1 }
 0x41a   : > { %v6557_v39 = vpop.f32.mrf.mxu1 }
 0x420   : > { %v6559_v7 = vpop.f32.mrf.mxu1 }
 0x422   : > { %v6561_v46 = vpop.f32.mrf.mxu1 }
 0x428   : > { %v6563_v22 = vpop.f32.mrf.mxu1 }
 0x42a   : > { %v6565_v60 = vpop.f32.mrf.mxu1 }
 0x430   : > { %v6567_v62 = vpop.f32.mrf.mxu1 }
 0x432   : > { %v6569_v37 = vpop.f32.mrf.mxu1 }
 0x438   : > { %v6571_v38 = vpop.f32.mrf.mxu1 }
 0x43a   : > { %v6573_v47 = vpop.f32.mrf.mxu1 }
 0x440   : > { %v6575_v5 = vpop.f32.mrf.mxu1 }
 0x442   : > { %v6577_v50 = vpop.f32.mrf.mxu1 }
 0x448   : > { %v6579_v14 = vpop.f32.mrf.mxu1 }
 0x44a   : > { %v6581_v53 = vpop.f32.mrf.mxu1 }
 0x450   : > { %v6583_v1 = vpop.f32.mrf.mxu1 }
 0x452   : > { %v6585_v51 = vpop.f32.mrf.mxu1 }
 0x458   : > { %v6587_v0 = vpop.f32.mrf.mxu1 }
 0x45a   : > { %v6589_v9 = vpop.f32.mrf.mxu1 }
 0x460   : > { %v6591_v27 = vpop.f32.mrf.mxu1 }
 0x462   : > { %v6593_v24 = vpop.f32.mrf.mxu1 }
 0x46b   : > { %v6595_v10 = vpop.f32.mrf.mxu1 }
 0x46d   : > { %v6597_v33 = vpop.f32.mrf.mxu1 }
 0x46f   : > { %v4484_v21 = vpop.f32.mrf.mxu1 }
 0x470   : > { %v4432_v35 = vpop.f32.mrf.mxu0 }
 0x471   : > { %v2955_v44 = vadd.f32 %v4432_v35, %v4380_v19  ;;  %v3215_v28 = vpop.f32.mrf.mxu1 }
 0x472   : > { %v2949_v13 = vpop.f32.mrf.mxu0 }
 0x473   : > { %v2950_v31 = vadd.f32 %v2949_v13, %v2715_v56  ;;  %v4487_v42 = vpop.f32.mrf.mxu1  ;;  %v6599_v40 = vadd.f32 %v4484_v21, %v2955_v44 }
 0x474   : > { %v4435_v17 = vpop.f32.mrf.mxu0 }
 0x475   : > { %v6601_v4 = vadd.f32 %v3215_v28, %v2950_v31  ;;  %v2965_v8 = vadd.f32 %v4435_v17, %v4383_v15  ;;  %v3225_v32 = vpop.f32.mrf.mxu1  ;;  %v3407_v43 = vsel %vm171_vm0, %v6599_v40, 0.0 }
 0x476   : > { %v2959_v59 = vpop.f32.mrf.mxu0 }
 0x477   : > { %v3406_v26 = vsel %vm171_vm0, %v6601_v4, 0.0  ;;  %v2960_v30 = vadd.f32 %v2959_v59, %v2725_v34  ;;  %v4490_v3 = vpop.f32.mrf.mxu1  ;;  %v6607_v2 = vadd.f32 %v4487_v42, %v2965_v8 }
 0x478   : > { %v4438_v36 = vpop.f32.mrf.mxu0  ;;  %v3408_v16 = vadd.f32 %v3407_v43, %v3406_v26 }
 0x479   : > { %v6609_v29 = vadd.f32 %v3225_v32, %v2960_v30  ;;  %v2975_v20 = vadd.f32 %v4438_v36, %v4386_v45  ;;  %v3235_v63 = vpop.f32.mrf.mxu1  ;;  %v3411_v61 = vsel %vm171_vm0, %v6607_v2, 0.0 }
 0x47a   : > { %v2969_v55 = vpop.f32.mrf.mxu0 }
 0x47b   : > { %v3409_v58 = vsel %vm171_vm0, %v6609_v29, 0.0  ;;  %v2970_v12 = vadd.f32 %v2969_v55, %v2735_v25  ;;  %v4493_v23 = vpop.f32.mrf.mxu1  ;;  %v6615_v48 = vadd.f32 %v4490_v3, %v2975_v20 }
 0x47c   : > { %v3410_v6 = vadd.f32 %v3409_v58, %v3408_v16  ;;  %v4441_v49 = vpop.f32.mrf.mxu0 }
 0x47d   : > { %v6617_v18 = vadd.f32 %v3235_v63, %v2970_v12  ;;  %v2985_v19 = vadd.f32 %v4441_v49, %v4389_v52  ;;  %v3245_v56 = vpop.f32.mrf.mxu1  ;;  %v3415_v28 = vsel %vm171_vm0, %v6615_v48, 0.0 }
 0x47e   : > { %v3412_v15 = vadd.f32 %v3411_v61, %v3410_v6  ;;  %v2979_v34 = vpop.f32.mrf.mxu0 }
 0x47f   : > { %v3413_v45 = vsel %vm171_vm0, %v6617_v18, 0.0  ;;  %v2980_v21 = vadd.f32 %v2979_v34, %v2745_v57  ;;  %v4496_v35 = vpop.f32.mrf.mxu1  ;;  %v6623_v13 = vadd.f32 %v4493_v23, %v2985_v19 }
 0x480   : > { %v3414_v25 = vadd.f32 %v3413_v45, %v3412_v15  ;;  %v4444_v44 = vpop.f32.mrf.mxu0 }
 0x481   : > { %v6625_v31 = vadd.f32 %v3245_v56, %v2980_v21  ;;  %v2995_v42 = vadd.f32 %v4444_v44, %v6551_v54  ;;  %v3255_v52 = vpop.f32.mrf.mxu1  ;;  %v3419_v3 = vsel %vm171_vm0, %v6623_v13, 0.0 }
 0x482   : > { %v3416_v17 = vadd.f32 %v3415_v28, %v3414_v25  ;;  %v2989_v8 = vpop.f32.mrf.mxu0 }
 0x483   : > { %v3417_v32 = vsel %vm171_vm0, %v6625_v31, 0.0  ;;  %v2990_v57 = vadd.f32 %v2989_v8, %v6553_v41  ;;  %v4499_v59 = vpop.f32.mrf.mxu1  ;;  %v6633_v36 = vadd.f32 %v4496_v35, %v2995_v42 }
 0x484   : > { %v3418_v26 = vadd.f32 %v3417_v32, %v3416_v17  ;;  %v4447_v30 = vpop.f32.mrf.mxu0 }
 0x485   : > { %v6635_v43 = vadd.f32 %v3255_v52, %v2990_v57  ;;  %v3005_v54 = vadd.f32 %v4447_v30, %v6555_v11  ;;  %v3265_v20 = vpop.f32.mrf.mxu1  ;;  %v3423_v6 = vsel %vm171_vm0, %v6633_v36, 0.0 }
 0x486   : > { %v3420_v63 = vadd.f32 %v3419_v3, %v3418_v26  ;;  %v2999_v16 = vpop.f32.mrf.mxu0 }
 0x487   : > { %v3421_v55 = vsel %vm171_vm0, %v6635_v43, 0.0  ;;  %v3000_v41 = vadd.f32 %v2999_v16, %v6557_v39  ;;  %v4502_v58 = vpop.f32.mrf.mxu1  ;;  %v6643_v49 = vadd.f32 %v4499_v59, %v3005_v54 }
 0x488   : > { %v3422_v12 = vadd.f32 %v3421_v55, %v3420_v63  ;;  %v4450_v23 = vpop.f32.mrf.mxu0 }
 0x489   : > { %v6645_v61 = vadd.f32 %v3265_v20, %v3000_v41  ;;  %v3015_v11 = vadd.f32 %v4450_v23, %v6559_v7  ;;  %v3275_v19 = vpop.f32.mrf.mxu1  ;;  %v3427_v25 = vsel %vm171_vm0, %v6643_v49, 0.0 }
 0x48a   : > { %v3424_v56 = vadd.f32 %v3423_v6, %v3422_v12  ;;  %v3009_v15 = vpop.f32.mrf.mxu0 }
 0x48b   : > { %v3425_v34 = vsel %vm171_vm0, %v6645_v61, 0.0  ;;  %v3010_v39 = vadd.f32 %v3009_v15, %v6561_v46  ;;  %v4505_v45 = vpop.f32.mrf.mxu1  ;;  %v6653_v44 = vadd.f32 %v4502_v58, %v3015_v11 }
 0x48c   : > { %v3426_v21 = vadd.f32 %v3425_v34, %v3424_v56  ;;  %v4453_v35 = vpop.f32.mrf.mxu0 }
 0x48d   : > { %v6655_v28 = vadd.f32 %v3275_v19, %v3010_v39  ;;  %v3025_v7 = vadd.f32 %v4453_v35, %v6563_v22  ;;  %v3285_v42 = vpop.f32.mrf.mxu1  ;;  %v3431_v26 = vsel %vm171_vm0, %v6653_v44, 0.0 }
 0x48e   : > { %v3428_v52 = vadd.f32 %v3427_v25, %v3426_v21  ;;  %v3019_v17 = vpop.f32.mrf.mxu0 }
 0x48f   : > { %v3429_v8 = vsel %vm171_vm0, %v6655_v28, 0.0  ;;  %v3020_v46 = vadd.f32 %v3019_v17, %v6565_v60  ;;  %v4508_v32 = vpop.f32.mrf.mxu1  ;;  %v6663_v30 = vadd.f32 %v4505_v45, %v3025_v7 }
 0x490   : > { %v3430_v57 = vadd.f32 %v3429_v8, %v3428_v52  ;;  %v4456_v59 = vpop.f32.mrf.mxu0 }
 0x491   : > { %v6665_v3 = vadd.f32 %v3285_v42, %v3020_v46  ;;  %v3035_v22 = vadd.f32 %v4456_v59, %v6567_v62  ;;  %v3295_v54 = vpop.f32.mrf.mxu1  ;;  %v3435_v12 = vsel %vm171_vm0, %v6663_v30, 0.0 }
 0x492   : > { %v3432_v20 = vadd.f32 %v3431_v26, %v3430_v57  ;;  %v3029_v63 = vpop.f32.mrf.mxu0 }
 0x493   : > { %v3433_v16 = vsel %vm171_vm0, %v6665_v3, 0.0  ;;  %v3030_v60 = vadd.f32 %v3029_v63, %v6569_v37  ;;  %v4511_v55 = vpop.f32.mrf.mxu1  ;;  %v6673_v23 = vadd.f32 %v4508_v32, %v3035_v22 }
 0x494   : > { %v3434_v41 = vadd.f32 %v3433_v16, %v3432_v20  ;;  %v4459_v58 = vpop.f32.mrf.mxu0 }
 0x495   : > { %v6675_v6 = vadd.f32 %v3295_v54, %v3030_v60  ;;  %v3045_v62 = vadd.f32 %v4459_v58, %v6571_v38  ;;  %v3305_v11 = vpop.f32.mrf.mxu1  ;;  %v3439_v21 = vsel %vm171_vm0, %v6673_v23, 0.0 }
 0x496   : > { %v3436_v19 = vadd.f32 %v3435_v12, %v3434_v41  ;;  %v3039_v56 = vpop.f32.mrf.mxu0 }
 0x497   : > { %v3437_v15 = vsel %vm171_vm0, %v6675_v6, 0.0  ;;  %v3040_v37 = vadd.f32 %v3039_v56, %v6573_v47  ;;  %v4514_v34 = vpop.f32.mrf.mxu1  ;;  %v6683_v35 = vadd.f32 %v4511_v55, %v3045_v62 }
 0x498   : > { %v3438_v39 = vadd.f32 %v3437_v15, %v3436_v19  ;;  %v4462_v45 = vpop.f32.mrf.mxu0 }
 0x499   : > { %v6685_v25 = vadd.f32 %v3305_v11, %v3040_v37  ;;  %v3055_v38 = vadd.f32 %v4462_v45, %v6575_v5  ;;  %v3315_v7 = vpop.f32.mrf.mxu1  ;;  %v3443_v57 = vsel %vm171_vm0, %v6683_v35, 0.0 }
 0x49a   : > { %v3440_v42 = vadd.f32 %v3439_v21, %v3438_v39  ;;  %v3049_v52 = vpop.f32.mrf.mxu0 }
 0x49b   : > { %v3441_v17 = vsel %vm171_vm0, %v6685_v25, 0.0  ;;  %v3050_v47 = vadd.f32 %v3049_v52, %v6577_v50  ;;  %v4517_v8 = vpop.f32.mrf.mxu1  ;;  %v6693_v59 = vadd.f32 %v4514_v34, %v3055_v38 }
 0x49c   : > { %v3442_v46 = vadd.f32 %v3441_v17, %v3440_v42  ;;  %v4465_v32 = vpop.f32.mrf.mxu0 }
 0x49d   : > { %v6695_v26 = vadd.f32 %v3315_v7, %v3050_v47  ;;  %v3065_v5 = vadd.f32 %v4465_v32, %v6579_v14  ;;  %v3325_v22 = vpop.f32.mrf.mxu1  ;;  %v3447_v41 = vsel %vm171_vm0, %v6693_v59, 0.0 }
 0x49e   : > { %v3444_v54 = vadd.f32 %v3443_v57, %v3442_v46  ;;  %v3059_v20 = vpop.f32.mrf.mxu0 }
 0x49f   : > { %v3445_v63 = vsel %vm171_vm0, %v6695_v26, 0.0  ;;  %v3060_v50 = vadd.f32 %v3059_v20, %v6581_v53  ;;  %v4520_v16 = vpop.f32.mrf.mxu1  ;;  %v6703_v58 = vadd.f32 %v4517_v8, %v3065_v5 }
 0x4a0   : > { %v3446_v60 = vadd.f32 %v3445_v63, %v3444_v54  ;;  %v4468_v55 = vpop.f32.mrf.mxu0 }
 0x4a1   : > { %v6705_v12 = vadd.f32 %v3325_v22, %v3060_v50  ;;  %v3075_v14 = vadd.f32 %v4468_v55, %v6583_v1  ;;  %v3335_v62 = vpop.f32.mrf.mxu1  ;;  %v3451_v39 = vsel %vm171_vm0, %v6703_v58, 0.0 }
 0x4a2   : > { %v3448_v11 = vadd.f32 %v3447_v41, %v3446_v60  ;;  %v3069_v19 = vpop.f32.mrf.mxu0 }
 0x4a3   : > { %v3449_v56 = vsel %vm171_vm0, %v6705_v12, 0.0  ;;  %v3070_v53 = vadd.f32 %v3069_v19, %v6585_v51  ;;  %v4523_v15 = vpop.f32.mrf.mxu1  ;;  %v6713_v45 = vadd.f32 %v4520_v16, %v3075_v14 }
 0x4a4   : > { %v3450_v37 = vadd.f32 %v3449_v56, %v3448_v11  ;;  %v4471_v34 = vpop.f32.mrf.mxu0 }
 0x4a5   : > { %v3398_v21 = vadd.f32 %v3335_v62, %v3070_v53  ;;  %v3085_v38 = vadd.f32 %v4471_v34, %v6587_v0  ;;  %v3345_v1 = vpop.f32.mrf.mxu1  ;;  %v3455_v46 = vsel %vm171_vm0, %v6713_v45, 0.0 }
 0x4a6   : > { %v3452_v7 = vadd.f32 %v3451_v39, %v3450_v37  ;;  %v3079_v42 = vpop.f32.mrf.mxu0 }
 0x4a7   : > { %v3453_v52 = vsel %vm171_vm0, %v3398_v21, 0.0  ;;  %v3080_v17 = vadd.f32 %v3079_v42, %v6589_v9  ;;  %v4526_v47 = vpop.f32.mrf.mxu1  ;;  %v3401_v32 = vadd.f32 %v4523_v15, %v3085_v38 }
 0x4a8   : > { %v3454_v51 = vadd.f32 %v3453_v52, %v3452_v7  ;;  %v4474_v8 = vpop.f32.mrf.mxu0 }
 0x4a9   : > { %v3400_v57 = vadd.f32 %v3345_v1, %v3080_v17  ;;  %v3095_v5 = vadd.f32 %v4474_v8, %v6591_v27  ;;  %v3355_v22 = vpop.f32.mrf.mxu1  ;;  %v3459_v60 = vsel %vm171_vm0, %v3401_v32, 0.0 }
 0x4aa   : > { %v3456_v54 = vadd.f32 %v3455_v46, %v3454_v51  ;;  %v3089_v0 = vpop.f32.mrf.mxu0 }
 0x4ab   : > { %v3457_v20 = vsel %vm171_vm0, %v3400_v57, 0.0  ;;  %v3090_v63 = vadd.f32 %v3089_v0, %v6593_v24  ;;  %v4529_v16 = vpop.f32.mrf.mxu1  ;;  %v3403_v55 = vadd.f32 %v4526_v47, %v3095_v5 }
 0x4ac   : > { %v3458_v50 = vadd.f32 %v3457_v20, %v3456_v54  ;;  %v4477_v9 = vpop.f32.mrf.mxu0 }
 0x4ad   : > { %v3402_v41 = vadd.f32 %v3355_v22, %v3090_v63  ;;  %v3105_v14 = vadd.f32 %v4477_v9, %v6595_v10  ;;  %v3365_v53 = vpop.f32.mrf.mxu1  ;;  %v3463_v15 = vsel %vm171_vm0, %v3403_v55, 0.0 }
 0x4ae   : > { %v3460_v62 = vadd.f32 %v3459_v60, %v3458_v50  ;;  %v3099_v11 = vpop.f32.mrf.mxu0 }
 0x4af   : > { %v3461_v27 = vsel %vm171_vm0, %v3402_v41, 0.0  ;;  %v3100_v19 = vadd.f32 %v3099_v11, %v6597_v33  ;;  %v3405_v24 = vadd.f32 %v4529_v16, %v3105_v14 }
 0x4b0   : > { %v3462_v56 = vadd.f32 %v3461_v27, %v3460_v62 }
 0x4b1   : > { %v3404_v37 = vadd.f32 %v3365_v53, %v3100_v19  ;;  %v3467_v1 = vsel %vm171_vm0, %v3405_v24, 0.0 }
 0x4b2   : > { %v3464_v34 = vadd.f32 %v3463_v15, %v3462_v56 }
 0x4b3   : > { %v3465_v39 = vsel %vm171_vm0, %v3404_v37, 0.0 }
 0x4b4   : > { %v3466_v38 = vadd.f32 %v3465_v39, %v3464_v34 }
 0x4b6   : > { %v3468_v7 = vadd.f32 %v3467_v1, %v3466_v38 }
 0x4b8   : > { %v3469_v10 = vrot.slane %v3468_v7, 4 }
 0x4ba   : > { %v3470_v42 = vadd.f32 %v3469_v10, %v3468_v7 }
 0x4bc   : > { %v3471_v52 = vrot.slane %v3470_v42, 2 }
 0x4be   : > { %v3472_v17 = vadd.f32 %v3471_v52, %v3470_v42 }
 0x4c0   : > { %v3473_v47 = vrot.slane %v3472_v17, 1 }
 0x4c2   : > { %v3474_v51 = vadd.f32 %v3473_v47, %v3472_v17 }
 0x4c4   : > { %v3475_v33 = vmul.f32 0.00390625, %v3474_v51 }
 0x4c6   : > { %v6731_v8 = vsub.f32 %v6645_v61, %v3475_v33  ;;  %v6734_v46 = vsub.f32 %v6643_v49, %v3475_v33  ;;  %v6737_v5 = vsub.f32 %v6655_v28, %v3475_v33  ;;  %v6740_v22 = vsub.f32 %v6653_v44, %v3475_v33 }
 0x4c7   : > { %v6743_v54 = vsub.f32 %v6665_v3, %v3475_v33  ;;  %v6746_v0 = vsub.f32 %v6663_v30, %v3475_v33  ;;  %v6749_v20 = vsub.f32 %v6675_v6, %v3475_v33  ;;  %v6752_v61 = vsub.f32 %v6673_v23, %v3475_v33 }
 0x4c8   : > { %v6755_v49 = vsub.f32 %v6685_v25, %v3475_v33  ;;  %v6758_v28 = vsub.f32 %v6683_v35, %v3475_v33  ;;  %v6761_v44 = vsub.f32 %v6695_v26, %v3475_v33  ;;  %v6764_v3 = vsub.f32 %v6693_v59, %v3475_v33 }
 0x4c9   : > { %v6767_v30 = vsub.f32 %v6705_v12, %v3475_v33  ;;  %v6770_v6 = vsub.f32 %v6703_v58, %v3475_v33  ;;  %v6772_v23 = vsub.f32 %v3398_v21, %v3475_v33  ;;  %v6775_v25 = vsub.f32 %v6713_v45, %v3475_v33 }
 0x4ca   : > { %v6777_v63 = vsub.f32 %v3400_v57, %v3475_v33  ;;  %v6779_v35 = vsub.f32 %v3401_v32, %v3475_v33  ;;  %v6781_v26 = vsub.f32 %v3402_v41, %v3475_v33  ;;  %v6783_v50 = vsub.f32 %v3403_v55, %v3475_v33 }
 0x4cb   : > { %v6785_v59 = vsub.f32 %v3404_v37, %v3475_v33  ;;  %v6787_v12 = vsub.f32 %v3405_v24, %v3475_v33  ;;  %v6790_v58 = vsub.f32 %v6601_v4, %v3475_v33  ;;  %v6793_v21 = vsub.f32 %v6599_v40, %v3475_v33 }
 0x4cc   : > { %v6796_v45 = vsub.f32 %v6609_v29, %v3475_v33  ;;  %v6799_v32 = vsub.f32 %v6607_v2, %v3475_v33  ;;  %v6806_v9 = vsub.f32 %v6617_v18, %v3475_v33  ;;  %v6811_v40 = vsub.f32 %v6615_v48, %v3475_v33 }
 0x4cd   : > { %v3508_v57 = vmul.f32 %v6790_v58, %v6790_v58  ;;  %v3509_v16 = vmul.f32 %v6793_v21, %v6793_v21  ;;  %v6818_v41 = vsub.f32 %v6625_v31, %v3475_v33  ;;  %v6824_v48 = vsub.f32 %v6623_v13, %v3475_v33 }
 0x4ce   : > { %v3510_v4 = vmul.f32 %v6796_v45, %v6796_v45  ;;  %v3511_v29 = vmul.f32 %v6799_v32, %v6799_v32  ;;  %v3512_v18 = vmul.f32 %v6806_v9, %v6806_v9  ;;  %v3513_v11 = vmul.f32 %v6811_v40, %v6811_v40 }
 0x4cf   : > { %v3540_v2 = vsel %vm171_vm0, %v3508_v57, 0.0  ;;  %v3541_v60 = vsel %vm171_vm0, %v3509_v16, 0.0  ;;  %v6830_v56 = vsub.f32 %v6635_v43, %v3475_v33  ;;  %v3514_v31 = vmul.f32 %v6818_v41, %v6818_v41 }
 0x4d0   : > { %v3542_v55 = vadd.f32 %v3541_v60, %v3540_v2  ;;  %v3543_v14 = vsel %vm171_vm0, %v3510_v4, 0.0  ;;  %v3545_v27 = vsel %vm171_vm0, %v3511_v29, 0.0  ;;  %v3547_v53 = vsel %vm171_vm0, %v3512_v18, 0.0 }
 0x4d1   : > { %v6836_v24 = vsub.f32 %v6633_v36, %v3475_v33  ;;  %v3515_v13 = vmul.f32 %v6824_v48, %v6824_v48  ;;  %v3549_v37 = vsel %vm171_vm0, %v3513_v11, 0.0  ;;  %v3516_v39 = vmul.f32 %v6830_v56, %v6830_v56 }
 0x4d2   : > { %v3544_v62 = vadd.f32 %v3543_v14, %v3542_v55  ;;  %v3551_v43 = vsel %vm171_vm0, %v3514_v31, 0.0  ;;  %v3518_v36 = vmul.f32 %v6731_v8, %v6731_v8  ;;  %v3519_v17 = vmul.f32 %v6734_v46, %v6734_v46 }
 0x4d3   : > { %v3517_v1 = vmul.f32 %v6836_v24, %v6836_v24  ;;  %v3553_v7 = vsel %vm171_vm0, %v3515_v13, 0.0  ;;  %v3555_v42 = vsel %vm171_vm0, %v3516_v39, 0.0  ;;  %v3520_v33 = vmul.f32 %v6737_v5, %v6737_v5 }
 0x4d4   : > { %v3546_v19 = vadd.f32 %v3545_v27, %v3544_v62  ;;  %v3559_v57 = vsel %vm171_vm0, %v3518_v36, 0.0  ;;  %v3521_v4 = vmul.f32 %v6740_v22, %v6740_v22  ;;  %v3561_v29 = vsel %vm171_vm0, %v3519_v17, 0.0 }
 0x4d5   : > { %v3557_v47 = vsel %vm171_vm0, %v3517_v1, 0.0  ;;  %v3522_v60 = vmul.f32 %v6743_v54, %v6743_v54  ;;  %v3563_v55 = vsel %vm171_vm0, %v3520_v33, 0.0  ;;  %v3523_v14 = vmul.f32 %v6746_v0, %v6746_v0 }
 0x4d6   : > { %v3548_v15 = vadd.f32 %v3547_v53, %v3546_v19  ;;  %v3565_v62 = vsel %vm171_vm0, %v3521_v4, 0.0  ;;  %v3524_v27 = vmul.f32 %v6749_v20, %v6749_v20  ;;  %v3525_v53 = vmul.f32 %v6752_v61, %v6752_v61 }
 0x4d7   : > { %v3567_v19 = vsel %vm171_vm0, %v3522_v60, 0.0 }
 0x4d8   : > { %v3550_v34 = vadd.f32 %v3549_v37, %v3548_v15  ;;  %v3569_v15 = vsel %vm171_vm0, %v3523_v14, 0.0  ;;  %v3526_v37 = vmul.f32 %v6755_v49, %v6755_v49 }
 0x4da   : > { %v3552_v38 = vadd.f32 %v3551_v43, %v3550_v34  ;;  %v3571_v34 = vsel %vm171_vm0, %v3524_v27, 0.0  ;;  %v3527_v43 = vmul.f32 %v6758_v28, %v6758_v28 }
 0x4dc   : > { %v3554_v10 = vadd.f32 %v3553_v7, %v3552_v38  ;;  %v3573_v38 = vsel %vm171_vm0, %v3525_v53, 0.0  ;;  %v3528_v7 = vmul.f32 %v6761_v44, %v6761_v44 }
 0x4de   : > { %v3556_v52 = vadd.f32 %v3555_v42, %v3554_v10  ;;  %v3575_v10 = vsel %vm171_vm0, %v3526_v37, 0.0  ;;  %v3529_v42 = vmul.f32 %v6764_v3, %v6764_v3 }
 0x4e0   : > { %v3558_v51 = vadd.f32 %v3557_v47, %v3556_v52  ;;  %v3577_v52 = vsel %vm171_vm0, %v3527_v43, 0.0  ;;  %v3530_v47 = vmul.f32 %v6767_v30, %v6767_v30 }
 0x4e2   : > { %v3560_v16 = vadd.f32 %v3559_v57, %v3558_v51  ;;  %v3579_v51 = vsel %vm171_vm0, %v3528_v7, 0.0  ;;  %v3531_v57 = vmul.f32 %v6770_v6, %v6770_v6 }
 0x4e4   : > { %v3562_v2 = vadd.f32 %v3561_v29, %v3560_v16  ;;  %v3581_v16 = vsel %vm171_vm0, %v3529_v42, 0.0  ;;  %v3532_v29 = vmul.f32 %v6772_v23, %v6772_v23 }
 0x4e6   : > { %v3564_v18 = vadd.f32 %v3563_v55, %v3562_v2  ;;  %v3583_v2 = vsel %vm171_vm0, %v3530_v47, 0.0  ;;  %v3533_v55 = vmul.f32 %v6775_v25, %v6775_v25 }
 0x4e8   : > { %v3566_v11 = vadd.f32 %v3565_v62, %v3564_v18  ;;  %v3585_v18 = vsel %vm171_vm0, %v3531_v57, 0.0  ;;  %v3534_v62 = vmul.f32 %v6777_v63, %v6777_v63 }
 0x4ea   : > { %v3568_v31 = vadd.f32 %v3567_v19, %v3566_v11  ;;  %v3587_v11 = vsel %vm171_vm0, %v3532_v29, 0.0  ;;  %v3535_v19 = vmul.f32 %v6779_v35, %v6779_v35 }
 0x4ec   : > { %v3570_v13 = vadd.f32 %v3569_v15, %v3568_v31  ;;  %v3589_v31 = vsel %vm171_vm0, %v3533_v55, 0.0  ;;  %v3536_v15 = vmul.f32 %v6781_v26, %v6781_v26 }
 0x4ee   : > { %v3572_v39 = vadd.f32 %v3571_v34, %v3570_v13  ;;  %v3591_v13 = vsel %vm171_vm0, %v3534_v62, 0.0  ;;  %v3537_v34 = vmul.f32 %v6783_v50, %v6783_v50 }
 0x4f0   : > { %v3574_v1 = vadd.f32 %v3573_v38, %v3572_v39  ;;  %v3593_v39 = vsel %vm171_vm0, %v3535_v19, 0.0  ;;  %v3538_v38 = vmul.f32 %v6785_v59, %v6785_v59 }
 0x4f2   : > { %v3576_v36 = vadd.f32 %v3575_v10, %v3574_v1  ;;  %v3595_v1 = vsel %vm171_vm0, %v3536_v15, 0.0  ;;  %v3539_v10 = vmul.f32 %v6787_v12, %v6787_v12 }
 0x4f4   : > { %v3578_v17 = vadd.f32 %v3577_v52, %v3576_v36  ;;  %v3597_v36 = vsel %vm171_vm0, %v3537_v34, 0.0  ;;  %v3599_v52 = vsel %vm171_vm0, %v3538_v38, 0.0  ;;  %v3601_v47 = vsel %vm171_vm0, %v3539_v10, 0.0  ;;  %v3650_v34 = vld [vmem:[%s4643_s18 + $0x30] sm:$0xff]  ;;  %v3653_v38 = vld [vmem:[%s4643_s18 + $0x48] sm:$0xff]  ;;  %v3656_v10 = vld [vmem:[%s4643_s18 + $0x60] sm:$0xff] }
 0x4f6   : > { %v3580_v33 = vadd.f32 %v3579_v51, %v3578_v17 }
 0x4f8   : > { %v3582_v4 = vadd.f32 %v3581_v16, %v3580_v33 }
 0x4fa   : > { %v3584_v60 = vadd.f32 %v3583_v2, %v3582_v4 }
 0x4fc   : > { %v3586_v14 = vadd.f32 %v3585_v18, %v3584_v60 }
 0x4fe   : > { %v3588_v27 = vadd.f32 %v3587_v11, %v3586_v14 }
 0x500   : > { %v3590_v53 = vadd.f32 %v3589_v31, %v3588_v27 }
 0x502   : > { %v3592_v37 = vadd.f32 %v3591_v13, %v3590_v53 }
 0x504   : > { %v3594_v43 = vadd.f32 %v3593_v39, %v3592_v37  ;;  %v3649_v37 = vld [vmem:[%s4643_s18 + $0x28] sm:$0xff]  ;;  %v3651_v39 = vld [vmem:[%s4643_s18 + $0x38] sm:$0xff] }
 0x506   : > { %v3596_v7 = vadd.f32 %v3595_v1, %v3594_v43  ;;  %v3652_v43 = vld [vmem:[%s4643_s18 + $0x40] sm:$0xff]  ;;  %v3654_v1 = vld [vmem:[%s4643_s18 + $0x50] sm:$0xff] }
 0x508   : > { %v3598_v42 = vadd.f32 %v3597_v36, %v3596_v7  ;;  %v3657_v36 = vld [vmem:[%s4643_s18 + $0x68] sm:$0xff] }
 0x50a   : > { %v3600_v17 = vadd.f32 %v3599_v52, %v3598_v42  ;;  %v3658_v42 = vld [vmem:[%s4643_s18 + $0x70] sm:$0xff]  ;;  %v3659_v52 = vld [vmem:[%s4643_s18 + $0x78] sm:$0xff] }
 0x50c   : > { %v3602_v51 = vadd.f32 %v3601_v47, %v3600_v17  ;;  %v3660_v17 = vld [vmem:[%s4643_s18 + $0x80] sm:$0xff]  ;;  %v3661_v47 = vld [vmem:[%s4643_s18 + $0x88] sm:$0xff] }
 0x50e   : > { %v3603_v33 = vrot.slane %v3602_v51, 4 }
 0x510   : > { %v3604_v57 = vadd.f32 %v3603_v33, %v3602_v51  ;;  %v3662_v51 = vld [vmem:[%s4643_s18 + $0x90] sm:$0xff] }
 0x512   : > { %v3605_v16 = vrot.slane %v3604_v57, 2 }
 0x514   : > { %v3606_v4 = vadd.f32 %v3605_v16, %v3604_v57 }
 0x516   : > { %v3607_v29 = vrot.slane %v3606_v4, 1 }
 0x518   : > { %v3608_v2 = vadd.f32 %v3607_v29, %v3606_v4  ;;  %v3665_v4 = vld [vmem:[%s4643_s18 + $0xa8] sm:$0xff] }
 0x51a   : > { %v3609_v60 = vmul.f32 0.00390625, %v3608_v2 }
 0x51c   : > { %v3610_v55 = vadd.f32 1e-05, %v3609_v60 }
 0x51e   : > { %4543 = vrsqrt.f32 %v3610_v55 }
 0x52b   : > { %v4544_v18 = vpop.eup %4543 }
 0x52c   : > { %v3612_v14 = vmul.f32 %v4544_v18, %v6790_v58  ;;  %v3613_v62 = vmul.f32 %v4544_v18, %v6793_v21  ;;  %v3614_v11 = vmul.f32 %v4544_v18, %v6796_v45  ;;  %v3615_v27 = vmul.f32 %v4544_v18, %v6799_v32 }
 0x52d   : > { %v3616_v19 = vmul.f32 %v4544_v18, %v6806_v9  ;;  %v3617_v31 = vmul.f32 %v4544_v18, %v6811_v40  ;;  %v3618_v53 = vmul.f32 %v4544_v18, %v6818_v41  ;;  %v3619_v15 = vmul.f32 %v4544_v18, %v6824_v48 }
 0x52e   : > { %v3620_v58 = vmul.f32 %v4544_v18, %v6830_v56  ;;  %v3621_v21 = vmul.f32 %v4544_v18, %v6836_v24  ;;  %v3622_v45 = vmul.f32 %v4544_v18, %v6731_v8  ;;  %v3623_v32 = vmul.f32 %v4544_v18, %v6734_v46  ;;  %v3644_v56 = vld [vmem:[%s4643_s18] sm:$0xff]  ;;  %v3645_v24 = vld [vmem:[%s4643_s18 + $0x8] sm:$0xff]  ;;  %v3646_v8 = vld [vmem:[%s4643_s18 + $0x10] sm:$0xff] }
 0x52f   : > { %v6928_v9 = vmul.f32 %v4544_v18, %v6737_v5  ;;  %v6931_v40 = vmul.f32 %v4544_v18, %v6740_v22  ;;  %v6934_v41 = vmul.f32 %v4544_v18, %v6743_v54  ;;  %v6937_v48 = vmul.f32 %v4544_v18, %v6746_v0  ;;  %v3647_v46 = vld [vmem:[%s4643_s18 + $0x18] sm:$0xff]  ;;  %v3648_v0 = vld [vmem:[%s4643_s18 + $0x20] sm:$0xff] }
 0x530   : > { %v6944_v13 = vmul.f32 %v4544_v18, %v6749_v20  ;;  %v6947_v5 = vmul.f32 %v4544_v18, %v6752_v61  ;;  %v6950_v22 = vmul.f32 %v4544_v18, %v6755_v49  ;;  %v6953_v54 = vmul.f32 %v4544_v18, %v6758_v28 }
 0x531   : > { %v6960_v20 = vmul.f32 %v4544_v18, %v6761_v44  ;;  %v6963_v61 = vmul.f32 %v4544_v18, %v6764_v3  ;;  %v6966_v49 = vmul.f32 %v4544_v18, %v6767_v30  ;;  %v6969_v28 = vmul.f32 %v4544_v18, %v6770_v6  ;;  %v3655_v6 = vld [vmem:[%s4643_s18 + $0x58] sm:$0xff] }
 0x532   : > { %v6975_v7 = vmul.f32 %v4544_v18, %v6772_v23  ;;  %v6978_v44 = vmul.f32 %v4544_v18, %v6775_v25  ;;  %v6981_v3 = vmul.f32 %v4544_v18, %v6777_v63  ;;  %v6984_v30 = vmul.f32 %v4544_v18, %v6779_v35 }
 0x533   : > { %v6997_v23 = vmul.f32 %v4544_v18, %v6781_v26  ;;  %v7000_v25 = vmul.f32 %v4544_v18, %v6783_v50  ;;  %v7003_v63 = vmul.f32 %v4544_v18, %v6785_v59  ;;  %v7006_v35 = vmul.f32 %v4544_v18, %v6787_v12  ;;  %v3663_v26 = vld [vmem:[%s4643_s18 + $0x98] sm:$0xff]  ;;  %v3664_v59 = vld [vmem:[%s4643_s18 + $0xa0] sm:$0xff]  ;;  %v3666_v12 = vld [vmem:[%s4643_s18 + $0xb0] sm:$0xff] }
 0x534   : > { %v3676_v33 = vadd.f32 %v3644_v56, %v3612_v14  ;;  %v3677_v57 = vadd.f32 %v3645_v24, %v3613_v62  ;;  %v3678_v16 = vadd.f32 %v3646_v8, %v3614_v11  ;;  %v3679_v50 = vadd.f32 %v3647_v46, %v3615_v27  ;;  %v3667_v18 = vld [vmem:[%s4643_s18 + $0xb8] sm:$0xff]  ;;  %v3669_v14 = vld [vmem:[%s4643_s18 + $0xc8] sm:$0xff] }
 0x535   : > { %7118 = vst [vmem:[#allocation3_spill] sm:$0xff] %v7006_v35  ;;  %v3680_v29 = vadd.f32 %v3648_v0, %v3616_v19  ;;  %v3681_v2 = vadd.f32 %v3649_v37, %v3617_v31  ;;  %v3682_v60 = vadd.f32 %v3650_v34, %v3618_v53  ;;  %v3683_v55 = vadd.f32 %v3651_v39, %v3619_v15  ;;  %v3668_v35 = vld [vmem:[%s4643_s18 + $0xc0] sm:$0xff]  ;;  %v3670_v19 = vld [vmem:[%s4643_s18 + $0xd0] sm:$0xff]  ;;  %v3671_v31 = vld [vmem:[%s4643_s18 + $0xd8] sm:$0xff] }
 0x536   : > { %v3684_v62 = vadd.f32 %v3652_v43, %v3620_v58  ;;  %v3685_v11 = vadd.f32 %v3653_v38, %v3621_v21  ;;  %v3686_v27 = vadd.f32 %v3654_v1, %v3622_v45  ;;  %v3687_v56 = vadd.f32 %v3655_v6, %v3623_v32  ;;  %3708 = vst.msk [vmem:[%s6994_s24] sm:$0xff] %vm171_vm0, %v3676_v33  ;;  %v3672_v53 = vld [vmem:[%s4643_s18 + $0xe0] sm:$0xff]  ;;  %v3673_v32 = vld [vmem:[%s4643_s18 + $0xe8] sm:$0xff] }
 0x537   : > { %3709 = vst.msk [vmem:[%s6994_s24 + $0x8] sm:$0xff] %vm171_vm0, %v3677_v57  ;;  %3710 = vst.msk [vmem:[%s6994_s24 + $0x10] sm:$0xff] %vm171_vm0, %v3678_v16  ;;  %v3688_v15 = vadd.f32 %v3656_v10, %v6928_v9  ;;  %v3689_v58 = vadd.f32 %v3657_v36, %v6931_v40  ;;  %v3690_v21 = vadd.f32 %v3658_v42, %v6934_v41  ;;  %v3674_v9 = vld [vmem:[%s4643_s18 + $0xf0] sm:$0xff]  ;;  %v3675_v40 = vld [vmem:[%s4643_s18 + $0xf8] sm:$0xff] }
 0x538   : > { %3711 = vst.msk [vmem:[%s6994_s24 + $0x18] sm:$0xff] %vm171_vm0, %v3679_v50  ;;  %v3691_v45 = vadd.f32 %v3659_v52, %v6937_v48  ;;  %3712 = vst.msk [vmem:[%s6994_s24 + $0x20] sm:$0xff] %vm171_vm0, %v3680_v29  ;;  %v3692_v41 = vadd.f32 %v3660_v17, %v6944_v13  ;;  %v3693_v24 = vadd.f32 %v3661_v47, %v6947_v5 }
 0x539   : > { %3713 = vst.msk [vmem:[%s6994_s24 + $0x28] sm:$0xff] %vm171_vm0, %v3681_v2  ;;  %3714 = vst.msk [vmem:[%s6994_s24 + $0x30] sm:$0xff] %vm171_vm0, %v3682_v60  ;;  %v3694_v48 = vadd.f32 %v3662_v51, %v6950_v22  ;;  %v3695_v8 = vadd.f32 %v3663_v26, %v6953_v54  ;;  %v3696_v46 = vadd.f32 %v3664_v59, %v6960_v20 }
 0x53a   : > { %3715 = vst.msk [vmem:[%s6994_s24 + $0x38] sm:$0xff] %vm171_vm0, %v3683_v55  ;;  %3716 = vst.msk [vmem:[%s6994_s24 + $0x40] sm:$0xff] %vm171_vm0, %v3684_v62  ;;  %v3697_v13 = vadd.f32 %v3665_v4, %v6963_v61  ;;  %v3698_v5 = vadd.f32 %v3666_v12, %v6966_v49  ;;  %v3699_v22 = vadd.f32 %v3667_v18, %v6969_v28 }
 0x53b   : > { %3717 = vst.msk [vmem:[%s6994_s24 + $0x48] sm:$0xff] %vm171_vm0, %v3685_v11  ;;  %3718 = vst.msk [vmem:[%s6994_s24 + $0x50] sm:$0xff] %vm171_vm0, %v3686_v27  ;;  %v3700_v54 = vadd.f32 %v3668_v35, %v6975_v7  ;;  %v3701_v0 = vadd.f32 %v3669_v14, %v6978_v44  ;;  %v3702_v37 = vadd.f32 %v3670_v19, %v6981_v3 }
 0x53c   : > { %3719 = vst.msk [vmem:[%s6994_s24 + $0x58] sm:$0xff] %vm171_vm0, %v3687_v56  ;;  %3720 = vst.msk [vmem:[%s6994_s24 + $0x60] sm:$0xff] %vm171_vm0, %v3688_v15  ;;  %v3703_v34 = vadd.f32 %v3671_v31, %v6984_v30  ;;  %v3704_v39 = vadd.f32 %v3672_v53, %v6997_v23  ;;  %v3705_v20 = vadd.f32 %v3673_v32, %v7000_v25  ;;  %v7119_v49 = vld [vmem:[#allocation3_spill] sm:$0xff] }
 0x53d   : > { %3721 = vst.msk [vmem:[%s6994_s24 + $0x68] sm:$0xff] %vm171_vm0, %v3689_v58  ;;  %3722 = vst.msk [vmem:[%s6994_s24 + $0x70] sm:$0xff] %vm171_vm0, %v3690_v21  ;;  %v3706_v61 = vadd.f32 %v3674_v9, %v7003_v63  ;;  %v3707_v28 = vadd.f32 %v3675_v40, %v7119_v49 }
 0x53e   : > { %3723 = vst.msk [vmem:[%s6994_s24 + $0x78] sm:$0xff] %vm171_vm0, %v3691_v45  ;;  %3724 = vst.msk [vmem:[%s6994_s24 + $0x80] sm:$0xff] %vm171_vm0, %v3692_v41 }
 0x53f   : > { %3725 = vst.msk [vmem:[%s6994_s24 + $0x88] sm:$0xff] %vm171_vm0, %v3693_v24  ;;  %3726 = vst.msk [vmem:[%s6994_s24 + $0x90] sm:$0xff] %vm171_vm0, %v3694_v48 }
 0x540   : > { %3727 = vst.msk [vmem:[%s6994_s24 + $0x98] sm:$0xff] %vm171_vm0, %v3695_v8  ;;  %3728 = vst.msk [vmem:[%s6994_s24 + $0xa0] sm:$0xff] %vm171_vm0, %v3696_v46 }
 0x541   : > { %3729 = vst.msk [vmem:[%s6994_s24 + $0xa8] sm:$0xff] %vm171_vm0, %v3697_v13  ;;  %3730 = vst.msk [vmem:[%s6994_s24 + $0xb0] sm:$0xff] %vm171_vm0, %v3698_v5 }
 0x542   : > { %3731 = vst.msk [vmem:[%s6994_s24 + $0xb8] sm:$0xff] %vm171_vm0, %v3699_v22  ;;  %3732 = vst.msk [vmem:[%s6994_s24 + $0xc0] sm:$0xff] %vm171_vm0, %v3700_v54 }
 0x543   : > { %3733 = vst.msk [vmem:[%s6994_s24 + $0xc8] sm:$0xff] %vm171_vm0, %v3701_v0  ;;  %3734 = vst.msk [vmem:[%s6994_s24 + $0xd0] sm:$0xff] %vm171_vm0, %v3702_v37 }
 0x544   : > { %3735 = vst.msk [vmem:[%s6994_s24 + $0xd8] sm:$0xff] %vm171_vm0, %v3703_v34  ;;  %3736 = vst.msk [vmem:[%s6994_s24 + $0xe0] sm:$0xff] %vm171_vm0, %v3704_v39 }
 0x545   : > { %3737 = vst.msk [vmem:[%s6994_s24 + $0xe8] sm:$0xff] %vm171_vm0, %v3705_v20  ;;  %3738 = vst.msk [vmem:[%s6994_s24 + $0xf0] sm:$0xff] %vm171_vm0, %v3706_v61 }
 0x546   : > { %3739 = vst.msk [vmem:[%s6994_s24 + $0xf8] sm:$0xff] %vm171_vm0, %v3707_v28 }
 0x547 PF: > { %s13_s12 = sadd.s32 1, %s4554_s12  }
 0x548   : > { %p10_p4 = scmp.ge.s32.totalorder %s13_s12, 4  }
 0x54a   :  { %12 = sbr.rel (!%p10_p4) target bundleno = 1 (0x1), region = 68 }

</bundles_post_ra>
